<compile_context>
chip_gen: v7x
topology: tpu7x:2x2x1
jax: 0.10.0
libtpu: 0.0.40
codegen_flags: <defaults>
</compile_context>

<pallas_src>
import functools

import jax
import jax.numpy as jnp
from jax.experimental import pallas as pl
from jax.experimental.pallas import tpu as pltpu


# ----------------------------------------------------------------------------
# ProjectionHead math (linear -> gelu -> linear -> +proj -> layernorm), shared
# by the image and spot paths.  Matmul operands are bf16 (MXU-native on
# v5e/v6e/v7x) with f32 accumulation; elementwise math stays f32 (v5e has no
# bf16 VPU/EUP).
# ----------------------------------------------------------------------------
def _projection_head_math(x_f32, w1_bf16, b1, w2_bf16, b2, gamma, beta):
    projected = jnp.dot(x_f32.astype(jnp.bfloat16), w1_bf16,
                        preferred_element_type=jnp.float32) + b1
    # TODO(synk): PyTorch nn.GELU() is exact erf-GELU; tanh approximation used here.
    h = jax.nn.gelu(projected, approximate=True)
    h = jnp.dot(h.astype(jnp.bfloat16), w2_bf16,
                preferred_element_type=jnp.float32) + b2
    # dropout(p=0.0) is the identity in this forward
    h = h + projected
    mu = jnp.mean(h, axis=-1, keepdims=True)
    var = jnp.mean(jnp.square(h - mu), axis=-1, keepdims=True)
    h = (h - mu) * jax.lax.rsqrt(var + 1e-5)
    return h * gamma + beta


# ----------------------------------------------------------------------------
# Fused kernel: per-tile embeddings accumulated into VMEM scratch; CLIP loss
# computed on the last grid step.
# ----------------------------------------------------------------------------
def _stco_fused_kernel(x_img_ref,                               # (tb, C, HW) bf16
                       expr_ref, cx_ref, cy_ref,                # (tb, S) f32
                       wi1_ref, bi1_ref, wi2_ref, bi2_ref, gi_ref, bti_ref,
                       ws1_ref, bs1_ref, ws2_ref, bs2_ref, gs_ref, bts_ref,
                       loss_ref,                                # (1, 1) f32 out
                       img_acc, spot_acc,                       # (B, P) f32 scratch
                       *, inv_temp):
    i = pl.program_id(0)
    tb = x_img_ref.shape[0]

    # Image path: adaptive_avg_pool2d((1,1)) + flatten fused with the
    # projection head.  bf16 DMA, f32 accumulation for the pool.
    pooled = jnp.mean(x_img_ref[...].astype(jnp.float32), axis=-1)   # (tb, C)
    img_emb = _projection_head_math(
        pooled, wi1_ref[...], bi1_ref[...], wi2_ref[...], bi2_ref[...],
        gi_ref[...], bti_ref[...])

    # Spot path: expression + centers_x + centers_y fused with the projection head.
    feat = expr_ref[...] + cx_ref[...] + cy_ref[...]                  # (tb, S)
    spot_emb = _projection_head_math(
        feat, ws1_ref[...], bs1_ref[...], ws2_ref[...], bs2_ref[...],
        gs_ref[...], bts_ref[...])

    # Keep embeddings resident in VMEM scratch across the grid.
    row0 = pl.multiple_of(i * tb, tb)
    img_acc[pl.ds(row0, tb), :] = img_emb
    spot_acc[pl.ds(row0, tb), :] = spot_emb

    # CLIP-style loss on the last grid step.
    @pl.when(i == pl.num_programs(0) - 1)
    def _():
        # inv_temp folded into the spot operand before the bf16 cast: one
        # (N, P) multiply; diag and logits use identical rounded operands.
        s_bf = (spot_acc[...] * inv_temp).astype(jnp.bfloat16)
        i_bf = img_acc[...].astype(jnp.bfloat16)
        # (N, N) logits on the MXU, bf16 inputs, f32 accumulation.
        logits = jax.lax.dot_general(
            s_bf, i_bf, (((1,), (1,)), ((), ())),
            preferred_element_type=jnp.float32)                        # (N, N)
        diag = jnp.sum(s_bf.astype(jnp.float32) * i_bf.astype(jnp.float32),
                       axis=-1, keepdims=True)                          # (N, 1)

        row_max = jnp.max(logits, axis=1, keepdims=True)                # (N, 1)
        row_lse = jnp.log(jnp.sum(jnp.exp(logits - row_max),
                                  axis=1, keepdims=True)) + row_max     # (N, 1)
        col_max = jnp.max(logits, axis=0, keepdims=True)                # (1, N)
        col_lse = jnp.log(jnp.sum(jnp.exp(logits - col_max),
                                  axis=0, keepdims=True)) + col_max     # (1, N)

        # With identity targets:
        #   spots_loss_i  = row_lse_i - diag_i ; images_loss_j = col_lse_j - diag_j
        #   mean((spots + images)/2) = 0.5*(mean(row_lse)+mean(col_lse)) - mean(diag)
        spots_mean = jnp.mean(row_lse, keepdims=True)                   # (1, 1)
        images_mean = jnp.mean(col_lse, keepdims=True)                  # (1, 1)
        diag_mean = jnp.mean(diag, keepdims=True)                       # (1, 1)
        loss_ref[...] = 0.5 * (spots_mean + images_mean) - diag_mean


def _pick_vmem_limit():
    try:
        cap = pltpu.get_tpu_info().vmem_capacity_bytes
    except Exception:
        cap = 64 * 1024 * 1024        # conservative default (safe on all gens)
    return min(int(cap * 0.75), 100 * 1024 * 1024)


def stco_fused_loss(x_img, expr, cx, cy, image_proj, spot_proj, temperature, *, tb=None):
    """x_img: (B, C, H*W) backbone feature map (bf16), pooled over the last axis."""
    B, C, HW = x_img.shape
    S = expr.shape[1]
    wi1, bi1, wi2, bi2, gi, bti = image_proj
    ws1, bs1, ws2, bs2, gs, bts = spot_proj
    P = wi1.shape[1]

    if tb is None:
        # Small B: one grid step (loss fused on the only step).  Larger B:
        # 256-row tiles (fills v6e/v7x's 256-wide MXU; bf16 x_img keeps the
        # double-buffered block within v7x's 64 MiB VMEM).
        # TODO(synk): cap tb at 128 when targeting v5e (4x128 MXU).
        tb = B if B <= 256 else 256
    if B % tb != 0 or (tb != B and tb % 8 != 0):
        tb = B                        # fall back to one full-batch block
    grid = (B // tb,)

    # bf16 weights: halve weight DMA/VMEM bytes, native MXU input dtype.
    wi1b, wi2b = wi1.astype(jnp.bfloat16), wi2.astype(jnp.bfloat16)
    ws1b, ws2b = ws1.astype(jnp.bfloat16), ws2.astype(jnp.bfloat16)

    # Grid-invariant operands: single-buffered (block index never changes),
    # reclaiming VMEM for the x_img tile (matters on v7x's 64 MiB budget).
    def invariant(a):
        return pl.BlockSpec(a.shape, lambda i: (0,) * a.ndim,
                            pipeline_mode=pl.Buffered(1))

    def batched(shape):
        return pl.BlockSpec(shape, lambda i: (i,) + (0,) * (len(shape) - 1))

    kernel = functools.partial(_stco_fused_kernel,
                               inv_temp=float(1.0 / temperature))

    # TODO(synk): for very large B (where the (B,B) logits no longer fit VMEM)
    # fall back to a two-kernel split: embedding kernel with a 'parallel' batch
    # axis and bf16 embedding outputs, plus a separate loss kernel.
    loss = pl.pallas_call(
        kernel,
        out_shape=jax.ShapeDtypeStruct((1, 1), jnp.float32),
        grid=grid,
        in_specs=[batched((tb, C, HW)),
                  batched((tb, S)), batched((tb, S)), batched((tb, S)),
                  invariant(wi1b), invariant(bi1), invariant(wi2b), invariant(bi2),
                  invariant(gi), invariant(bti),
                  invariant(ws1b), invariant(bs1), invariant(ws2b), invariant(bs2),
                  invariant(gs), invariant(bts)],
        out_specs=pl.BlockSpec((1, 1), lambda i: (0, 0)),
        scratch_shapes=[pltpu.VMEM((B, P), jnp.float32),     # image embeddings
                        pltpu.VMEM((B, P), jnp.float32)],    # spot embeddings
        compiler_params=pltpu.CompilerParams(
            # Scratch is carried across steps and read on the last step, so the
            # batch axis must be sequential.
            dimension_semantics=("arbitrary",),
            vmem_limit_bytes=_pick_vmem_limit()),
    )(x_img, expr, cx, cy,
      wi1b, bi1, wi2b, bi2, gi, bti,
      ws1b, bs1, ws2b, bs2, gs, bts)
    return loss[0, 0]


# ----------------------------------------------------------------------------
# STco forward (glue: layout/dtype prep, embedding lookups, parameter plumbing)
# ----------------------------------------------------------------------------
def stco_forward(params, batch, temperature, *, tb=None):
    x = batch['image']                                    # (B, C, H, W) NCHW feature map
    B, C, H, W = x.shape
    # No transpose pass: consume (B, C, H*W) directly and pool over the last
    # axis in-kernel.  bf16 halves the dominant HBM DMA and the VMEM block;
    # in a full model this cast fuses with the conv backbone's output.
    x_img = x.reshape(B, C, H * W)
    if x_img.dtype != jnp.bfloat16:
        x_img = x_img.astype(jnp.bfloat16)

    pos = batch['position']
    # TODO(synk): positional-embedding row gather stays in XLA (jnp.take); a
    # scalar-prefetch + pl.Element row-gather BlockSpec would remove the extra
    # (B, S) HBM round-trips when spot_embedding is thousands of genes wide.
    cx = jnp.take(params['x_embed'], pos[:, 0], axis=0)   # (B, spot_embedding)
    cy = jnp.take(params['y_embed'], pos[:, 1], axis=0)

    return stco_fused_loss(x_img, batch['expression'], cx, cy,
                           params['image_proj'], params['spot_proj'],
                           temperature, tb=tb)


# ----------------------------------------------------------------------------
# Pure-JAX reference (mirrors the kernel's bf16-matmul / f32-accumulate policy)
# ----------------------------------------------------------------------------
def _projection_head_ref(x, p):
    w1, b1, w2, b2, gamma, beta = p
    projected = jnp.dot(x.astype(jnp.bfloat16), w1.astype(jnp.bfloat16),
                        preferred_element_type=jnp.float32) + b1
    h = jax.nn.gelu(projected, approximate=True)
    h = jnp.dot(h.astype(jnp.bfloat16), w2.astype(jnp.bfloat16),
                preferred_element_type=jnp.float32) + b2
    h = h + projected
    mu = jnp.mean(h, axis=-1, keepdims=True)
    var = jnp.mean(jnp.square(h - mu), axis=-1, keepdims=True)
    h = (h - mu) * jax.lax.rsqrt(var + 1e-5)
    return h * gamma + beta


def stco_reference(params, batch, temperature):
    x = batch['image']
    B, C, H, W = x.shape
    pooled = jnp.mean(
        x.reshape(B, C, H * W).astype(jnp.bfloat16).astype(jnp.float32), axis=-1)
    img_emb = _projection_head_ref(pooled, params['image_proj'])
    cx = jnp.take(params['x_embed'], batch['position'][:, 0], axis=0)
    cy = jnp.take(params['y_embed'], batch['position'][:, 1], axis=0)
    feat = batch['expression'] + cx + cy
    spot_emb = _projection_head_ref(feat, params['spot_proj'])

    inv_temp = 1.0 / temperature
    s_bf = (spot_emb * inv_temp).astype(jnp.bfloat16).astype(jnp.float32)
    i_bf = img_emb.astype(jnp.bfloat16).astype(jnp.float32)
    logits = s_bf @ i_bf.T
    targets = jnp.eye(B, dtype=jnp.float32)
    spots_loss = -jnp.sum(targets * jax.nn.log_softmax(logits, axis=1), axis=1)
    images_loss = -jnp.sum(targets * jax.nn.log_softmax(logits, axis=0), axis=0)
    return jnp.mean((spots_loss + images_loss) / 2.0)


def init_params(key, max_x, max_y, image_embedding, spot_embedding, projection_dim):
    ks = jax.random.split(key, 4)

    def proj_params(k, d_in, p):
        k1, k2 = jax.random.split(k)
        w1 = jax.random.normal(k1, (d_in, p), jnp.float32) * (1.0 / jnp.sqrt(d_in))
        b1 = jnp.zeros((1, p), jnp.float32)
        w2 = jax.random.normal(k2, (p, p), jnp.float32) * (1.0 / jnp.sqrt(p))
        b2 = jnp.zeros((1, p), jnp.float32)
        gamma = jnp.ones((1, p), jnp.float32)
        beta = jnp.zeros((1, p), jnp.float32)
        return (w1, b1, w2, b2, gamma, beta)

    return {
        'x_embed': 0.1 * jax.random.normal(ks[0], (max_x, spot_embedding), jnp.float32),
        'y_embed': 0.1 * jax.random.normal(ks[1], (max_y, spot_embedding), jnp.float32),
        'image_proj': proj_params(ks[2], image_embedding, projection_dim),
        'spot_proj': proj_params(ks[3], spot_embedding, projection_dim),
    }


if __name__ == "__main__":
    key = jax.random.PRNGKey(0)
    B = 16                     # batch of spot/image pairs
    image_embedding = 128      # DenseNet121 would give 1024; kept small, lane-dense
    spot_embedding = 128
    projection_dim = 128       # multiple of 128 -> lane-dense MXU/store shapes
    H = W = 8                  # spatial size of the backbone feature map
    max_x = max_y = 32
    temperature = 1.0

    kp, ki, ke, kpos = jax.random.split(key, 4)
    params = init_params(kp, max_x, max_y, image_embedding, spot_embedding, projection_dim)
    batch = {
        'image': jax.random.normal(ki, (B, image_embedding, H, W), jnp.float32),  # NCHW
        'expression': jax.random.normal(ke, (B, spot_embedding), jnp.float32),
        'position': jax.random.randint(kpos, (B, 2), 0, max_x, dtype=jnp.int32),
    }

    loss = stco_forward(params, batch, temperature)
    jax.block_until_ready(loss)
    ref = stco_reference(params, batch, temperature)
    jax.block_until_ready(ref)

    err = abs(float(loss) - float(ref))
    if not (bool(jnp.isfinite(loss)) and err < 1e-2 * max(1.0, abs(float(ref)))):
        raise AssertionError(f"mismatch: pallas={float(loss)} ref={float(ref)} err={err}")
    print("KERNEL_OK")
</pallas_src>

<mosaic_0001>
module attributes {stable_mosaic.version = 11 : i64} {
  func.func @_stco_fused_kernel(%arg0: i32, %arg1: memref<16x128x64xbf16, #tpu.memory_space<vmem>>, %arg2: memref<16x128xf32, #tpu.memory_space<vmem>>, %arg3: memref<16x128xf32, #tpu.memory_space<vmem>>, %arg4: memref<16x128xf32, #tpu.memory_space<vmem>>, %arg5: memref<128x128xbf16, #tpu.memory_space<vmem>>, %arg6: memref<1x128xf32, #tpu.memory_space<vmem>>, %arg7: memref<128x128xbf16, #tpu.memory_space<vmem>>, %arg8: memref<1x128xf32, #tpu.memory_space<vmem>>, %arg9: memref<1x128xf32, #tpu.memory_space<vmem>>, %arg10: memref<1x128xf32, #tpu.memory_space<vmem>>, %arg11: memref<128x128xbf16, #tpu.memory_space<vmem>>, %arg12: memref<1x128xf32, #tpu.memory_space<vmem>>, %arg13: memref<128x128xbf16, #tpu.memory_space<vmem>>, %arg14: memref<1x128xf32, #tpu.memory_space<vmem>>, %arg15: memref<1x128xf32, #tpu.memory_space<vmem>>, %arg16: memref<1x128xf32, #tpu.memory_space<vmem>>, %arg17: memref<1x1xf32, #tpu.memory_space<vmem>>, %arg18: memref<16x128xf32, #tpu.memory_space<vmem>>, %arg19: memref<16x128xf32, #tpu.memory_space<vmem>>) attributes {dimension_semantics = [#tpu.dimension_semantics<arbitrary>], iteration_bounds = array<i64: 1>, scalar_prefetch = 0 : i64, scratch_operands = 2 : i64, tpu.core_type = #tpu.core_type<tc>, window_params = [{transform_indices = @transform_0, window_bounds = array<i64: 16, 128, 64>}, {transform_indices = @transform_1, window_bounds = array<i64: 16, 128>}, {transform_indices = @transform_2, window_bounds = array<i64: 16, 128>}, {transform_indices = @transform_3, window_bounds = array<i64: 16, 128>}, {pipeline_mode = #tpu.pipeline_mode<synchronous>, transform_indices = @transform_4, window_bounds = array<i64: 128, 128>}, {pipeline_mode = #tpu.pipeline_mode<synchronous>, transform_indices = @transform_5, window_bounds = array<i64: 1, 128>}, {pipeline_mode = #tpu.pipeline_mode<synchronous>, transform_indices = @transform_6, window_bounds = array<i64: 128, 128>}, {pipeline_mode = #tpu.pipeline_mode<synchronous>, transform_indices = @transform_7, window_bounds = array<i64: 1, 128>}, {pipeline_mode = #tpu.pipeline_mode<synchronous>, transform_indices = @transform_8, window_bounds = array<i64: 1, 128>}, {pipeline_mode = #tpu.pipeline_mode<synchronous>, transform_indices = @transform_9, window_bounds = array<i64: 1, 128>}, {pipeline_mode = #tpu.pipeline_mode<synchronous>, transform_indices = @transform_10, window_bounds = array<i64: 128, 128>}, {pipeline_mode = #tpu.pipeline_mode<synchronous>, transform_indices = @transform_11, window_bounds = array<i64: 1, 128>}, {pipeline_mode = #tpu.pipeline_mode<synchronous>, transform_indices = @transform_12, window_bounds = array<i64: 128, 128>}, {pipeline_mode = #tpu.pipeline_mode<synchronous>, transform_indices = @transform_13, window_bounds = array<i64: 1, 128>}, {pipeline_mode = #tpu.pipeline_mode<synchronous>, transform_indices = @transform_14, window_bounds = array<i64: 1, 128>}, {pipeline_mode = #tpu.pipeline_mode<synchronous>, transform_indices = @transform_15, window_bounds = array<i64: 1, 128>}, {pipeline_mode = #tpu.pipeline_mode<synchronous>, transform_indices = @transform_16, window_bounds = array<i64: 1, 1>}]} {
    %c0 = arith.constant 0 : index
    %c0_0 = arith.constant 0 : index
    %c0_1 = arith.constant 0 : index
    %0 = vector.load %arg1[%c0, %c0_0, %c0_1] : memref<16x128x64xbf16, #tpu.memory_space<vmem>>, vector<16x128x64xbf16>
    %1 = arith.extf %0 : vector<16x128x64xbf16> to vector<16x128x64xf32>
    %cst = arith.constant dense<0.000000e+00> : vector<16x128xf32>
    %2 = vector.multi_reduction <add>, %1, %cst [2] : vector<16x128x64xf32> to vector<16x128xf32>
    %cst_2 = arith.constant 6.400000e+01 : f32
    %3 = vector.broadcast %cst_2 : f32 to vector<16x128xf32>
    %4 = arith.divf %2, %3 : vector<16x128xf32>
    %c0_3 = arith.constant 0 : index
    %c0_4 = arith.constant 0 : index
    %5 = vector.load %arg5[%c0_3, %c0_4] : memref<128x128xbf16, #tpu.memory_space<vmem>>, vector<128x128xbf16>
    %c0_5 = arith.constant 0 : index
    %c0_6 = arith.constant 0 : index
    %6 = vector.load %arg6[%c0_5, %c0_6] : memref<1x128xf32, #tpu.memory_space<vmem>>, vector<1x128xf32>
    %c0_7 = arith.constant 0 : index
    %c0_8 = arith.constant 0 : index
    %7 = vector.load %arg7[%c0_7, %c0_8] : memref<128x128xbf16, #tpu.memory_space<vmem>>, vector<128x128xbf16>
    %c0_9 = arith.constant 0 : index
    %c0_10 = arith.constant 0 : index
    %8 = vector.load %arg8[%c0_9, %c0_10] : memref<1x128xf32, #tpu.memory_space<vmem>>, vector<1x128xf32>
    %c0_11 = arith.constant 0 : index
    %c0_12 = arith.constant 0 : index
    %9 = vector.load %arg9[%c0_11, %c0_12] : memref<1x128xf32, #tpu.memory_space<vmem>>, vector<1x128xf32>
    %c0_13 = arith.constant 0 : index
    %c0_14 = arith.constant 0 : index
    %10 = vector.load %arg10[%c0_13, %c0_14] : memref<1x128xf32, #tpu.memory_space<vmem>>, vector<1x128xf32>
    %11 = arith.truncf %4 : vector<16x128xf32> to vector<16x128xbf16>
    %cst_15 = arith.constant dense<0.000000e+00> : vector<16x128xf32>
    %12 = tpu.matmul %11, %5, %cst_15 {dimension_numbers = #tpu.dot_dimension_numbers<[1], [0], [0], [1], [0, 0, 1, 1], [], []>} : vector<16x128xbf16>, vector<128x128xbf16>, vector<16x128xf32> -> vector<16x128xf32>
    %13 = vector.broadcast %6 : vector<1x128xf32> to vector<16x128xf32>
    %14 = arith.addf %12, %13 : vector<16x128xf32>
    %15 = arith.mulf %14, %14 : vector<16x128xf32>
    %16 = arith.mulf %14, %15 : vector<16x128xf32>
    %cst_16 = arith.constant 4.471500e-02 : f32
    %17 = vector.broadcast %cst_16 : f32 to vector<16x128xf32>
    %18 = arith.mulf %17, %16 : vector<16x128xf32>
    %19 = arith.addf %14, %18 : vector<16x128xf32>
    %cst_17 = arith.constant 0.797884583 : f32
    %20 = vector.broadcast %cst_17 : f32 to vector<16x128xf32>
    %21 = arith.mulf %20, %19 : vector<16x128xf32>
    %22 = math.tanh %21 : vector<16x128xf32>
    %cst_18 = arith.constant 1.000000e+00 : f32
    %23 = vector.broadcast %cst_18 : f32 to vector<16x128xf32>
    %24 = arith.addf %23, %22 : vector<16x128xf32>
    %cst_19 = arith.constant 5.000000e-01 : f32
    %25 = vector.broadcast %cst_19 : f32 to vector<16x128xf32>
    %26 = arith.mulf %25, %24 : vector<16x128xf32>
    %27 = arith.mulf %14, %26 : vector<16x128xf32>
    %28 = arith.truncf %27 : vector<16x128xf32> to vector<16x128xbf16>
    %cst_20 = arith.constant dense<0.000000e+00> : vector<16x128xf32>
    %29 = tpu.matmul %28, %7, %cst_20 {dimension_numbers = #tpu.dot_dimension_numbers<[1], [0], [0], [1], [0, 0, 1, 1], [], []>} : vector<16x128xbf16>, vector<128x128xbf16>, vector<16x128xf32> -> vector<16x128xf32>
    %30 = vector.broadcast %8 : vector<1x128xf32> to vector<16x128xf32>
    %31 = arith.addf %29, %30 : vector<16x128xf32>
    %32 = arith.addf %31, %14 : vector<16x128xf32>
    %cst_21 = arith.constant dense<0.000000e+00> : vector<16xf32>
    %33 = vector.multi_reduction <add>, %32, %cst_21 [1] : vector<16x128xf32> to vector<16xf32>
    %34 = vector.shape_cast %33 : vector<16xf32> to vector<16x1xf32>
    %cst_22 = arith.constant 1.280000e+02 : f32
    %35 = vector.broadcast %cst_22 : f32 to vector<16x1xf32>
    %36 = arith.divf %34, %35 : vector<16x1xf32>
    %37 = vector.broadcast %36 : vector<16x1xf32> to vector<16x128xf32>
    %38 = arith.subf %32, %37 : vector<16x128xf32>
    %39 = arith.mulf %38, %38 : vector<16x128xf32>
    %cst_23 = arith.constant dense<0.000000e+00> : vector<16xf32>
    %40 = vector.multi_reduction <add>, %39, %cst_23 [1] : vector<16x128xf32> to vector<16xf32>
    %41 = vector.shape_cast %40 : vector<16xf32> to vector<16x1xf32>
    %cst_24 = arith.constant 1.280000e+02 : f32
    %42 = vector.broadcast %cst_24 : f32 to vector<16x1xf32>
    %43 = arith.divf %41, %42 : vector<16x1xf32>
    %44 = vector.broadcast %36 : vector<16x1xf32> to vector<16x128xf32>
    %45 = arith.subf %32, %44 : vector<16x128xf32>
    %cst_25 = arith.constant 9.99999974E-6 : f32
    %46 = vector.broadcast %cst_25 : f32 to vector<16x1xf32>
    %47 = arith.addf %43, %46 : vector<16x1xf32>
    %48 = math.rsqrt %47 : vector<16x1xf32>
    %49 = vector.broadcast %48 : vector<16x1xf32> to vector<16x128xf32>
    %50 = arith.mulf %45, %49 : vector<16x128xf32>
    %51 = vector.broadcast %9 : vector<1x128xf32> to vector<16x128xf32>
    %52 = arith.mulf %50, %51 : vector<16x128xf32>
    %53 = vector.broadcast %10 : vector<1x128xf32> to vector<16x128xf32>
    %54 = arith.addf %52, %53 : vector<16x128xf32>
    %c0_26 = arith.constant 0 : index
    %c0_27 = arith.constant 0 : index
    %55 = vector.load %arg2[%c0_26, %c0_27] : memref<16x128xf32, #tpu.memory_space<vmem>>, vector<16x128xf32>
    %c0_28 = arith.constant 0 : index
    %c0_29 = arith.constant 0 : index
    %56 = vector.load %arg3[%c0_28, %c0_29] : memref<16x128xf32, #tpu.memory_space<vmem>>, vector<16x128xf32>
    %57 = arith.addf %55, %56 : vector<16x128xf32>
    %c0_30 = arith.constant 0 : index
    %c0_31 = arith.constant 0 : index
    %58 = vector.load %arg4[%c0_30, %c0_31] : memref<16x128xf32, #tpu.memory_space<vmem>>, vector<16x128xf32>
    %59 = arith.addf %57, %58 : vector<16x128xf32>
    %c0_32 = arith.constant 0 : index
    %c0_33 = arith.constant 0 : index
    %60 = vector.load %arg11[%c0_32, %c0_33] : memref<128x128xbf16, #tpu.memory_space<vmem>>, vector<128x128xbf16>
    %c0_34 = arith.constant 0 : index
    %c0_35 = arith.constant 0 : index
    %61 = vector.load %arg12[%c0_34, %c0_35] : memref<1x128xf32, #tpu.memory_space<vmem>>, vector<1x128xf32>
    %c0_36 = arith.constant 0 : index
    %c0_37 = arith.constant 0 : index
    %62 = vector.load %arg13[%c0_36, %c0_37] : memref<128x128xbf16, #tpu.memory_space<vmem>>, vector<128x128xbf16>
    %c0_38 = arith.constant 0 : index
    %c0_39 = arith.constant 0 : index
    %63 = vector.load %arg14[%c0_38, %c0_39] : memref<1x128xf32, #tpu.memory_space<vmem>>, vector<1x128xf32>
    %c0_40 = arith.constant 0 : index
    %c0_41 = arith.constant 0 : index
    %64 = vector.load %arg15[%c0_40, %c0_41] : memref<1x128xf32, #tpu.memory_space<vmem>>, vector<1x128xf32>
    %c0_42 = arith.constant 0 : index
    %c0_43 = arith.constant 0 : index
    %65 = vector.load %arg16[%c0_42, %c0_43] : memref<1x128xf32, #tpu.memory_space<vmem>>, vector<1x128xf32>
    %66 = arith.truncf %59 : vector<16x128xf32> to vector<16x128xbf16>
    %cst_44 = arith.constant dense<0.000000e+00> : vector<16x128xf32>
    %67 = tpu.matmul %66, %60, %cst_44 {dimension_numbers = #tpu.dot_dimension_numbers<[1], [0], [0], [1], [0, 0, 1, 1], [], []>} : vector<16x128xbf16>, vector<128x128xbf16>, vector<16x128xf32> -> vector<16x128xf32>
    %68 = vector.broadcast %61 : vector<1x128xf32> to vector<16x128xf32>
    %69 = arith.addf %67, %68 : vector<16x128xf32>
    %70 = arith.mulf %69, %69 : vector<16x128xf32>
    %71 = arith.mulf %69, %70 : vector<16x128xf32>
    %cst_45 = arith.constant 4.471500e-02 : f32
    %72 = vector.broadcast %cst_45 : f32 to vector<16x128xf32>
    %73 = arith.mulf %72, %71 : vector<16x128xf32>
    %74 = arith.addf %69, %73 : vector<16x128xf32>
    %cst_46 = arith.constant 0.797884583 : f32
    %75 = vector.broadcast %cst_46 : f32 to vector<16x128xf32>
    %76 = arith.mulf %75, %74 : vector<16x128xf32>
    %77 = math.tanh %76 : vector<16x128xf32>
    %cst_47 = arith.constant 1.000000e+00 : f32
    %78 = vector.broadcast %cst_47 : f32 to vector<16x128xf32>
    %79 = arith.addf %78, %77 : vector<16x128xf32>
    %cst_48 = arith.constant 5.000000e-01 : f32
    %80 = vector.broadcast %cst_48 : f32 to vector<16x128xf32>
    %81 = arith.mulf %80, %79 : vector<16x128xf32>
    %82 = arith.mulf %69, %81 : vector<16x128xf32>
    %83 = arith.truncf %82 : vector<16x128xf32> to vector<16x128xbf16>
    %cst_49 = arith.constant dense<0.000000e+00> : vector<16x128xf32>
    %84 = tpu.matmul %83, %62, %cst_49 {dimension_numbers = #tpu.dot_dimension_numbers<[1], [0], [0], [1], [0, 0, 1, 1], [], []>} : vector<16x128xbf16>, vector<128x128xbf16>, vector<16x128xf32> -> vector<16x128xf32>
    %85 = vector.broadcast %63 : vector<1x128xf32> to vector<16x128xf32>
    %86 = arith.addf %84, %85 : vector<16x128xf32>
    %87 = arith.addf %86, %69 : vector<16x128xf32>
    %cst_50 = arith.constant dense<0.000000e+00> : vector<16xf32>
    %88 = vector.multi_reduction <add>, %87, %cst_50 [1] : vector<16x128xf32> to vector<16xf32>
    %89 = vector.shape_cast %88 : vector<16xf32> to vector<16x1xf32>
    %cst_51 = arith.constant 1.280000e+02 : f32
    %90 = vector.broadcast %cst_51 : f32 to vector<16x1xf32>
    %91 = arith.divf %89, %90 : vector<16x1xf32>
    %92 = vector.broadcast %91 : vector<16x1xf32> to vector<16x128xf32>
    %93 = arith.subf %87, %92 : vector<16x128xf32>
    %94 = arith.mulf %93, %93 : vector<16x128xf32>
    %cst_52 = arith.constant dense<0.000000e+00> : vector<16xf32>
    %95 = vector.multi_reduction <add>, %94, %cst_52 [1] : vector<16x128xf32> to vector<16xf32>
    %96 = vector.shape_cast %95 : vector<16xf32> to vector<16x1xf32>
    %cst_53 = arith.constant 1.280000e+02 : f32
    %97 = vector.broadcast %cst_53 : f32 to vector<16x1xf32>
    %98 = arith.divf %96, %97 : vector<16x1xf32>
    %99 = vector.broadcast %91 : vector<16x1xf32> to vector<16x128xf32>
    %100 = arith.subf %87, %99 : vector<16x128xf32>
    %cst_54 = arith.constant 9.99999974E-6 : f32
    %101 = vector.broadcast %cst_54 : f32 to vector<16x1xf32>
    %102 = arith.addf %98, %101 : vector<16x1xf32>
    %103 = math.rsqrt %102 : vector<16x1xf32>
    %104 = vector.broadcast %103 : vector<16x1xf32> to vector<16x128xf32>
    %105 = arith.mulf %100, %104 : vector<16x128xf32>
    %106 = vector.broadcast %64 : vector<1x128xf32> to vector<16x128xf32>
    %107 = arith.mulf %105, %106 : vector<16x128xf32>
    %108 = vector.broadcast %65 : vector<1x128xf32> to vector<16x128xf32>
    %109 = arith.addf %107, %108 : vector<16x128xf32>
    %c16_i32 = arith.constant 16 : i32
    %110 = arith.muli %arg0, %c16_i32 : i32
    %111 = tpu.assume_multiple %110, 16 : i32
    %112 = arith.index_cast %111 : i32 to index
    %c0_55 = arith.constant 0 : index
    %113 = vector.load %arg18[%112, %c0_55] : memref<16x128xf32, #tpu.memory_space<vmem>>, vector<16x128xf32>
    tpu.vector_store %arg18[%112, %c0_55], %54 {strides = array<i32>} : memref<16x128xf32, #tpu.memory_space<vmem>>, vector<16x128xf32>,
    %114 = arith.index_cast %111 : i32 to index
    %c0_56 = arith.constant 0 : index
    %115 = vector.load %arg19[%114, %c0_56] : memref<16x128xf32, #tpu.memory_space<vmem>>, vector<16x128xf32>
    tpu.vector_store %arg19[%114, %c0_56], %109 {strides = array<i32>} : memref<16x128xf32, #tpu.memory_space<vmem>>, vector<16x128xf32>,
    %c0_i32 = arith.constant 0 : i32
    %116 = arith.cmpi eq, %arg0, %c0_i32 : i32
    %117 = arith.extui %116 : i1 to i32
    %c0_i32_57 = arith.constant 0 : i32
    %118 = arith.cmpi ne, %117, %c0_i32_57 : i32
    scf.if %118 {
      %c0_58 = arith.constant 0 : index
      %c0_59 = arith.constant 0 : index
      %119 = vector.load %arg19[%c0_58, %c0_59] : memref<16x128xf32, #tpu.memory_space<vmem>>, vector<16x128xf32>
      %cst_60 = arith.constant 1.000000e+00 : f32
      %120 = vector.broadcast %cst_60 : f32 to vector<16x128xf32>
      %121 = arith.mulf %119, %120 : vector<16x128xf32>
      %122 = arith.truncf %121 : vector<16x128xf32> to vector<16x128xbf16>
      %c0_61 = arith.constant 0 : index
      %c0_62 = arith.constant 0 : index
      %123 = vector.load %arg18[%c0_61, %c0_62] : memref<16x128xf32, #tpu.memory_space<vmem>>, vector<16x128xf32>
      %124 = arith.truncf %123 : vector<16x128xf32> to vector<16x128xbf16>
      %cst_63 = arith.constant dense<0.000000e+00> : vector<16x16xf32>
      %125 = tpu.matmul %122, %124, %cst_63 {dimension_numbers = #tpu.dot_dimension_numbers<[1], [1], [0], [0], [0, 0, 1, 0], [], []>} : vector<16x128xbf16>, vector<16x128xbf16>, vector<16x16xf32> -> vector<16x16xf32>
      %126 = arith.extf %122 : vector<16x128xbf16> to vector<16x128xf32>
      %127 = arith.extf %124 : vector<16x128xbf16> to vector<16x128xf32>
      %128 = arith.mulf %126, %127 : vector<16x128xf32>
      %cst_64 = arith.constant dense<0.000000e+00> : vector<16xf32>
      %129 = vector.multi_reduction <add>, %128, %cst_64 [1] : vector<16x128xf32> to vector<16xf32>
      %130 = vector.shape_cast %129 : vector<16xf32> to vector<16x1xf32>
      %cst_65 = arith.constant dense<0xFF800000> : vector<16xf32>
      %131 = vector.multi_reduction <maximumf>, %125, %cst_65 [1] : vector<16x16xf32> to vector<16xf32>
      %132 = vector.shape_cast %131 : vector<16xf32> to vector<16x1xf32>
      %133 = vector.broadcast %132 : vector<16x1xf32> to vector<16x16xf32>
      %134 = arith.subf %125, %133 : vector<16x16xf32>
      %135 = math.exp %134 : vector<16x16xf32>
      %cst_66 = arith.constant dense<0.000000e+00> : vector<16xf32>
      %136 = vector.multi_reduction <add>, %135, %cst_66 [1] : vector<16x16xf32> to vector<16xf32>
      %137 = vector.shape_cast %136 : vector<16xf32> to vector<16x1xf32>
      %138 = math.log %137 : vector<16x1xf32>
      %139 = arith.addf %138, %132 : vector<16x1xf32>
      %cst_67 = arith.constant dense<0xFF800000> : vector<16xf32>
      %140 = vector.multi_reduction <maximumf>, %125, %cst_67 [0] : vector<16x16xf32> to vector<16xf32>
      %141 = vector.shape_cast %140 : vector<16xf32> to vector<1x16xf32>
      %142 = vector.broadcast %141 : vector<1x16xf32> to vector<16x16xf32>
      %143 = arith.subf %125, %142 : vector<16x16xf32>
      %144 = math.exp %143 : vector<16x16xf32>
      %cst_68 = arith.constant dense<0.000000e+00> : vector<16xf32>
      %145 = vector.multi_reduction <add>, %144, %cst_68 [0] : vector<16x16xf32> to vector<16xf32>
      %146 = vector.shape_cast %145 : vector<16xf32> to vector<1x16xf32>
      %147 = math.log %146 : vector<1x16xf32>
      %148 = arith.addf %147, %141 : vector<1x16xf32>
      %149 = vector.shape_cast %139 : vector<16x1xf32> to vector<1x16x1xf32>
      %cst_69 = arith.constant dense<0.000000e+00> : vector<1xf32>
      %150 = vector.multi_reduction <add>, %149, %cst_69 [1, 2] : vector<1x16x1xf32> to vector<1xf32>
      %151 = vector.shape_cast %150 : vector<1xf32> to vector<1x1x1xf32>
      %152 = vector.extract %151[0, 0, 0] : f32 from vector<1x1x1xf32>
      %153 = vector.broadcast %152 : f32 to vector<1x1xf32>
      %cst_70 = arith.constant 1.600000e+01 : f32
      %154 = vector.broadcast %cst_70 : f32 to vector<1x1xf32>
      %155 = arith.divf %153, %154 : vector<1x1xf32>
      %156 = vector.shape_cast %148 : vector<1x16xf32> to vector<1x1x16xf32>
      %cst_71 = arith.constant dense<0.000000e+00> : vector<1xf32>
      %157 = vector.multi_reduction <add>, %156, %cst_71 [1, 2] : vector<1x1x16xf32> to vector<1xf32>
      %158 = vector.shape_cast %157 : vector<1xf32> to vector<1x1x1xf32>
      %159 = vector.extract %158[0, 0, 0] : f32 from vector<1x1x1xf32>
      %160 = vector.broadcast %159 : f32 to vector<1x1xf32>
      %cst_72 = arith.constant 1.600000e+01 : f32
      %161 = vector.broadcast %cst_72 : f32 to vector<1x1xf32>
      %162 = arith.divf %160, %161 : vector<1x1xf32>
      %163 = vector.shape_cast %130 : vector<16x1xf32> to vector<1x16x1xf32>
      %cst_73 = arith.constant dense<0.000000e+00> : vector<1xf32>
      %164 = vector.multi_reduction <add>, %163, %cst_73 [1, 2] : vector<1x16x1xf32> to vector<1xf32>
      %165 = vector.shape_cast %164 : vector<1xf32> to vector<1x1x1xf32>
      %166 = vector.extract %165[0, 0, 0] : f32 from vector<1x1x1xf32>
      %167 = vector.broadcast %166 : f32 to vector<1x1xf32>
      %cst_74 = arith.constant 1.600000e+01 : f32
      %168 = vector.broadcast %cst_74 : f32 to vector<1x1xf32>
      %169 = arith.divf %167, %168 : vector<1x1xf32>
      %170 = arith.addf %155, %162 : vector<1x1xf32>
      %cst_75 = arith.constant 5.000000e-01 : f32
      %171 = vector.broadcast %cst_75 : f32 to vector<1x1xf32>
      %172 = arith.mulf %171, %170 : vector<1x1xf32>
      %173 = arith.subf %172, %169 : vector<1x1xf32>
      %c0_76 = arith.constant 0 : index
      %c0_77 = arith.constant 0 : index
      %174 = vector.load %arg17[%c0_76, %c0_77] : memref<1x1xf32, #tpu.memory_space<vmem>>, vector<1x1xf32>
      tpu.vector_store %arg17[%c0_76, %c0_77], %173 {strides = array<i32>} : memref<1x1xf32, #tpu.memory_space<vmem>>, vector<1x1xf32>,
    } else {
    }
    return
  }
  func.func @transform_0(%arg0: i32) -> (i32, i32, i32) {
    %c0_i32 = arith.constant 0 : i32
    %c0_i32_0 = arith.constant 0 : i32
    %c0_i32_1 = arith.constant 0 : i32
    return %arg0, %c0_i32, %c0_i32_0 : i32, i32, i32
  }
  func.func @transform_1(%arg0: i32) -> (i32, i32) {
    %c0_i32 = arith.constant 0 : i32
    %c0_i32_0 = arith.constant 0 : i32
    return %arg0, %c0_i32 : i32, i32
  }
  func.func @transform_2(%arg0: i32) -> (i32, i32) {
    %c0_i32 = arith.constant 0 : i32
    %c0_i32_0 = arith.constant 0 : i32
    return %arg0, %c0_i32 : i32, i32
  }
  func.func @transform_3(%arg0: i32) -> (i32, i32) {
    %c0_i32 = arith.constant 0 : i32
    %c0_i32_0 = arith.constant 0 : i32
    return %arg0, %c0_i32 : i32, i32
  }
  func.func @transform_4(%arg0: i32) -> (i32, i32) {
    %c0_i32 = arith.constant 0 : i32
    %c0_i32_0 = arith.constant 0 : i32
    %c0_i32_1 = arith.constant 0 : i32
    return %c0_i32, %c0_i32_0 : i32, i32
  }
  func.func @transform_5(%arg0: i32) -> (i32, i32) {
    %c0_i32 = arith.constant 0 : i32
    %c0_i32_0 = arith.constant 0 : i32
    %c0_i32_1 = arith.constant 0 : i32
    return %c0_i32, %c0_i32_0 : i32, i32
  }
  func.func @transform_6(%arg0: i32) -> (i32, i32) {
    %c0_i32 = arith.constant 0 : i32
    %c0_i32_0 = arith.constant 0 : i32
    %c0_i32_1 = arith.constant 0 : i32
    return %c0_i32, %c0_i32_0 : i32, i32
  }
  func.func @transform_7(%arg0: i32) -> (i32, i32) {
    %c0_i32 = arith.constant 0 : i32
    %c0_i32_0 = arith.constant 0 : i32
    %c0_i32_1 = arith.constant 0 : i32
    return %c0_i32, %c0_i32_0 : i32, i32
  }
  func.func @transform_8(%arg0: i32) -> (i32, i32) {
    %c0_i32 = arith.constant 0 : i32
    %c0_i32_0 = arith.constant 0 : i32
    %c0_i32_1 = arith.constant 0 : i32
    return %c0_i32, %c0_i32_0 : i32, i32
  }
  func.func @transform_9(%arg0: i32) -> (i32, i32) {
    %c0_i32 = arith.constant 0 : i32
    %c0_i32_0 = arith.constant 0 : i32
    %c0_i32_1 = arith.constant 0 : i32
    return %c0_i32, %c0_i32_0 : i32, i32
  }
  func.func @transform_10(%arg0: i32) -> (i32, i32) {
    %c0_i32 = arith.constant 0 : i32
    %c0_i32_0 = arith.constant 0 : i32
    %c0_i32_1 = arith.constant 0 : i32
    return %c0_i32, %c0_i32_0 : i32, i32
  }
  func.func @transform_11(%arg0: i32) -> (i32, i32) {
    %c0_i32 = arith.constant 0 : i32
    %c0_i32_0 = arith.constant 0 : i32
    %c0_i32_1 = arith.constant 0 : i32
    return %c0_i32, %c0_i32_0 : i32, i32
  }
  func.func @transform_12(%arg0: i32) -> (i32, i32) {
    %c0_i32 = arith.constant 0 : i32
    %c0_i32_0 = arith.constant 0 : i32
    %c0_i32_1 = arith.constant 0 : i32
    return %c0_i32, %c0_i32_0 : i32, i32
  }
  func.func @transform_13(%arg0: i32) -> (i32, i32) {
    %c0_i32 = arith.constant 0 : i32
    %c0_i32_0 = arith.constant 0 : i32
    %c0_i32_1 = arith.constant 0 : i32
    return %c0_i32, %c0_i32_0 : i32, i32
  }
  func.func @transform_14(%arg0: i32) -> (i32, i32) {
    %c0_i32 = arith.constant 0 : i32
    %c0_i32_0 = arith.constant 0 : i32
    %c0_i32_1 = arith.constant 0 : i32
    return %c0_i32, %c0_i32_0 : i32, i32
  }
  func.func @transform_15(%arg0: i32) -> (i32, i32) {
    %c0_i32 = arith.constant 0 : i32
    %c0_i32_0 = arith.constant 0 : i32
    %c0_i32_1 = arith.constant 0 : i32
    return %c0_i32, %c0_i32_0 : i32, i32
  }
  func.func @transform_16(%arg0: i32) -> (i32, i32) {
    %c0_i32 = arith.constant 0 : i32
    %c0_i32_0 = arith.constant 0 : i32
    %c0_i32_1 = arith.constant 0 : i32
    return %c0_i32, %c0_i32_0 : i32, i32
  }
}

</mosaic_0001>

<bundles_post_ra>
// kernel: tpu_custom_call.1
= control target key start
LH: loop header
LB: loop body
LE: loop exit
PB: predicated region body
PF: predicated region fallthrough
CT: control target
= control target key end

     0   :  { %s7003_s0 = inlined_call_operand.vmem [shape: bf16[16,128,64], index: 0, kind: input, shape index: {}]   ;;  %s7004_s1 = inlined_call_operand.vmem [shape: f32[16,128], index: 1, kind: input, shape index: {}]   ;;  %s7005_s2 = inlined_call_operand.vmem [shape: f32[16,128], index: 2, kind: input, shape index: {}]   ;;  %s7006_s3 = inlined_call_operand.vmem [shape: f32[16,128], index: 3, kind: input, shape index: {}]   ;;  %s7007_s4 = inlined_call_operand.vmem [shape: bf16[128,128], index: 4, kind: input, shape index: {}]   ;;  %s7008_s5 = inlined_call_operand.vmem [shape: f32[1,128], index: 5, kind: input, shape index: {}]   ;;  %s7009_s6 = inlined_call_operand.vmem [shape: bf16[128,128], index: 6, kind: input, shape index: {}]   ;;  %s7010_s7 = inlined_call_operand.vmem [shape: f32[1,128], index: 7, kind: input, shape index: {}]   ;;  %s7011_s8 = inlined_call_operand.vmem [shape: f32[1,128], index: 8, kind: input, shape index: {}]   ;;  %s7012_s9 = inlined_call_operand.vmem [shape: f32[1,128], index: 9, kind: input, shape index: {}]   ;;  %s7013_s10 = inlined_call_operand.vmem [shape: bf16[128,128], index: 10, kind: input, shape index: {}]   ;;  %s7014_s11 = inlined_call_operand.vmem [shape: f32[1,128], index: 11, kind: input, shape index: {}]   ;;  %s7015_s12 = inlined_call_operand.vmem [shape: bf16[128,128], index: 12, kind: input, shape index: {}]   ;;  %s7016_s13 = inlined_call_operand.vmem [shape: f32[1,128], index: 13, kind: input, shape index: {}]   ;;  %s7017_s14 = inlined_call_operand.vmem [shape: f32[1,128], index: 14, kind: input, shape index: {}]   ;;  %s7018_s15 = inlined_call_operand.vmem [shape: f32[1,128], index: 15, kind: input, shape index: {}]   ;;  %s7019_s16 = inlined_call_operand.hbm [shape: f32[1,1], index: 16, kind: output, shape index: {}]  }
   0x1   :  { %7021 = sst [smem:[#allocation7_spill]] %s7003_s0 }
   0x2   :  { %s7022_s23 = sld [smem:[#allocation7_spill]]  ;;  %vm567_vm0 = vcmask 523264  }
   0x8   :  { %v4745_v0 = vld [vmem:[%s7022_s23 + $0x40] sm:$0xff]   ;;  %v4738_v18 = vld [vmem:[%s7022_s23 + $0x8] sm:$0xff]  }
   0x9   :  { %v4227_v1 = vld [vmem:[%s7022_s23] sm:$0xff]   ;;  %v4260_v2 = vunpack.c.l.bf16 %v4745_v0  ;;  %v4261_v4 = vunpack.c.h.bf16 %v4745_v0  ;;  %v4233_v19 = vunpack.c.h.bf16 %v4738_v18  ;;  %v4232_v20 = vunpack.c.l.bf16 %v4738_v18  ;;  %v4746_v23 = vld [vmem:[%s7022_s23 + $0x48] sm:$0xff]  }
   0xa   :  { %v4228_v3 = vunpack.c.l.bf16 %v4227_v1  ;;  %v4229_v5 = vunpack.c.h.bf16 %v4227_v1  ;;  %v4801_v6 = vld [vmem:[%s7022_s23 + $0x200] sm:$0xff]   ;;  %v4265_v26 = vunpack.c.h.bf16 %v4746_v23  ;;  %v4264_v27 = vunpack.c.l.bf16 %v4746_v23  ;;  %v4802_v31 = vld [vmem:[%s7022_s23 + $0x208] sm:$0xff]  }
   0xb   :  { %v616_v7 = vsel %vm567_vm0, %v4260_v2, 0.0  ;;  %v619_v9 = vsel %vm567_vm0, %v4261_v4, 0.0  ;;  %v4485_v11 = vunpack.c.h.bf16 %v4801_v6  ;;  %v4484_v12 = vunpack.c.l.bf16 %v4801_v6  ;;  %v4809_v13 = vld [vmem:[%s7022_s23 + $0x240] sm:$0xff]   ;;  %v4810_v34 = vld [vmem:[%s7022_s23 + $0x248] sm:$0xff]   ;;  %v4739_v4 = vld [vmem:[%s7022_s23 + $0x10] sm:$0xff]  }
   0xc   :  { %v568_v8 = vsel %vm567_vm0, %v4228_v3, 0.0  ;;  %617 = vadd.xlane.f32.xlu1 %v616_v7  ;;  %v571_v10 = vsel %vm567_vm0, %v4229_v5, 0.0  ;;  %v4517_v16 = vunpack.c.h.bf16 %v4809_v13  ;;  %v4516_v17 = vunpack.c.l.bf16 %v4809_v13  ;;  %v4753_v28 = vld [vmem:[%s7022_s23 + $0x80] sm:$0xff]   ;;  %v4754_v44 = vld [vmem:[%s7022_s23 + $0x88] sm:$0xff]  }
   0xd   :  { %569 = vadd.xlane.f32.xlu0 %v568_v8  ;;  %v955_v14 = vsel %vm567_vm0, %v4485_v11, 0.0  ;;  %v952_v15 = vsel %vm567_vm0, %v4484_v12, 0.0  ;;  %v577_v24 = vsel %vm567_vm0, %v4233_v19, 0.0  ;;  %v574_v25 = vsel %vm567_vm0, %v4232_v20, 0.0  ;;  %v4817_v39 = vld [vmem:[%s7022_s23 + $0x280] sm:$0xff]   ;;  %v4818_v58 = vld [vmem:[%s7022_s23 + $0x288] sm:$0xff]  }
   0xe   :  { %v1003_v21 = vsel %vm567_vm0, %v4517_v16, 0.0  ;;  %v1000_v22 = vsel %vm567_vm0, %v4516_v17, 0.0  ;;  %v625_v29 = vsel %vm567_vm0, %v4265_v26, 0.0  ;;  %v622_v30 = vsel %vm567_vm0, %v4264_v27, 0.0  ;;  %v4761_v49 = vld [vmem:[%s7022_s23 + $0xc0] sm:$0xff]  }
   0xf   :  { %v4293_v32 = vunpack.c.h.bf16 %v4753_v28  ;;  %v4292_v33 = vunpack.c.l.bf16 %v4753_v28  ;;  %v4489_v37 = vunpack.c.h.bf16 %v4802_v31  ;;  %v4488_v38 = vunpack.c.l.bf16 %v4802_v31  ;;  %v4825_v63 = vld [vmem:[%s7022_s23 + $0x2c0] sm:$0xff]  }
  0x10   :  { %620 = vadd.xlane.f32.xlu1 %v619_v9  ;;  %v4521_v42 = vunpack.c.h.bf16 %v4810_v34  ;;  %v4520_v43 = vunpack.c.l.bf16 %v4810_v34  ;;  %v4549_v47 = vunpack.c.h.bf16 %v4817_v39  ;;  %v4548_v48 = vunpack.c.l.bf16 %v4817_v39 }
  0x11   :  { %572 = vadd.xlane.f32.xlu0 %v571_v10  ;;  %v667_v35 = vsel %vm567_vm0, %v4293_v32, 0.0  ;;  %v664_v36 = vsel %vm567_vm0, %v4292_v33, 0.0  ;;  %v961_v40 = vsel %vm567_vm0, %v4489_v37, 0.0  ;;  %v958_v41 = vsel %vm567_vm0, %v4488_v38, 0.0 }
  0x12   :  { %v1009_v45 = vsel %vm567_vm0, %v4521_v42, 0.0  ;;  %v1006_v46 = vsel %vm567_vm0, %v4520_v43, 0.0  ;;  %v1051_v50 = vsel %vm567_vm0, %v4549_v47, 0.0  ;;  %v1048_v51 = vsel %vm567_vm0, %v4548_v48, 0.0 }
  0x13   :  { %v4297_v52 = vunpack.c.h.bf16 %v4754_v44  ;;  %v4296_v53 = vunpack.c.l.bf16 %v4754_v44  ;;  %v4325_v56 = vunpack.c.h.bf16 %v4761_v49  ;;  %v4324_v57 = vunpack.c.l.bf16 %v4761_v49 }
  0x14   :  { %956 = vadd.xlane.f32.xlu1 %v955_v14  ;;  %v4553_v61 = vunpack.c.h.bf16 %v4818_v58  ;;  %v4552_v62 = vunpack.c.l.bf16 %v4818_v58  ;;  %v4581_v2 = vunpack.c.h.bf16 %v4825_v63  ;;  %v4580_v3 = vunpack.c.l.bf16 %v4825_v63 }
  0x15   :  { %953 = vadd.xlane.f32.xlu0 %v952_v15  ;;  %v673_v54 = vsel %vm567_vm0, %v4297_v52, 0.0  ;;  %v670_v55 = vsel %vm567_vm0, %v4296_v53, 0.0  ;;  %v715_v59 = vsel %vm567_vm0, %v4325_v56, 0.0  ;;  %v712_v60 = vsel %vm567_vm0, %v4324_v57, 0.0 }
  0x16   :  { %v1057_v0 = vsel %vm567_vm0, %v4553_v61, 0.0  ;;  %v1054_v1 = vsel %vm567_vm0, %v4552_v62, 0.0 }
  0x18   :  { %1004 = vadd.xlane.f32.xlu1 %v1003_v21 }
  0x19   :  { %1001 = vadd.xlane.f32.xlu0 %v1000_v22 }
  0x1c   :  { %578 = vadd.xlane.f32.xlu1 %v577_v24 }
  0x1d   :  { %575 = vadd.xlane.f32.xlu0 %v574_v25 }
  0x20   :  { %626 = vadd.xlane.f32.xlu1 %v625_v29 }
  0x21   :  { %623 = vadd.xlane.f32.xlu0 %v622_v30 }
  0x24   :  { %668 = vadd.xlane.f32.xlu1 %v667_v35 }
  0x25   :  { %665 = vadd.xlane.f32.xlu0 %v664_v36 }
  0x28   :  { %962 = vadd.xlane.f32.xlu1 %v961_v40 }
  0x29   :  { %959 = vadd.xlane.f32.xlu0 %v958_v41 }
  0x2c   :  { %1010 = vadd.xlane.f32.xlu1 %v1009_v45 }
  0x2d   :  { %1007 = vadd.xlane.f32.xlu0 %v1006_v46 }
  0x30   :  { %1052 = vadd.xlane.f32.xlu1 %v1051_v50 }
  0x31   :  { %1049 = vadd.xlane.f32.xlu0 %v1048_v51 }
  0x34   :  { %674 = vadd.xlane.f32.xlu1 %v673_v54 }
  0x35   :  { %671 = vadd.xlane.f32.xlu0 %v670_v55 }
  0x38   :  { %716 = vadd.xlane.f32.xlu1 %v715_v59 }
  0x39   :  { %713 = vadd.xlane.f32.xlu0 %v712_v60 }
  0x3a   :  { %21 = vsyncpa [#allocation5], 0  ;;  %v1099_v5 = vsel %vm567_vm0, %v4581_v2, 0.0  ;;  %v1096_v6 = vsel %vm567_vm0, %v4580_v3, 0.0  ;;  %v4237_v7 = vunpack.c.h.bf16 %v4739_v4  ;;  %v4236_v8 = vunpack.c.l.bf16 %v4739_v4  ;;  %v4747_v9 = vld [vmem:[%s7022_s23 + $0x50] sm:$0xff]   ;;  %v4762_v14 = vld [vmem:[%s7022_s23 + $0xc8] sm:$0xff]  }
  0x3b   :  { %v4269_v12 = vunpack.c.h.bf16 %v4747_v9  ;;  %v4268_v13 = vunpack.c.l.bf16 %v4747_v9  ;;  %v4329_v17 = vunpack.c.h.bf16 %v4762_v14  ;;  %v4328_v18 = vunpack.c.l.bf16 %v4762_v14  ;;  %v4769_v19 = vld [vmem:[%s7022_s23 + $0x100] sm:$0xff]   ;;  %v4803_v24 = vld [vmem:[%s7022_s23 + $0x210] sm:$0xff]   ;;  %v4826_v34 = vld [vmem:[%s7022_s23 + $0x2c8] sm:$0xff]   ;;  %s5086_s19 = smov [#allocation4]  }
  0x3c   :  { %1058 = vadd.xlane.f32.xlu1 %v1057_v0  ;;  %v583_v10 = vsel %vm567_vm0, %v4237_v7, 0.0  ;;  %v580_v11 = vsel %vm567_vm0, %v4236_v8, 0.0  ;;  %v4357_v22 = vunpack.c.h.bf16 %v4769_v19  ;;  %v4356_v23 = vunpack.c.l.bf16 %v4769_v19  ;;  %v4811_v29 = vld [vmem:[%s7022_s23 + $0x250] sm:$0xff]   ;;  %v4833_v39 = vld [vmem:[%s7022_s23 + $0x300] sm:$0xff]   ;;  %v4770_v49 = vld [vmem:[%s7022_s23 + $0x108] sm:$0xff]  }
  0x3d   :  { %1055 = vadd.xlane.f32.xlu0 %v1054_v1  ;;  %v631_v15 = vsel %vm567_vm0, %v4269_v12, 0.0  ;;  %v628_v16 = vsel %vm567_vm0, %v4268_v13, 0.0  ;;  %v721_v20 = vsel %vm567_vm0, %v4329_v17, 0.0  ;;  %v718_v21 = vsel %vm567_vm0, %v4328_v18, 0.0  ;;  %v4755_v44 = vld [vmem:[%s7022_s23 + $0x90] sm:$0xff]   ;;  %v4777_v54 = vld [vmem:[%s7022_s23 + $0x140] sm:$0xff]  }
  0x3e   :  { %v763_v25 = vsel %vm567_vm0, %v4357_v22, 0.0  ;;  %v760_v26 = vsel %vm567_vm0, %v4356_v23, 0.0  ;;  %v4493_v27 = vunpack.c.h.bf16 %v4803_v24  ;;  %v4492_v28 = vunpack.c.l.bf16 %v4803_v24  ;;  %v4819_v59 = vld [vmem:[%s7022_s23 + $0x290] sm:$0xff]   ;;  %v4834_v0 = vld [vmem:[%s7022_s23 + $0x308] sm:$0xff]  }
  0x3f   :  { %v4525_v32 = vunpack.c.h.bf16 %v4811_v29  ;;  %v4524_v33 = vunpack.c.l.bf16 %v4811_v29  ;;  %v4585_v37 = vunpack.c.h.bf16 %v4826_v34  ;;  %v4584_v38 = vunpack.c.l.bf16 %v4826_v34 }
  0x40   :  { %1100 = vadd.xlane.f32.xlu1 %v1099_v5  ;;  %v967_v30 = vsel %vm567_vm0, %v4493_v27, 0.0  ;;  %v964_v31 = vsel %vm567_vm0, %v4492_v28, 0.0  ;;  %v4613_v42 = vunpack.c.h.bf16 %v4833_v39  ;;  %v4612_v43 = vunpack.c.l.bf16 %v4833_v39  ;;  %v4841_v5 = vld [vmem:[%s7022_s23 + $0x340] sm:$0xff]  }
  0x41   :  { %1097 = vadd.xlane.f32.xlu0 %v1096_v6  ;;  %v1015_v35 = vsel %vm567_vm0, %v4525_v32, 0.0  ;;  %v1012_v36 = vsel %vm567_vm0, %v4524_v33, 0.0  ;;  %v1105_v40 = vsel %vm567_vm0, %v4585_v37, 0.0  ;;  %v1102_v41 = vsel %vm567_vm0, %v4584_v38, 0.0 }
  0x42   :  { %v1147_v45 = vsel %vm567_vm0, %v4613_v42, 0.0  ;;  %v1144_v46 = vsel %vm567_vm0, %v4612_v43, 0.0  ;;  %v4301_v47 = vunpack.c.h.bf16 %v4755_v44  ;;  %v4300_v48 = vunpack.c.l.bf16 %v4755_v44 }
  0x43   :  { %v4361_v52 = vunpack.c.h.bf16 %v4770_v49  ;;  %v4360_v53 = vunpack.c.l.bf16 %v4770_v49  ;;  %v4389_v57 = vunpack.c.h.bf16 %v4777_v54  ;;  %v4388_v58 = vunpack.c.l.bf16 %v4777_v54 }
  0x44   :  { %584 = vadd.xlane.f32.xlu1 %v583_v10  ;;  %v679_v50 = vsel %vm567_vm0, %v4301_v47, 0.0  ;;  %v676_v51 = vsel %vm567_vm0, %v4300_v48, 0.0  ;;  %v4557_v62 = vunpack.c.h.bf16 %v4819_v59  ;;  %v4556_v63 = vunpack.c.l.bf16 %v4819_v59  ;;  %v4740_v10 = vld [vmem:[%s7022_s23 + $0x18] sm:$0xff]  }
  0x45   :  { %581 = vadd.xlane.f32.xlu0 %v580_v11  ;;  %v769_v55 = vsel %vm567_vm0, %v4361_v52, 0.0  ;;  %v766_v56 = vsel %vm567_vm0, %v4360_v53, 0.0  ;;  %v811_v60 = vsel %vm567_vm0, %v4389_v57, 0.0  ;;  %v808_v61 = vsel %vm567_vm0, %v4388_v58, 0.0 }
  0x46   :  { %v1063_v1 = vsel %vm567_vm0, %v4557_v62, 0.0  ;;  %v1060_v2 = vsel %vm567_vm0, %v4556_v63, 0.0  ;;  %v4617_v3 = vunpack.c.h.bf16 %v4834_v0  ;;  %v4616_v4 = vunpack.c.l.bf16 %v4834_v0  ;;  %v4756_v62 = vld [vmem:[%s7022_s23 + $0x98] sm:$0xff]  }
  0x47   :  { %v4645_v8 = vunpack.c.h.bf16 %v4841_v5  ;;  %v4644_v9 = vunpack.c.l.bf16 %v4841_v5  ;;  %v4241_v13 = vunpack.c.h.bf16 %v4740_v10  ;;  %v4240_v14 = vunpack.c.l.bf16 %v4740_v10  ;;  %v4771_v10 = vld [vmem:[%s7022_s23 + $0x110] sm:$0xff]  }
  0x48   :  { %632 = vadd.xlane.f32.xlu1 %v631_v15  ;;  %v1153_v6 = vsel %vm567_vm0, %v4617_v3, 0.0  ;;  %v1150_v7 = vsel %vm567_vm0, %v4616_v4, 0.0  ;;  %v4748_v15 = vld [vmem:[%s7022_s23 + $0x58] sm:$0xff]   ;;  %v2147_v63 = vlaneseq  ;;  %v4305_v4 = vunpack.c.h.bf16 %v4756_v62 }
  0x49   :  { %629 = vadd.xlane.f32.xlu0 %v628_v16  ;;  %v1195_v11 = vsel %vm567_vm0, %v4645_v8, 0.0  ;;  %v1192_v12 = vsel %vm567_vm0, %v4644_v9, 0.0  ;;  %v589_v16 = vsel %vm567_vm0, %v4241_v13, 0.0  ;;  %v586_v17 = vsel %vm567_vm0, %v4240_v14, 0.0 }
  0x4a   :  { %v4273_v18 = vunpack.c.h.bf16 %v4748_v15  ;;  %v4272_v19 = vunpack.c.l.bf16 %v4748_v15  ;;  %v4304_v5 = vunpack.c.l.bf16 %v4756_v62  ;;  %vm2158_vm1 = vcmask 130112  }
  0x4b   :  { %vm2165_vm2 = vcmask 195712   ;;  %vm2172_vm3 = vcmask 261312   ;;  %vm2179_vm4 = vcmask 326912   ;;  %vm2186_vm5 = vcmask 392512  }
  0x4c   :  { %722 = vadd.xlane.f32.xlu1 %v721_v20  ;;  %v4763_v20 = vld [vmem:[%s7022_s23 + $0xd0] sm:$0xff]   ;;  %v634_v22 = vsel %vm567_vm0, %v4272_v19, 0.0  ;;  %v4364_v19 = vunpack.c.l.bf16 %v4771_v10  ;;  %vm2193_vm6 = vcmask 458112   ;;  %vm2200_vm7 = vcmask 523712  }
  0x4d   :  { %719 = vadd.xlane.f32.xlu0 %v718_v21  ;;  %v637_v21 = vsel %vm567_vm0, %v4273_v18, 0.0  ;;  %v4333_v23 = vunpack.c.h.bf16 %v4763_v20  ;;  %v4332_v24 = vunpack.c.l.bf16 %v4763_v20  ;;  %v682_v18 = vsel %vm567_vm0, %v4304_v5, 0.0  ;;  %v4786_v20 = vld [vmem:[%s7022_s23 + $0x188] sm:$0xff]  }
  0x4e   :  { %vm2207_vm8 = vcmask 589312   ;;  %vm2214_vm9 = vcmask 654912   ;;  %vm2221_vm10 = vcmask 720512   ;;  %vm2228_vm11 = vcmask 786112  }
  0x4f   :  { %v724_v27 = vsel %vm567_vm0, %v4332_v24, 0.0  ;;  %vm2235_vm12 = vcmask 851712   ;;  %vm2242_vm13 = vcmask 917312   ;;  %vm2249_vm14 = vcmask 982912  }
  0x50   :  { %764 = vadd.xlane.f32.xlu1 %v763_v25  ;;  %v4778_v25 = vld [vmem:[%s7022_s23 + $0x148] sm:$0xff]   ;;  %vm2256_vm15 = vcmask 1048512  }
  0x51   :  { %761 = vadd.xlane.f32.xlu0 %v760_v26  ;;  %v727_v26 = vsel %vm567_vm0, %v4333_v23, 0.0  ;;  %v4393_v28 = vunpack.c.h.bf16 %v4778_v25  ;;  %v4392_v29 = vunpack.c.l.bf16 %v4778_v25  ;;  %v5377_v23 = vshrl.u32 %v2147_v63, 7 }
  0x53   :  { %v814_v32 = vsel %vm567_vm0, %v4392_v29, 0.0  ;;  %v4425_v29 = vunpack.c.h.bf16 %v4786_v20 }
  0x54   :  { %968 = vadd.xlane.f32.xlu1 %v967_v30  ;;  %v4785_v30 = vld [vmem:[%s7022_s23 + $0x180] sm:$0xff]  }
  0x55   :  { %965 = vadd.xlane.f32.xlu0 %v964_v31  ;;  %v817_v31 = vsel %vm567_vm0, %v4393_v28, 0.0  ;;  %v4421_v33 = vunpack.c.h.bf16 %v4785_v30  ;;  %v4420_v34 = vunpack.c.l.bf16 %v4785_v30  ;;  %v4793_v30 = vld [vmem:[%s7022_s23 + $0x1c0] sm:$0xff]  }
  0x57   :  { %v856_v37 = vsel %vm567_vm0, %v4420_v34, 0.0  ;;  %v4424_v34 = vunpack.c.l.bf16 %v4786_v20 }
  0x58   :  { %1016 = vadd.xlane.f32.xlu1 %v1015_v35  ;;  %v4804_v35 = vld [vmem:[%s7022_s23 + $0x218] sm:$0xff]  }
  0x59   :  { %1013 = vadd.xlane.f32.xlu0 %v1012_v36  ;;  %v859_v36 = vsel %vm567_vm0, %v4421_v33, 0.0  ;;  %v4497_v38 = vunpack.c.h.bf16 %v4804_v35  ;;  %v4496_v39 = vunpack.c.l.bf16 %v4804_v35  ;;  %v772_v33 = vsel %vm567_vm0, %v4364_v19, 0.0 }
  0x5b   :  { %v970_v42 = vsel %vm567_vm0, %v4496_v39, 0.0 }
  0x5c   :  { %1106 = vadd.xlane.f32.xlu1 %v1105_v40  ;;  %v4812_v40 = vld [vmem:[%s7022_s23 + $0x258] sm:$0xff]  }
  0x5d   :  { %1103 = vadd.xlane.f32.xlu0 %v1102_v41  ;;  %v973_v41 = vsel %vm567_vm0, %v4497_v38, 0.0  ;;  %v4529_v43 = vunpack.c.h.bf16 %v4812_v40  ;;  %v4528_v44 = vunpack.c.l.bf16 %v4812_v40  ;;  %v4453_v40 = vunpack.c.h.bf16 %v4793_v30 }
  0x5f   :  { %v1018_v47 = vsel %vm567_vm0, %v4528_v44, 0.0 }
  0x60   :  { %1148 = vadd.xlane.f32.xlu1 %v1147_v45  ;;  %v4827_v45 = vld [vmem:[%s7022_s23 + $0x2d0] sm:$0xff]  }
  0x61   :  { %1145 = vadd.xlane.f32.xlu0 %v1144_v46  ;;  %v1021_v46 = vsel %vm567_vm0, %v4529_v43, 0.0  ;;  %v4589_v48 = vunpack.c.h.bf16 %v4827_v45  ;;  %v4588_v49 = vunpack.c.l.bf16 %v4827_v45  ;;  %v865_v45 = vsel %vm567_vm0, %v4425_v29, 0.0 }
  0x63   :  { %v1108_v52 = vsel %vm567_vm0, %v4588_v49, 0.0 }
  0x64   :  { %680 = vadd.xlane.f32.xlu1 %v679_v50  ;;  %v4842_v50 = vld [vmem:[%s7022_s23 + $0x348] sm:$0xff]  }
  0x65   :  { %677 = vadd.xlane.f32.xlu0 %v676_v51  ;;  %v1111_v51 = vsel %vm567_vm0, %v4589_v48, 0.0  ;;  %v4649_v53 = vunpack.c.h.bf16 %v4842_v50  ;;  %v4648_v54 = vunpack.c.l.bf16 %v4842_v50  ;;  %v862_v50 = vsel %vm567_vm0, %v4424_v34, 0.0 }
  0x67   :  { %v1201_v58 = vsel %vm567_vm0, %v4649_v53, 0.0  ;;  %v1198_v59 = vsel %vm567_vm0, %v4648_v54, 0.0  ;;  %v907_v54 = vsel %vm567_vm0, %v4453_v40, 0.0 }
  0x68   :  { %770 = vadd.xlane.f32.xlu1 %v769_v55  ;;  %v4849_v55 = vld [vmem:[%s7022_s23 + $0x380] sm:$0xff]  }
  0x69   :  { %767 = vadd.xlane.f32.xlu0 %v766_v56 }
  0x6c   :  { %812 = vadd.xlane.f32.xlu1 %v811_v60  ;;  %v4677_v60 = vunpack.c.h.bf16 %v4849_v55 }
  0x6d   :  { %809 = vadd.xlane.f32.xlu0 %v808_v61  ;;  %v4676_v61 = vunpack.c.l.bf16 %v4849_v55 }
  0x6f   :  { %v1240_v3 = vsel %vm567_vm0, %v4676_v61, 0.0 }
  0x70   :  { %1064 = vadd.xlane.f32.xlu1 %v1063_v1 }
  0x71   :  { %1061 = vadd.xlane.f32.xlu0 %v1060_v2  ;;  %v1243_v2 = vsel %vm567_vm0, %v4677_v60, 0.0 }
  0x74   :  { %1154 = vadd.xlane.f32.xlu1 %v1153_v6 }
  0x75   :  { %1151 = vadd.xlane.f32.xlu0 %v1150_v7 }
  0x78   :  { %1196 = vadd.xlane.f32.xlu1 %v1195_v11  ;;  %v5368_v11 = vand.u32 127, %v2147_v63 }
  0x79   :  { %1193 = vadd.xlane.f32.xlu0 %v1192_v12 }
  0x7a   :  { %v2153_v24 = vadd.s32 4294967288, %v5368_v11  ;;  %v2160_v35 = vadd.s32 4294967280, %v5368_v11 }
  0x7c   :  { %590 = vadd.xlane.f32.xlu1 %v589_v16  ;;  %v685_v16 = vsel %vm567_vm0, %v4305_v4, 0.0  ;;  %v5394_v38 = vsub.s32 %v2153_v24, %v5377_v23 }
  0x7d   :  { %587 = vadd.xlane.f32.xlu0 %v586_v17  ;;  %v4365_v17 = vunpack.c.h.bf16 %v4771_v10 }
  0x7f   :  { %v775_v28 = vsel %vm567_vm0, %v4365_v17, 0.0  ;;  %v4850_v17 = vld [vmem:[%s7022_s23 + $0x388] sm:$0xff]  }
  0x80   :  { %638 = vadd.xlane.f32.xlu1 %v637_v21  ;;  %v4681_v29 = vunpack.c.h.bf16 %v4850_v17 }
  0x81   :  { %635 = vadd.xlane.f32.xlu0 %v634_v22 }
  0x84   :  { %728 = vadd.xlane.f32.xlu1 %v727_v26 }
  0x85   :  { %725 = vadd.xlane.f32.xlu0 %v724_v27 }
  0x88   :  { %818 = vadd.xlane.f32.xlu1 %v817_v31 }
  0x89   :  { %815 = vadd.xlane.f32.xlu0 %v814_v32 }
  0x8c   :  { %860 = vadd.xlane.f32.xlu1 %v859_v36  ;;  %v2167_v36 = vadd.s32 4294967272, %v5368_v11 }
  0x8d   :  { %857 = vadd.xlane.f32.xlu0 %v856_v37  ;;  %v5391_v37 = vsub.s32 %v5368_v11, %v5377_v23 }
  0x90   :  { %974 = vadd.xlane.f32.xlu1 %v973_v41 }
  0x91   :  { %971 = vadd.xlane.f32.xlu0 %v970_v42 }
  0x94   :  { %1022 = vadd.xlane.f32.xlu1 %v1021_v46  ;;  %v4452_v46 = vunpack.c.l.bf16 %v4793_v30  ;;  %v4680_v30 = vunpack.c.l.bf16 %v4850_v17 }
  0x95   :  { %1019 = vadd.xlane.f32.xlu0 %v1018_v47  ;;  %v4820_v47 = vld [vmem:[%s7022_s23 + $0x298] sm:$0xff]  }
  0x96   :  { %v4561_v55 = vunpack.c.h.bf16 %v4820_v47  ;;  %v904_v63 = vsel %vm567_vm0, %v4452_v46, 0.0 }
  0x98   :  { %1112 = vadd.xlane.f32.xlu1 %v1111_v51  ;;  %v5404_v51 = vsub.s32 %v2160_v35, %v5377_v23 }
  0x99   :  { %1109 = vadd.xlane.f32.xlu0 %v1108_v52  ;;  %v618_v56 = vpop.xlane.xlu1 %617  ;;  %v5407_v52 = vsub.s32 %v2167_v36, %v5377_v23 }
  0x9a   :  { %v570_v57 = vpop.xlane.xlu0 %569  ;;  %v1353_v6 = vmul.f32 0.015625, %v618_v56  ;;  %v4560_v56 = vunpack.c.l.bf16 %v4820_v47 }
  0x9b   :  { %v1337_v7 = vmul.f32 0.015625, %v570_v57  ;;  %v4835_v57 = vld [vmem:[%s7022_s23 + $0x310] sm:$0xff]  }
  0x9c   :  { %1202 = vadd.xlane.f32.xlu1 %v1201_v58  ;;  %v4621_v5 = vunpack.c.h.bf16 %v4835_v57 }
  0x9d   :  { %1199 = vadd.xlane.f32.xlu0 %v1198_v59  ;;  %v621_v0 = vpop.xlane.xlu1 %620 }
  0x9e   :  { %v573_v1 = vpop.xlane.xlu0 %572  ;;  %v1354_v8 = vmul.f32 0.015625, %v621_v0 }
  0x9f   :  { %v1338_v9 = vmul.f32 0.015625, %v573_v1 }
  0xa0   :  { %v5370_v12 = vpack.c.bf16 %v1354_v8, %v1353_v6  ;;  %1244 = vadd.xlane.f32.xlu1 %v1243_v2  ;;  %v1069_v8 = vsel %vm567_vm0, %v4561_v55, 0.0 }
  0xa1   :  { %v1629_v13 = vpack.c.bf16 %v1338_v9, %v1337_v7  ;;  %1241 = vadd.xlane.f32.xlu0 %v1240_v3  ;;  %v957_v14 = vpop.xlane.xlu1 %956  ;;  %v4620_v9 = vunpack.c.l.bf16 %v4835_v57  ;;  %v1246_v57 = vsel %vm567_vm0, %v4680_v30, 0.0 }
  0xa2   :  { %v954_v15 = vpop.xlane.xlu0 %953  ;;  %v1466_v21 = vmul.f32 0.015625, %v957_v14  ;;  %v1907_v58 = vunpack.c.l.b16 %v5370_v12  ;;  %v1908_v0 = vunpack.c.h.b16 %v5370_v12 }
  0xa3   :  { %v1465_v22 = vmul.f32 0.015625, %v954_v15  ;;  %v1891_v41 = vunpack.c.l.b16 %v1629_v13  ;;  %v1892_v42 = vunpack.c.h.b16 %v1629_v13 }
  0xa4   :  { %686 = vadd.xlane.f32.xlu1 %v685_v16  ;;  %v2261_v10 = vrot.slane %v1907_v58, %v5391_v37  ;;  %v1066_v16 = vsel %vm567_vm0, %v4560_v56, 0.0  ;;  %v4741_v58 = vld [vmem:[%s7022_s23 + $0x20] sm:$0xff]  }
  0xa5   :  { %v5380_v25 = vpack.c.bf16 %v1466_v21, %v1465_v22  ;;  %683 = vadd.xlane.f32.xlu0 %v682_v18  ;;  %v1005_v26 = vpop.xlane.xlu1 %1004  ;;  %v2152_v59 = vrot.slane %v1891_v41, %v5391_v37  ;;  %v2157_v60 = vrot.slane %v1892_v42, %v5394_v38  ;;  %v2265_v18 = vrot.slane %v1908_v0, %v5394_v38 }
  0xa6   :  { %v1002_v27 = vpop.xlane.xlu0 %1001  ;;  %v1482_v31 = vmul.f32 0.015625, %v1005_v26 }
  0xa7   :  { %v1481_v32 = vmul.f32 0.015625, %v1002_v27  ;;  %v2159_v13 = vsel %vm2158_vm1, %v2157_v60, %v2152_v59  ;;  %v2266_v41 = vsel %vm2158_vm1, %v2265_v18, %v2261_v10  ;;  %v4749_v10 = vld [vmem:[%s7022_s23 + $0x60] sm:$0xff]  }
  0xa8   :  { %776 = vadd.xlane.f32.xlu1 %v775_v28  ;;  %v1159_v28 = vsel %vm567_vm0, %v4621_v5, 0.0 }
  0xa9   :  { %v5396_v39 = vpack.c.bf16 %v1482_v31, %v1481_v32  ;;  %773 = vadd.xlane.f32.xlu0 %v772_v33  ;;  %v579_v43 = vpop.xlane.xlu1 %578  ;;  %v4857_v31 = vld [vmem:[%s7022_s23 + $0x3c0] sm:$0xff]   ;;  %v2019_v32 = vunpack.c.l.b16 %v5380_v25  ;;  %v2020_v33 = vunpack.c.h.b16 %v5380_v25 }
  0xaa   :  { %v576_v44 = vpop.xlane.xlu0 %575  ;;  %v1340_v48 = vmul.f32 0.015625, %v579_v43  ;;  %v4709_v46 = vunpack.c.h.bf16 %v4857_v31 }
  0xab   :  { %v1339_v49 = vmul.f32 0.015625, %v576_v44  ;;  %v1156_v44 = vsel %vm567_vm0, %v4620_v9, 0.0  ;;  %v2036_v59 = vunpack.c.h.b16 %v5396_v39  ;;  %v4244_v9 = vunpack.c.l.bf16 %v4741_v58 }
  0xac   :  { %866 = vadd.xlane.f32.xlu1 %v865_v45  ;;  %v1291_v0 = vsel %vm567_vm0, %v4709_v46, 0.0 }
  0xad   :  { %v1630_v53 = vpack.c.bf16 %v1340_v48, %v1339_v49  ;;  %863 = vadd.xlane.f32.xlu0 %v862_v50  ;;  %v627_v61 = vpop.xlane.xlu1 %626  ;;  %v1249_v48 = vsel %vm567_vm0, %v4681_v29, 0.0  ;;  %v4708_v49 = vunpack.c.l.bf16 %v4857_v31  ;;  %v2814_v50 = vrot.slane %v2019_v32, %v5391_v37 }
  0xae   :  { %v624_v62 = vpop.xlane.xlu0 %623  ;;  %v1356_v3 = vmul.f32 0.015625, %v627_v61 }
  0xaf   :  { %v1893_v1 = vunpack.c.l.b16 %v1630_v53  ;;  %v1894_v2 = vunpack.c.h.b16 %v1630_v53  ;;  %v1355_v4 = vmul.f32 0.015625, %v624_v62  ;;  %v2818_v53 = vrot.slane %v2020_v33, %v5394_v38 }
  0xb0   :  { %908 = vadd.xlane.f32.xlu1 %v907_v54  ;;  %v2035_v54 = vunpack.c.l.b16 %v5396_v39 }
  0xb1   :  { %v2164_v6 = vrot.slane %v1893_v1, %v5404_v51  ;;  %v2171_v7 = vrot.slane %v1894_v2, %v5407_v52  ;;  %v1638_v12 = vpack.c.bf16 %v1356_v3, %v1355_v4  ;;  %905 = vadd.xlane.f32.xlu0 %v904_v63  ;;  %v669_v14 = vpop.xlane.xlu1 %668  ;;  %v1288_v3 = vsel %vm567_vm0, %v4708_v49, 0.0 }
  0xb2   :  { %v666_v15 = vpop.xlane.xlu0 %665  ;;  %v1370_v20 = vmul.f32 0.015625, %v669_v14  ;;  %v4245_v4 = vunpack.c.h.bf16 %v4741_v58  ;;  %v2819_v5 = vsel %vm2158_vm1, %v2818_v53, %v2814_v50  ;;  %v4779_v50 = vld [vmem:[%s7022_s23 + $0x150] sm:$0xff]  }
  0xb3   :  { %v2166_v19 = vsel %vm2165_vm2, %v2164_v6, %v2159_v13  ;;  %v1369_v21 = vmul.f32 0.015625, %v666_v15  ;;  %v1909_v24 = vunpack.c.l.b16 %v1638_v12  ;;  %v1910_v26 = vunpack.c.h.b16 %v1638_v12 }
  0xb4   :  { %v5430_v22 = vsel %vm2172_vm3, %v2171_v7, %v2166_v19  ;;  %1070 = vadd.xlane.f32.xlu1 %v1069_v8  ;;  %v2893_v6 = vrot.slane %v2035_v54, %v5391_v37  ;;  %v2897_v13 = vrot.slane %v2036_v59, %v5394_v38 }
  0xb5   :  { %v5432_v27 = vpack.c.bf16 %v1370_v20, %v1369_v21  ;;  %v2270_v34 = vrot.slane %v1909_v24, %v5404_v51  ;;  %v2275_v35 = vrot.slane %v1910_v26, %v5407_v52  ;;  %1067 = vadd.xlane.f32.xlu0 %v1066_v16  ;;  %v963_v36 = vpop.xlane.xlu1 %962  ;;  %v595_v20 = vsel %vm567_vm0, %v4245_v4, 0.0  ;;  %v4764_v26 = vld [vmem:[%s7022_s23 + $0xd8] sm:$0xff]  }
  0xb6   :  { %v960_v40 = vpop.xlane.xlu0 %959  ;;  %v1468_v42 = vmul.f32 0.015625, %v963_v36  ;;  %v4277_v21 = vunpack.c.h.bf16 %v4749_v10  ;;  %v4276_v24 = vunpack.c.l.bf16 %v4749_v10 }
  0xb7   :  { %v1467_v43 = vmul.f32 0.015625, %v960_v40  ;;  %v2271_v45 = vsel %vm2165_vm2, %v2270_v34, %v2266_v41  ;;  %v1924_v29 = vunpack.c.h.b16 %v5432_v27  ;;  %v2898_v34 = vsel %vm2158_vm1, %v2897_v13, %v2893_v6 }
  0xb8   :  { %v5446_v47 = vsel %vm2172_vm3, %v2275_v35, %v2271_v45  ;;  %1160 = vadd.xlane.f32.xlu1 %v1159_v28  ;;  %v1923_v28 = vunpack.c.l.b16 %v5432_v27  ;;  %v592_v40 = vsel %vm567_vm0, %v4244_v9, 0.0  ;;  %v640_v49 = vsel %vm567_vm0, %v4276_v24, 0.0 }
  0xb9   :  { %v1694_v25 = vpack.c.bf16 %v1468_v42, %v1467_v43  ;;  %1157 = vadd.xlane.f32.xlu0 %v1156_v44  ;;  %v1011_v55 = vpop.xlane.xlu1 %1010  ;;  %v4337_v42 = vunpack.c.h.bf16 %v4764_v26  ;;  %v2344_v45 = vrot.slane %v1924_v29, %v5394_v38  ;;  %v4805_v29 = vld [vmem:[%s7022_s23 + $0x220] sm:$0xff]  }
  0xba   :  { %v1008_v56 = vpop.xlane.xlu0 %1007  ;;  %v1484_v62 = vmul.f32 0.015625, %v1011_v55  ;;  %v2340_v44 = vrot.slane %v1923_v28, %v5391_v37 }
  0xbb   :  { %v2021_v60 = vunpack.c.l.b16 %v1694_v25  ;;  %v2022_v61 = vunpack.c.h.b16 %v1694_v25  ;;  %v1483_v63 = vmul.f32 0.015625, %v1008_v56  ;;  %v4336_v56 = vunpack.c.l.bf16 %v4764_v26 }
  0xbc   :  { %1250 = vadd.xlane.f32.xlu1 %v1249_v48  ;;  %v643_v48 = vsel %vm567_vm0, %v4277_v21, 0.0  ;;  %v733_v58 = vsel %vm567_vm0, %v4337_v42, 0.0  ;;  %v4501_v42 = vunpack.c.h.bf16 %v4805_v29 }
  0xbd   :  { %v2823_v1 = vrot.slane %v2021_v60, %v5404_v51  ;;  %v2828_v2 = vrot.slane %v2022_v61, %v5407_v52  ;;  %v1702_v7 = vpack.c.bf16 %v1484_v62, %v1483_v63  ;;  %1247 = vadd.xlane.f32.xlu0 %v1246_v57  ;;  %v1053_v39 = vpop.xlane.xlu1 %1052  ;;  %v4397_v61 = vunpack.c.h.bf16 %v4779_v50 }
  0xbe   :  { %v1050_v8 = vpop.xlane.xlu0 %1049  ;;  %v1498_v14 = vmul.f32 0.015625, %v1053_v39  ;;  %v4396_v62 = vunpack.c.l.bf16 %v4779_v50  ;;  %v2345_v63 = vsel %vm2158_vm1, %v2344_v45, %v2340_v44 }
  0xbf   :  { %v2824_v12 = vsel %vm2165_vm2, %v2823_v1, %v2819_v5  ;;  %v1497_v15 = vmul.f32 0.015625, %v1050_v8  ;;  %v2037_v17 = vunpack.c.l.b16 %v1702_v7  ;;  %v2038_v18 = vunpack.c.h.b16 %v1702_v7  ;;  %v4794_v5 = vld [vmem:[%s7022_s23 + $0x1c8] sm:$0xff]  }
  0xc0   :  { %v5469_v16 = vsel %vm2172_vm3, %v2828_v2, %v2824_v12  ;;  %1292 = vadd.xlane.f32.xlu1 %v1291_v0  ;;  %v730_v8 = vsel %vm567_vm0, %v4336_v56, 0.0  ;;  %v823_v13 = vsel %vm567_vm0, %v4397_v61, 0.0  ;;  %v4457_v12 = vunpack.c.h.bf16 %v4794_v5 }
  0xc1   :  { %v1709_v19 = vpack.c.bf16 %v1498_v14, %v1497_v15  ;;  %v2902_v30 = vrot.slane %v2037_v17, %v5404_v51  ;;  %v2907_v31 = vrot.slane %v2038_v18, %v5407_v52  ;;  %1289 = vadd.xlane.f32.xlu0 %v1288_v3  ;;  %v675_v32 = vpop.xlane.xlu1 %674 }
  0xc2   :  { %v672_v33 = vpop.xlane.xlu0 %671  ;;  %v1372_v35 = vmul.f32 0.015625, %v675_v32 }
  0xc3   :  { %v1371_v36 = vmul.f32 0.015625, %v672_v33  ;;  %v2903_v41 = vsel %vm2165_vm2, %v2902_v30, %v2898_v34  ;;  %v2051_v0 = vunpack.c.l.b16 %v1709_v19  ;;  %v2052_v1 = vunpack.c.h.b16 %v1709_v19 }
  0xc4   :  { %v5483_v43 = vsel %vm2172_vm3, %v2907_v31, %v2903_v41  ;;  %596 = vadd.xlane.f32.xlu1 %v595_v20  ;;  %v820_v19 = vsel %vm567_vm0, %v4396_v62, 0.0  ;;  %v4456_v20 = vunpack.c.l.bf16 %v4794_v5  ;;  %v913_v33 = vsel %vm567_vm0, %v4457_v12, 0.0 }
  0xc5   :  { %v1646_v27 = vpack.c.bf16 %v1372_v35, %v1371_v36  ;;  %593 = vadd.xlane.f32.xlu0 %v592_v40  ;;  %v717_v46 = vpop.xlane.xlu1 %716  ;;  %v2972_v14 = vrot.slane %v2051_v0, %v5391_v37  ;;  %v2976_v15 = vrot.slane %v2052_v1, %v5394_v38  ;;  %v2174_v36 = vadd.s32 4294967264, %v5368_v11 }
  0xc6   :  { %v714_v25 = vpop.xlane.xlu0 %713  ;;  %v1386_v55 = vmul.f32 0.015625, %v717_v46  ;;  %v2181_v40 = vadd.s32 4294967256, %v5368_v11  ;;  %v910_v46 = vsel %vm567_vm0, %v4456_v20, 0.0 }
  0xc7   :  { %v1925_v53 = vunpack.c.l.b16 %v1646_v27  ;;  %v1926_v54 = vunpack.c.h.b16 %v1646_v27  ;;  %v1385_v57 = vmul.f32 0.015625, %v714_v25  ;;  %v2977_v34 = vsel %vm2158_vm1, %v2976_v15, %v2972_v14  ;;  %v4813_v27 = vld [vmem:[%s7022_s23 + $0x260] sm:$0xff]  }
  0xc8   :  { %644 = vadd.xlane.f32.xlu1 %v643_v48  ;;  %v4500_v25 = vunpack.c.l.bf16 %v4805_v29  ;;  %v4533_v50 = vunpack.c.h.bf16 %v4813_v27  ;;  %v5536_v56 = vsub.s32 %v2181_v40, %v5377_v23 }
  0xc9   :  { %v2349_v59 = vrot.slane %v1925_v53, %v5404_v51  ;;  %v2354_v60 = vrot.slane %v1926_v54, %v5407_v52  ;;  %v5496_v2 = vpack.c.bf16 %v1386_v55, %v1385_v57  ;;  %641 = vadd.xlane.f32.xlu0 %v640_v49  ;;  %v1059_v3 = vpop.xlane.xlu1 %1058  ;;  %v4532_v53 = vunpack.c.l.bf16 %v4813_v27  ;;  %v4828_v54 = vld [vmem:[%s7022_s23 + $0x2d8] sm:$0xff]  }
  0xca   :  { %v1056_v4 = vpop.xlane.xlu0 %1055  ;;  %v1500_v7 = vmul.f32 0.015625, %v1059_v3  ;;  %v5533_v55 = vsub.s32 %v2174_v36, %v5377_v23  ;;  %v4593_v3 = vunpack.c.h.bf16 %v4828_v54  ;;  %v1027_v5 = vsel %vm567_vm0, %v4533_v50, 0.0 }
  0xcb   :  { %v2350_v6 = vsel %vm2165_vm2, %v2349_v59, %v2345_v63  ;;  %v1499_v39 = vmul.f32 0.015625, %v1056_v4  ;;  %v976_v63 = vsel %vm567_vm0, %v4500_v25, 0.0 }
  0xcc   :  { %v5504_v9 = vsel %vm2172_vm3, %v2354_v60, %v2350_v6  ;;  %734 = vadd.xlane.f32.xlu1 %v733_v58  ;;  %v979_v60 = vsel %vm567_vm0, %v4501_v42, 0.0  ;;  %v1024_v6 = vsel %vm567_vm0, %v4532_v53, 0.0 }
  0xcd   :  { %v1710_v10 = vpack.c.bf16 %v1500_v7, %v1499_v39  ;;  %731 = vadd.xlane.f32.xlu0 %v730_v8  ;;  %v1101_v17 = vpop.xlane.xlu1 %1100  ;;  %v4592_v7 = vunpack.c.l.bf16 %v4828_v54  ;;  %v4843_v39 = vld [vmem:[%s7022_s23 + $0x350] sm:$0xff]   ;;  %v1939_v8 = vunpack.c.l.b16 %v5496_v2 }
  0xce   :  { %v1098_v18 = vpop.xlane.xlu0 %1097  ;;  %v1514_v26 = vmul.f32 0.015625, %v1101_v17  ;;  %v4652_v36 = vunpack.c.l.bf16 %v4843_v39 }
  0xcf   :  { %v2053_v21 = vunpack.c.l.b16 %v1710_v10  ;;  %v2054_v24 = vunpack.c.h.b16 %v1710_v10  ;;  %v1513_v28 = vmul.f32 0.015625, %v1098_v18  ;;  %v1940_v10 = vunpack.c.h.b16 %v5496_v2 }
  0xd0   :  { %824 = vadd.xlane.f32.xlu1 %v823_v13 }
  0xd1   :  { %v2981_v30 = vrot.slane %v2053_v21, %v5404_v51  ;;  %v2986_v31 = vrot.slane %v2054_v24, %v5407_v52  ;;  %v5515_v32 = vpack.c.bf16 %v1514_v26, %v1513_v28  ;;  %821 = vadd.xlane.f32.xlu0 %v820_v19  ;;  %v585_v35 = vpop.xlane.xlu1 %584  ;;  %v1117_v24 = vsel %vm567_vm0, %v4593_v3, 0.0 }
  0xd2   :  { %v582_v41 = vpop.xlane.xlu0 %581  ;;  %v1342_v45 = vmul.f32 0.015625, %v585_v35  ;;  %v4653_v26 = vunpack.c.h.bf16 %v4843_v39 }
  0xd3   :  { %v2982_v44 = vsel %vm2165_vm2, %v2981_v30, %v2977_v34  ;;  %v1341_v49 = vmul.f32 0.015625, %v582_v41 }
  0xd4   :  { %v5527_v48 = vsel %vm2172_vm3, %v2986_v31, %v2982_v44  ;;  %914 = vadd.xlane.f32.xlu1 %v913_v33  ;;  %v2419_v31 = vrot.slane %v1939_v8, %v5391_v37  ;;  %v2423_v33 = vrot.slane %v1940_v10, %v5394_v38  ;;  %v4858_v44 = vld [vmem:[%s7022_s23 + $0x3c8] sm:$0xff]   ;;  %v1207_v50 = vsel %vm567_vm0, %v4653_v26, 0.0  ;;  %v4772_v10 = vld [vmem:[%s7022_s23 + $0x118] sm:$0xff]  }
  0xd5   :  { %v1631_v57 = vpack.c.bf16 %v1342_v45, %v1341_v49  ;;  %911 = vadd.xlane.f32.xlu0 %v910_v46  ;;  %v633_v58 = vpop.xlane.xlu1 %632  ;;  %v2068_v26 = vunpack.c.h.b16 %v5515_v32 }
  0xd6   :  { %v630_v59 = vpop.xlane.xlu0 %629  ;;  %v1358_v61 = vmul.f32 0.015625, %v633_v58  ;;  %v2424_v53 = vsel %vm2158_vm1, %v2423_v33, %v2419_v31  ;;  %v4368_v31 = vunpack.c.l.bf16 %v4772_v10  ;;  %v4787_v33 = vld [vmem:[%s7022_s23 + $0x190] sm:$0xff]  }
  0xd7   :  { %v1357_v62 = vmul.f32 0.015625, %v630_v59  ;;  %v1895_v0 = vunpack.c.l.b16 %v1631_v57  ;;  %v1896_v1 = vunpack.c.h.b16 %v1631_v57  ;;  %v4713_v59 = vunpack.c.h.bf16 %v4858_v44 }
  0xd8   :  { %980 = vadd.xlane.f32.xlu1 %v979_v60  ;;  %v4712_v60 = vunpack.c.l.bf16 %v4858_v44  ;;  %v4429_v44 = vunpack.c.h.bf16 %v4787_v33 }
  0xd9   :  { %v1639_v4 = vpack.c.bf16 %v1358_v61, %v1357_v62  ;;  %v2178_v13 = vrot.slane %v1895_v0, %v5533_v55  ;;  %v2185_v12 = vrot.slane %v1896_v1, %v5536_v56  ;;  %977 = vadd.xlane.f32.xlu0 %v976_v63  ;;  %v723_v14 = vpop.xlane.xlu1 %722  ;;  %v1204_v0 = vsel %vm567_vm0, %v4652_v36, 0.0 }
  0xda   :  { %v720_v15 = vpop.xlane.xlu0 %719  ;;  %v1388_v19 = vmul.f32 0.015625, %v723_v14  ;;  %v1294_v39 = vsel %vm567_vm0, %v4712_v60, 0.0  ;;  %v4821_v60 = vld [vmem:[%s7022_s23 + $0x2a0] sm:$0xff]  }
  0xdb   :  { %v1911_v17 = vunpack.c.l.b16 %v1639_v4  ;;  %v1912_v18 = vunpack.c.h.b16 %v1639_v4  ;;  %v1387_v20 = vmul.f32 0.015625, %v720_v15  ;;  %v2180_v21 = vsel %vm2179_vm4, %v2178_v13, %v5430_v22 }
  0xdc   :  { %v5553_v28 = vsel %vm2186_vm5, %v2185_v12, %v2180_v21  ;;  %1028 = vadd.xlane.f32.xlu1 %v1027_v5  ;;  %v1114_v22 = vsel %vm567_vm0, %v4592_v7, 0.0  ;;  %v1297_v7 = vsel %vm567_vm0, %v4713_v59, 0.0  ;;  %v4369_v21 = vunpack.c.h.bf16 %v4772_v10 }
  0xdd   :  { %v2280_v2 = vrot.slane %v1911_v17, %v5533_v55  ;;  %v2285_v29 = vrot.slane %v1912_v18, %v5536_v56  ;;  %v1654_v30 = vpack.c.bf16 %v1388_v19, %v1387_v20  ;;  %1025 = vadd.xlane.f32.xlu0 %v1024_v6  ;;  %v765_v34 = vpop.xlane.xlu1 %764 }
  0xde   :  { %v762_v35 = vpop.xlane.xlu0 %761  ;;  %v1402_v27 = vmul.f32 0.015625, %v765_v34 }
  0xdf   :  { %v2281_v40 = vsel %vm2179_vm4, %v2280_v2, %v5446_v47  ;;  %v1941_v41 = vunpack.c.l.b16 %v1654_v30  ;;  %v1942_v42 = vunpack.c.h.b16 %v1654_v30  ;;  %v1401_v46 = vmul.f32 0.015625, %v762_v35  ;;  %v4757_v47 = vld [vmem:[%s7022_s23 + $0xa0] sm:$0xff]  }
  0xe0   :  { %v5566_v45 = vsel %vm2186_vm5, %v2285_v29, %v2281_v40  ;;  %1118 = vadd.xlane.f32.xlu1 %v1117_v24  ;;  %v4309_v3 = vunpack.c.h.bf16 %v4757_v47  ;;  %v4308_v8 = vunpack.c.l.bf16 %v4757_v47  ;;  %v2067_v24 = vunpack.c.l.b16 %v5515_v32 }
  0xe1   :  { %v2428_v25 = vrot.slane %v1941_v41, %v5404_v51  ;;  %v2433_v49 = vrot.slane %v1942_v42, %v5407_v52  ;;  %v5575_v54 = vpack.c.bf16 %v1402_v27, %v1401_v46  ;;  %1115 = vadd.xlane.f32.xlu0 %v1114_v22  ;;  %v969_v57 = vpop.xlane.xlu1 %968  ;;  %v781_v27 = vsel %vm567_vm0, %v4369_v21, 0.0 }
  0xe2   :  { %v966_v58 = vpop.xlane.xlu0 %965  ;;  %v1470_v62 = vmul.f32 0.015625, %v969_v57  ;;  %v691_v17 = vsel %vm567_vm0, %v4309_v3, 0.0  ;;  %v688_v30 = vsel %vm567_vm0, %v4308_v8, 0.0  ;;  %v3051_v46 = vrot.slane %v2067_v24, %v5391_v37  ;;  %v4836_v8 = vld [vmem:[%s7022_s23 + $0x318] sm:$0xff]  }
  0xe3   :  { %v2429_v61 = vsel %vm2165_vm2, %v2428_v25, %v2424_v53  ;;  %v1469_v63 = vmul.f32 0.015625, %v966_v58  ;;  %v4428_v47 = vunpack.c.l.bf16 %v4787_v33  ;;  %v3055_v53 = vrot.slane %v2068_v26, %v5394_v38 }
  0xe4   :  { %v5580_v1 = vsel %vm2172_vm3, %v2433_v49, %v2429_v61  ;;  %1208 = vadd.xlane.f32.xlu1 %v1207_v50  ;;  %v778_v50 = vsel %vm567_vm0, %v4368_v31, 0.0  ;;  %v871_v3 = vsel %vm567_vm0, %v4429_v44, 0.0  ;;  %v1956_v31 = vunpack.c.h.b16 %v5575_v54 }
  0xe5   :  { %v1695_v4 = vpack.c.bf16 %v1470_v62, %v1469_v63  ;;  %1205 = vadd.xlane.f32.xlu0 %v1204_v0  ;;  %v1017_v5 = vpop.xlane.xlu1 %1016  ;;  %v3056_v10 = vsel %vm2158_vm1, %v3055_v53, %v3051_v46 }
  0xe6   :  { %v1014_v6 = vpop.xlane.xlu0 %1013  ;;  %v1486_v14 = vmul.f32 0.015625, %v1017_v5 }
  0xe7   :  { %v2023_v13 = vunpack.c.l.b16 %v1695_v4  ;;  %v2024_v12 = vunpack.c.h.b16 %v1695_v4  ;;  %v1485_v15 = vmul.f32 0.015625, %v1014_v6 }
  0xe8   :  { %1298 = vadd.xlane.f32.xlu1 %v1297_v7  ;;  %v4565_v7 = vunpack.c.h.bf16 %v4821_v60 }
  0xe9   :  { %v2833_v18 = vrot.slane %v2023_v13, %v5533_v55  ;;  %v2838_v19 = vrot.slane %v2024_v12, %v5536_v56  ;;  %v1703_v20 = vpack.c.bf16 %v1486_v14, %v1485_v15  ;;  %1295 = vadd.xlane.f32.xlu0 %v1294_v39  ;;  %v1107_v2 = vpop.xlane.xlu1 %1106  ;;  %v4564_v39 = vunpack.c.l.bf16 %v4821_v60 }
  0xea   :  { %v1104_v29 = vpop.xlane.xlu0 %1103  ;;  %v1516_v36 = vmul.f32 0.015625, %v1107_v2  ;;  %v868_v14 = vsel %vm567_vm0, %v4428_v47, 0.0  ;;  %v1075_v26 = vsel %vm567_vm0, %v4565_v7, 0.0  ;;  %v4750_v7 = vld [vmem:[%s7022_s23 + $0x68] sm:$0xff]  }
  0xeb   :  { %v2834_v34 = vsel %vm2179_vm4, %v2833_v18, %v5469_v16  ;;  %v2039_v35 = vunpack.c.l.b16 %v1703_v20  ;;  %v2040_v22 = vunpack.c.h.b16 %v1703_v20  ;;  %v1515_v32 = vmul.f32 0.015625, %v1104_v29 }
  0xec   :  { %v5599_v40 = vsel %vm2186_vm5, %v2838_v19, %v2834_v34  ;;  %692 = vadd.xlane.f32.xlu1 %v691_v17  ;;  %v4625_v19 = vunpack.c.h.bf16 %v4836_v8  ;;  %v1955_v20 = vunpack.c.l.b16 %v5575_v54  ;;  %v1072_v2 = vsel %vm567_vm0, %v4564_v39, 0.0 }
  0xed   :  { %v2912_v41 = vrot.slane %v2039_v35, %v5533_v55  ;;  %v2917_v42 = vrot.slane %v2040_v22, %v5536_v56  ;;  %v1718_v25 = vpack.c.bf16 %v1516_v36, %v1515_v32  ;;  %689 = vadd.xlane.f32.xlu0 %v688_v30  ;;  %v1149_v16 = vpop.xlane.xlu1 %1148  ;;  %v4624_v29 = vunpack.c.l.bf16 %v4836_v8  ;;  %v4851_v30 = vld [vmem:[%s7022_s23 + $0x390] sm:$0xff]  }
  0xee   :  { %v1146_v49 = vpop.xlane.xlu0 %1145  ;;  %v1530_v58 = vmul.f32 0.015625, %v1149_v16  ;;  %v4684_v16 = vunpack.c.l.bf16 %v4851_v30 }
  0xef   :  { %v2913_v57 = vsel %vm2179_vm4, %v2912_v41, %v5483_v43  ;;  %v1529_v59 = vmul.f32 0.015625, %v1146_v49  ;;  %v2069_v62 = vunpack.c.l.b16 %v1718_v25  ;;  %v2070_v63 = vunpack.c.h.b16 %v1718_v25 }
  0xf0   :  { %v5613_v61 = vsel %vm2186_vm5, %v2917_v42, %v2913_v57  ;;  %782 = vadd.xlane.f32.xlu1 %v781_v27  ;;  %v1165_v41 = vsel %vm567_vm0, %v4625_v19, 0.0  ;;  %v4685_v42 = vunpack.c.h.bf16 %v4851_v30  ;;  %v2498_v27 = vrot.slane %v1955_v20, %v5391_v37  ;;  %v4742_v57 = vld [vmem:[%s7022_s23 + $0x28] sm:$0xff]  }
  0xf1   :  { %v5615_v0 = vpack.c.bf16 %v1530_v58, %v1529_v59  ;;  %v3060_v4 = vrot.slane %v2069_v62, %v5404_v51  ;;  %v3065_v43 = vrot.slane %v2070_v63, %v5407_v52  ;;  %779 = vadd.xlane.f32.xlu0 %v778_v50  ;;  %v681_v5 = vpop.xlane.xlu1 %680  ;;  %v1162_v54 = vsel %vm567_vm0, %v4624_v29, 0.0  ;;  %v4765_v29 = vld [vmem:[%s7022_s23 + $0xe0] sm:$0xff]  }
  0xf2   :  { %v678_v6 = vpop.xlane.xlu0 %677  ;;  %v1374_v13 = vmul.f32 0.015625, %v681_v5  ;;  %v2502_v49 = vrot.slane %v1956_v31, %v5394_v38  ;;  %v1255_v63 = vsel %vm567_vm0, %v4685_v42, 0.0  ;;  %v4249_v5 = vunpack.c.h.bf16 %v4742_v57 }
  0xf3   :  { %v1373_v12 = vmul.f32 0.015625, %v678_v6  ;;  %v3061_v15 = vsel %vm2165_vm2, %v3060_v4, %v3056_v10  ;;  %v4248_v6 = vunpack.c.l.bf16 %v4742_v57  ;;  %v2083_v19 = vunpack.c.l.b16 %v5615_v0 }
  0xf4   :  { %v5627_v17 = vsel %vm2172_vm3, %v3065_v43, %v3061_v15  ;;  %872 = vadd.xlane.f32.xlu1 %v871_v3  ;;  %v2503_v39 = vsel %vm2158_vm1, %v2502_v49, %v2498_v27  ;;  %v2084_v30 = vunpack.c.h.b16 %v5615_v0 }
  0xf5   :  { %v1647_v18 = vpack.c.bf16 %v1374_v13, %v1373_v12  ;;  %869 = vadd.xlane.f32.xlu0 %v868_v14  ;;  %v771_v21 = vpop.xlane.xlu1 %770  ;;  %v1252_v13 = vsel %vm567_vm0, %v4684_v16, 0.0  ;;  %v3130_v42 = vrot.slane %v2083_v19, %v5391_v37 }
  0xf6   :  { %v768_v24 = vpop.xlane.xlu0 %767  ;;  %v1404_v35 = vmul.f32 0.015625, %v771_v21 }
  0xf7   :  { %v1927_v33 = vunpack.c.l.b16 %v1647_v18  ;;  %v1928_v34 = vunpack.c.h.b16 %v1647_v18  ;;  %v1403_v22 = vmul.f32 0.015625, %v768_v24  ;;  %v4281_v18 = vunpack.c.h.bf16 %v4750_v7 }
  0xf8   :  { %1076 = vadd.xlane.f32.xlu1 %v1075_v26  ;;  %v601_v24 = vsel %vm567_vm0, %v4249_v5, 0.0  ;;  %v598_v26 = vsel %vm567_vm0, %v4248_v6, 0.0 }
  0xf9   :  { %v2359_v36 = vrot.slane %v1927_v33, %v5533_v55  ;;  %v2364_v32 = vrot.slane %v1928_v34, %v5536_v56  ;;  %v1662_v44 = vpack.c.bf16 %v1404_v35, %v1403_v22  ;;  %1073 = vadd.xlane.f32.xlu0 %v1072_v2  ;;  %v813_v46 = vpop.xlane.xlu1 %812  ;;  %v4280_v2 = vunpack.c.l.bf16 %v4750_v7 }
  0xfa   :  { %v810_v25 = vpop.xlane.xlu0 %809  ;;  %v1418_v47 = vmul.f32 0.015625, %v813_v46 }
  0xfb   :  { %v2360_v50 = vsel %vm2179_vm4, %v2359_v36, %v5504_v9  ;;  %v1417_v53 = vmul.f32 0.015625, %v810_v25  ;;  %v1957_v59 = vunpack.c.l.b16 %v1662_v44  ;;  %v1958_v60 = vunpack.c.h.b16 %v1662_v44 }
  0xfc   :  { %v5648_v58 = vsel %vm2186_vm5, %v2364_v32, %v2360_v50  ;;  %1166 = vadd.xlane.f32.xlu1 %v1165_v41  ;;  %v649_v32 = vsel %vm567_vm0, %v4281_v18, 0.0  ;;  %v4341_v41 = vunpack.c.h.bf16 %v4765_v29  ;;  %v646_v0 = vsel %vm567_vm0, %v4280_v2, 0.0 }
  0xfd   :  { %v5650_v62 = vpack.c.bf16 %v1418_v47, %v1417_v53  ;;  %v2507_v3 = vrot.slane %v1957_v59, %v5404_v51  ;;  %v2512_v9 = vrot.slane %v1958_v60, %v5407_v52  ;;  %1163 = vadd.xlane.f32.xlu0 %v1162_v54  ;;  %v1065_v4 = vpop.xlane.xlu1 %1064  ;;  %v4340_v25 = vunpack.c.l.bf16 %v4765_v29  ;;  %v4780_v47 = vld [vmem:[%s7022_s23 + $0x158] sm:$0xff]  }
  0xfe   :  { %v1062_v43 = vpop.xlane.xlu0 %1061  ;;  %v1502_v8 = vmul.f32 0.015625, %v1065_v4  ;;  %v3134_v54 = vrot.slane %v2084_v30, %v5394_v38  ;;  %v4401_v6 = vunpack.c.h.bf16 %v4780_v47  ;;  %v4400_v7 = vunpack.c.l.bf16 %v4780_v47 }
  0xff   :  { %v1501_v10 = vmul.f32 0.015625, %v1062_v43  ;;  %v2508_v12 = vsel %vm2165_vm2, %v2507_v3, %v2503_v39  ;;  %v2195_v3 = vadd.s32 4294967240, %v5368_v11 }
 0x100   :  { %v5662_v14 = vsel %vm2172_vm3, %v2512_v9, %v2508_v12  ;;  %1256 = vadd.xlane.f32.xlu1 %v1255_v63  ;;  %v2188_v63 = vadd.s32 4294967248, %v5368_v11  ;;  %v3135_v39 = vsel %vm2158_vm1, %v3134_v54, %v3130_v42  ;;  %v4795_v12 = vld [vmem:[%s7022_s23 + $0x1d0] sm:$0xff]   ;;  %v829_v2 = vsel %vm567_vm0, %v4401_v6, 0.0 }
 0x101   :  { %v1711_v15 = vpack.c.bf16 %v1502_v8, %v1501_v10  ;;  %1253 = vadd.xlane.f32.xlu0 %v1252_v13  ;;  %v1155_v20 = vpop.xlane.xlu1 %1154  ;;  %v736_v13 = vsel %vm567_vm0, %v4340_v25, 0.0  ;;  %v826_v29 = vsel %vm567_vm0, %v4400_v7, 0.0  ;;  %v4461_v30 = vunpack.c.h.bf16 %v4795_v12 }
 0x102   :  { %v1152_v21 = vpop.xlane.xlu0 %1151  ;;  %v1532_v34 = vmul.f32 0.015625, %v1155_v20  ;;  %v5702_v19 = vsub.s32 %v2188_v63, %v5377_v23  ;;  %v5705_v20 = vsub.s32 %v2195_v3, %v5377_v23  ;;  %v1972_v6 = vunpack.c.h.b16 %v5650_v62 }
 0x103   :  { %v2055_v31 = vunpack.c.l.b16 %v1711_v15  ;;  %v2056_v33 = vunpack.c.h.b16 %v1711_v15  ;;  %v1531_v35 = vmul.f32 0.015625, %v1152_v21  ;;  %v919_v54 = vsel %vm567_vm0, %v4461_v30, 0.0 }
 0x104   :  { %602 = vadd.xlane.f32.xlu1 %v601_v24 }
 0x105   :  { %v2991_v22 = vrot.slane %v2055_v31, %v5533_v55  ;;  %v2996_v36 = vrot.slane %v2056_v33, %v5536_v56  ;;  %v1726_v27 = vpack.c.bf16 %v1532_v34, %v1531_v35  ;;  %599 = vadd.xlane.f32.xlu0 %v598_v26  ;;  %v1197_v44 = vpop.xlane.xlu1 %1196  ;;  %v4806_v31 = vld [vmem:[%s7022_s23 + $0x228] sm:$0xff]  }
 0x106   :  { %v1194_v46 = vpop.xlane.xlu0 %1193  ;;  %v1546_v49 = vmul.f32 0.015625, %v1197_v44  ;;  %v4505_v42 = vunpack.c.h.bf16 %v4806_v31  ;;  %v4814_v44 = vld [vmem:[%s7022_s23 + $0x268] sm:$0xff]  }
 0x107   :  { %v2992_v16 = vsel %vm2179_vm4, %v2991_v22, %v5527_v48  ;;  %v1545_v50 = vmul.f32 0.015625, %v1194_v46  ;;  %v2085_v57 = vunpack.c.l.b16 %v1726_v27  ;;  %v2086_v59 = vunpack.c.h.b16 %v1726_v27 }
 0x108   :  { %v5683_v53 = vsel %vm2186_vm5, %v2996_v36, %v2992_v16  ;;  %650 = vadd.xlane.f32.xlu1 %v649_v32  ;;  %v739_v48 = vsel %vm567_vm0, %v4341_v41, 0.0  ;;  %v4460_v22 = vunpack.c.l.bf16 %v4795_v12  ;;  %v4504_v27 = vunpack.c.l.bf16 %v4806_v31 }
 0x109   :  { %v5685_v60 = vpack.c.bf16 %v1546_v49, %v1545_v50  ;;  %v3139_v9 = vrot.slane %v2085_v57, %v5404_v51  ;;  %v3144_v4 = vrot.slane %v2086_v59, %v5407_v52  ;;  %647 = vadd.xlane.f32.xlu0 %v646_v0  ;;  %v591_v43 = vpop.xlane.xlu1 %590  ;;  %v4537_v3 = vunpack.c.h.bf16 %v4814_v44 }
 0x10a   :  { %v588_v5 = vpop.xlane.xlu0 %587  ;;  %v1344_v8 = vmul.f32 0.015625, %v591_v43  ;;  %v916_v47 = vsel %vm567_vm0, %v4460_v22, 0.0  ;;  %v4536_v43 = vunpack.c.l.bf16 %v4814_v44  ;;  %v4844_v44 = vld [vmem:[%s7022_s23 + $0x358] sm:$0xff]  }
 0x10b   :  { %v1343_v10 = vmul.f32 0.015625, %v588_v5  ;;  %v3140_v15 = vsel %vm2165_vm2, %v3139_v9, %v3135_v39  ;;  %v985_v9 = vsel %vm567_vm0, %v4505_v42, 0.0  ;;  %v1971_v5 = vunpack.c.l.b16 %v5650_v62 }
 0x10c   :  { %v5699_v18 = vsel %vm2172_vm3, %v3144_v4, %v3140_v15  ;;  %740 = vadd.xlane.f32.xlu1 %v739_v48  ;;  %v982_v4 = vsel %vm567_vm0, %v4504_v27, 0.0 }
 0x10d   :  { %v1632_v21 = vpack.c.bf16 %v1344_v8, %v1343_v10  ;;  %737 = vadd.xlane.f32.xlu0 %v736_v13  ;;  %v639_v24 = vpop.xlane.xlu1 %638 }
 0x10e   :  { %v636_v26 = vpop.xlane.xlu0 %635  ;;  %v1360_v35 = vmul.f32 0.015625, %v639_v24 }
 0x10f   :  { %v1897_v33 = vunpack.c.l.b16 %v1632_v21  ;;  %v1898_v34 = vunpack.c.h.b16 %v1632_v21  ;;  %v1359_v36 = vmul.f32 0.015625, %v636_v26  ;;  %v1033_v26 = vsel %vm567_vm0, %v4537_v3, 0.0 }
 0x110   :  { %830 = vadd.xlane.f32.xlu1 %v829_v2 }
 0x111   :  { %v2192_v32 = vrot.slane %v1897_v33, %v5702_v19  ;;  %v2199_v41 = vrot.slane %v1898_v34, %v5705_v20  ;;  %v1640_v46 = vpack.c.bf16 %v1360_v35, %v1359_v36  ;;  %827 = vadd.xlane.f32.xlu0 %v826_v29  ;;  %v729_v0 = vpop.xlane.xlu1 %728  ;;  %v2577_v33 = vrot.slane %v1971_v5, %v5391_v37 }
 0x112   :  { %v726_v25 = vpop.xlane.xlu0 %725  ;;  %v1390_v49 = vmul.f32 0.015625, %v729_v0  ;;  %v2581_v34 = vrot.slane %v1972_v6, %v5394_v38 }
 0x113   :  { %v2194_v16 = vsel %vm2193_vm6, %v2192_v32, %v5553_v28  ;;  %v1389_v50 = vmul.f32 0.015625, %v726_v25  ;;  %v1913_v59 = vunpack.c.l.b16 %v1640_v46  ;;  %v1914_v63 = vunpack.c.h.b16 %v1640_v46  ;;  %v4829_v28 = vld [vmem:[%s7022_s23 + $0x2e0] sm:$0xff]  }
 0x114   :  { %v5722_v57 = vsel %vm2200_vm7, %v2199_v41, %v2194_v16  ;;  %920 = vadd.xlane.f32.xlu1 %v919_v54  ;;  %v4597_v2 = vunpack.c.h.bf16 %v4829_v28  ;;  %v4596_v36 = vunpack.c.l.bf16 %v4829_v28 }
 0x115   :  { %v1655_v48 = vpack.c.bf16 %v1390_v49, %v1389_v50  ;;  %v2290_v7 = vrot.slane %v1913_v59, %v5702_v19  ;;  %v2295_v39 = vrot.slane %v1914_v63, %v5705_v20  ;;  %917 = vadd.xlane.f32.xlu0 %v916_v47  ;;  %v819_v8 = vpop.xlane.xlu1 %818  ;;  %v4657_v59 = vunpack.c.h.bf16 %v4844_v44 }
 0x116   :  { %v816_v10 = vpop.xlane.xlu0 %815  ;;  %v1420_v15 = vmul.f32 0.015625, %v819_v8  ;;  %v1123_v16 = vsel %vm567_vm0, %v4597_v2, 0.0  ;;  %v4656_v63 = vunpack.c.l.bf16 %v4844_v44 }
 0x117   :  { %v1943_v13 = vunpack.c.l.b16 %v1655_v48  ;;  %v1944_v12 = vunpack.c.h.b16 %v1655_v48  ;;  %v1419_v21 = vmul.f32 0.015625, %v816_v10  ;;  %v2291_v24 = vsel %vm2193_vm6, %v2290_v7, %v5566_v45 }
 0x118   :  { %v5737_v29 = vsel %vm2200_vm7, %v2295_v39, %v2291_v24  ;;  %986 = vadd.xlane.f32.xlu1 %v985_v9  ;;  %v1030_v45 = vsel %vm567_vm0, %v4536_v43, 0.0  ;;  %v4859_v43 = vld [vmem:[%s7022_s23 + $0x3d0] sm:$0xff]   ;;  %v1213_v39 = vsel %vm567_vm0, %v4657_v59, 0.0  ;;  %v1210_v8 = vsel %vm567_vm0, %v4656_v63, 0.0 }
 0x119   :  { %v2438_v62 = vrot.slane %v1943_v13, %v5533_v55  ;;  %v2443_v30 = vrot.slane %v1944_v12, %v5536_v56  ;;  %v1670_v31 = vpack.c.bf16 %v1420_v15, %v1419_v21  ;;  %983 = vadd.xlane.f32.xlu0 %v982_v4  ;;  %v861_v35 = vpop.xlane.xlu1 %860  ;;  %v1120_v4 = vsel %vm567_vm0, %v4596_v36, 0.0 }
 0x11a   :  { %v858_v22 = vpop.xlane.xlu0 %857  ;;  %v1434_v27 = vmul.f32 0.015625, %v861_v35  ;;  %v4717_v10 = vunpack.c.h.bf16 %v4859_v43  ;;  %v4716_v13 = vunpack.c.l.bf16 %v4859_v43 }
 0x11b   :  { %v2439_v32 = vsel %vm2179_vm4, %v2438_v62, %v5580_v1  ;;  %v1973_v41 = vunpack.c.l.b16 %v1670_v31  ;;  %v1974_v42 = vunpack.c.h.b16 %v1670_v31  ;;  %v1433_v0 = vmul.f32 0.015625, %v858_v22  ;;  %v4773_v31 = vld [vmem:[%s7022_s23 + $0x120] sm:$0xff]  }
 0x11c   :  { %v5750_v46 = vsel %vm2186_vm5, %v2443_v30, %v2439_v32  ;;  %1034 = vadd.xlane.f32.xlu1 %v1033_v26  ;;  %v2582_v1 = vsel %vm2158_vm1, %v2581_v34, %v2577_v33  ;;  %v4758_v26 = vld [vmem:[%s7022_s23 + $0xa8] sm:$0xff]   ;;  %v1303_v35 = vsel %vm567_vm0, %v4717_v10, 0.0  ;;  %v1300_v22 = vsel %vm567_vm0, %v4716_v13, 0.0 }
 0x11d   :  { %v2586_v25 = vrot.slane %v1973_v41, %v5404_v51  ;;  %v2591_v54 = vrot.slane %v1974_v42, %v5407_v52  ;;  %v5756_v49 = vpack.c.bf16 %v1434_v27, %v1433_v0  ;;  %1031 = vadd.xlane.f32.xlu0 %v1030_v45  ;;  %v975_v50 = vpop.xlane.xlu1 %974  ;;  %v4313_v45 = vunpack.c.h.bf16 %v4758_v26 }
 0x11e   :  { %v972_v47 = vpop.xlane.xlu0 %971  ;;  %v1472_v48 = vmul.f32 0.015625, %v975_v50  ;;  %v4312_v36 = vunpack.c.l.bf16 %v4758_v26  ;;  %v2099_v50 = vunpack.c.l.b16 %v5685_v60 }
 0x11f   :  { %v2587_v3 = vsel %vm2165_vm2, %v2586_v25, %v2582_v1  ;;  %v1471_v9 = vmul.f32 0.015625, %v972_v47  ;;  %v4373_v25 = vunpack.c.h.bf16 %v4773_v31  ;;  %v4372_v1 = vunpack.c.l.bf16 %v4773_v31 }
 0x120   :  { %v5764_v28 = vsel %vm2172_vm3, %v2591_v54, %v2587_v3  ;;  %1124 = vadd.xlane.f32.xlu1 %v1123_v16  ;;  %v2100_v47 = vunpack.c.h.b16 %v5685_v60  ;;  %v697_v3 = vsel %vm567_vm0, %v4313_v45, 0.0 }
 0x121   :  { %v1696_v5 = vpack.c.bf16 %v1472_v48, %v1471_v9  ;;  %1121 = vadd.xlane.f32.xlu0 %v1120_v4  ;;  %v1023_v6 = vpop.xlane.xlu1 %1022  ;;  %v4788_v48 = vld [vmem:[%s7022_s23 + $0x198] sm:$0xff]   ;;  %v784_v10 = vsel %vm567_vm0, %v4372_v1, 0.0 }
 0x122   :  { %v1020_v7 = vpop.xlane.xlu0 %1019  ;;  %v1488_v21 = vmul.f32 0.015625, %v1023_v6  ;;  %v4433_v13 = vunpack.c.h.bf16 %v4788_v48 }
 0x123   :  { %v2025_v12 = vunpack.c.l.b16 %v1696_v5  ;;  %v2026_v15 = vunpack.c.h.b16 %v1696_v5  ;;  %v1487_v24 = vmul.f32 0.015625, %v1020_v7  ;;  %v694_v5 = vsel %vm567_vm0, %v4312_v36, 0.0 }
 0x124   :  { %1214 = vadd.xlane.f32.xlu1 %v1213_v39  ;;  %v787_v39 = vsel %vm567_vm0, %v4373_v25, 0.0 }
 0x125   :  { %v2843_v2 = vrot.slane %v2025_v12, %v5702_v19  ;;  %v2848_v62 = vrot.slane %v2026_v15, %v5705_v20  ;;  %v1704_v30 = vpack.c.bf16 %v1488_v21, %v1487_v24  ;;  %1211 = vadd.xlane.f32.xlu0 %v1210_v8  ;;  %v1113_v33 = vpop.xlane.xlu1 %1112  ;;  %v4432_v12 = vunpack.c.l.bf16 %v4788_v48 }
 0x126   :  { %v1110_v34 = vpop.xlane.xlu0 %1109  ;;  %v1518_v27 = vmul.f32 0.015625, %v1113_v33  ;;  %v3209_v15 = vrot.slane %v2099_v50, %v5391_v37 }
 0x127   :  { %v2844_v32 = vsel %vm2193_vm6, %v2843_v2, %v5599_v40  ;;  %v2041_v41 = vunpack.c.l.b16 %v1704_v30  ;;  %v2042_v42 = vunpack.c.h.b16 %v1704_v30  ;;  %v1517_v0 = vmul.f32 0.015625, %v1110_v34  ;;  %v4822_v34 = vld [vmem:[%s7022_s23 + $0x2a8] sm:$0xff]  }
 0x128   :  { %v5781_v44 = vsel %vm2200_vm7, %v2848_v62, %v2844_v32  ;;  %1304 = vadd.xlane.f32.xlu1 %v1303_v35  ;;  %v874_v1 = vsel %vm567_vm0, %v4432_v12, 0.0  ;;  %v4568_v50 = vunpack.c.l.bf16 %v4822_v34 }
 0x129   :  { %v2922_v54 = vrot.slane %v2041_v41, %v5702_v19  ;;  %v2927_v16 = vrot.slane %v2042_v42, %v5705_v20  ;;  %v1719_v59 = vpack.c.bf16 %v1518_v27, %v1517_v0  ;;  %1301 = vadd.xlane.f32.xlu0 %v1300_v22  ;;  %v1203_v40 = vpop.xlane.xlu1 %1202  ;;  %v877_v27 = vsel %vm567_vm0, %v4433_v13, 0.0 }
 0x12a   :  { %v1200_v63 = vpop.xlane.xlu0 %1199  ;;  %v1548_v4 = vmul.f32 0.015625, %v1203_v40  ;;  %v4569_v0 = vunpack.c.h.bf16 %v4822_v34 }
 0x12b   :  { %v2923_v9 = vsel %vm2193_vm6, %v2922_v54, %v5613_v61  ;;  %v1547_v43 = vmul.f32 0.015625, %v1200_v63  ;;  %v2071_v60 = vunpack.c.l.b16 %v1719_v59  ;;  %v2072_v7 = vunpack.c.h.b16 %v1719_v59 }
 0x12c   :  { %v5795_v6 = vsel %vm2200_vm7, %v2927_v16, %v2923_v9  ;;  %698 = vadd.xlane.f32.xlu1 %v697_v3  ;;  %v3213_v61 = vrot.slane %v2100_v47, %v5394_v38  ;;  %v1081_v48 = vsel %vm567_vm0, %v4569_v0, 0.0  ;;  %v4852_v9 = vld [vmem:[%s7022_s23 + $0x398] sm:$0xff]  }
 0x12d   :  { %v1734_v8 = vpack.c.bf16 %v1548_v4, %v1547_v43  ;;  %v3070_v21 = vrot.slane %v2071_v60, %v5533_v55  ;;  %v3075_v24 = vrot.slane %v2072_v7, %v5536_v56  ;;  %695 = vadd.xlane.f32.xlu0 %v694_v5  ;;  %v1245_v26 = vpop.xlane.xlu1 %1244  ;;  %v1078_v5 = vsel %vm567_vm0, %v4568_v50, 0.0 }
 0x12e   :  { %v1242_v2 = vpop.xlane.xlu0 %1241  ;;  %v1562_v31 = vmul.f32 0.015625, %v1245_v26  ;;  %v3214_v41 = vsel %vm2158_vm1, %v3213_v61, %v3209_v15  ;;  %v4689_v13 = vunpack.c.h.bf16 %v4852_v9  ;;  %v4743_v26 = vld [vmem:[%s7022_s23 + $0x30] sm:$0xff]  }
 0x12f   :  { %v2101_v62 = vunpack.c.l.b16 %v1734_v8  ;;  %v2102_v30 = vunpack.c.h.b16 %v1734_v8  ;;  %v1561_v33 = vmul.f32 0.015625, %v1242_v2  ;;  %v3071_v35 = vsel %vm2179_vm4, %v3070_v21, %v5627_v17  ;;  %v4837_v17 = vld [vmem:[%s7022_s23 + $0x320] sm:$0xff]  }
 0x130   :  { %v5809_v22 = vsel %vm2186_vm5, %v3075_v24, %v3071_v35  ;;  %788 = vadd.xlane.f32.xlu1 %v787_v39  ;;  %v4629_v40 = vunpack.c.h.bf16 %v4837_v17  ;;  %v4628_v60 = vunpack.c.l.bf16 %v4837_v17  ;;  %v4688_v24 = vunpack.c.l.bf16 %v4852_v9 }
 0x131   :  { %v3218_v45 = vrot.slane %v2101_v62, %v5404_v51  ;;  %v3223_v36 = vrot.slane %v2102_v30, %v5407_v52  ;;  %v5813_v32 = vpack.c.bf16 %v1562_v31, %v1561_v33  ;;  %785 = vadd.xlane.f32.xlu0 %v784_v10  ;;  %v687_v42 = vpop.xlane.xlu1 %686  ;;  %v1987_v2 = vunpack.c.l.b16 %v5756_v49 }
 0x132   :  { %v1376_v54 = vmul.f32 0.015625, %v687_v42  ;;  %v684_v16 = vpop.xlane.xlu0 %683  ;;  %v1171_v10 = vsel %vm567_vm0, %v4629_v40, 0.0  ;;  %v1988_v62 = vunpack.c.h.b16 %v5756_v49  ;;  %v1168_v33 = vsel %vm567_vm0, %v4628_v60, 0.0  ;;  %v4751_v40 = vld [vmem:[%s7022_s23 + $0x70] sm:$0xff]  }
 0x133   :  { %v3219_v25 = vsel %vm2165_vm2, %v3218_v45, %v3214_v41  ;;  %v1375_v59 = vmul.f32 0.015625, %v684_v16  ;;  %v1261_v42 = vsel %vm567_vm0, %v4689_v13, 0.0 }
 0x134   :  { %v5823_v47 = vsel %vm2172_vm3, %v3223_v36, %v3219_v25  ;;  %878 = vadd.xlane.f32.xlu1 %v877_v27  ;;  %v4253_v27 = vunpack.c.h.bf16 %v4743_v26  ;;  %v2660_v16 = vrot.slane %v1988_v62, %v5394_v38 }
 0x135   :  { %v1648_v63 = vpack.c.bf16 %v1376_v54, %v1375_v59  ;;  %875 = vadd.xlane.f32.xlu0 %v874_v1  ;;  %v777_v3 = vpop.xlane.xlu1 %776  ;;  %v1258_v54 = vsel %vm567_vm0, %v4688_v24, 0.0  ;;  %v4252_v59 = vunpack.c.l.bf16 %v4743_v26 }
 0x136   :  { %v1406_v4 = vmul.f32 0.015625, %v777_v3  ;;  %v774_v43 = vpop.xlane.xlu0 %773 }
 0x137   :  { %v1929_v7 = vunpack.c.l.b16 %v1648_v63  ;;  %v1930_v39 = vunpack.c.h.b16 %v1648_v63  ;;  %v1405_v8 = vmul.f32 0.015625, %v774_v43  ;;  %v607_v43 = vsel %vm567_vm0, %v4253_v27, 0.0 }
 0x138   :  { %1082 = vadd.xlane.f32.xlu1 %v1081_v48 }
 0x139   :  { %v2369_v12 = vrot.slane %v1929_v7, %v5702_v19  ;;  %v2374_v15 = vrot.slane %v1930_v39, %v5705_v20  ;;  %v1663_v61 = vpack.c.bf16 %v1406_v4, %v1405_v8  ;;  %1079 = vadd.xlane.f32.xlu0 %v1078_v5  ;;  %v867_v21 = vpop.xlane.xlu1 %866  ;;  %v4285_v8 = vunpack.c.h.bf16 %v4751_v40 }
 0x13a   :  { %v1436_v30 = vmul.f32 0.015625, %v867_v21  ;;  %v864_v31 = vpop.xlane.xlu0 %863 }
 0x13b   :  { %v2370_v34 = vsel %vm2193_vm6, %v2369_v12, %v5648_v58  ;;  %v1959_v35 = vunpack.c.l.b16 %v1663_v61  ;;  %v1960_v45 = vunpack.c.h.b16 %v1663_v61  ;;  %v1435_v36 = vmul.f32 0.015625, %v864_v31 }
 0x13c   :  { %v5842_v41 = vsel %vm2200_vm7, %v2374_v15, %v2370_v34  ;;  %1172 = vadd.xlane.f32.xlu1 %v1171_v10  ;;  %v2656_v58 = vrot.slane %v1987_v2, %v5391_v37  ;;  %v604_v15 = vsel %vm567_vm0, %v4252_v59, 0.0  ;;  %v4284_v61 = vunpack.c.l.bf16 %v4751_v40 }
 0x13d   :  { %v2517_v0 = vrot.slane %v1959_v35, %v5533_v55  ;;  %v2522_v49 = vrot.slane %v1960_v45, %v5536_v56  ;;  %v1678_v17 = vpack.c.bf16 %v1436_v30, %v1435_v36  ;;  %1169 = vadd.xlane.f32.xlu0 %v1168_v33  ;;  %v909_v25 = vpop.xlane.xlu1 %908  ;;  %v655_v31 = vsel %vm567_vm0, %v4285_v8, 0.0  ;;  %v4781_v33 = vld [vmem:[%s7022_s23 + $0x160] sm:$0xff]  }
 0x13e   :  { %v1450_v1 = vmul.f32 0.015625, %v909_v25  ;;  %v906_v50 = vpop.xlane.xlu0 %905  ;;  %v2661_v10 = vsel %vm2158_vm1, %v2660_v16, %v2656_v58  ;;  %v652_v45 = vsel %vm567_vm0, %v4284_v61, 0.0  ;;  %v2115_v59 = vunpack.c.l.b16 %v5813_v32 }
 0x13f   :  { %v2518_v63 = vsel %vm2179_vm4, %v2517_v0, %v5662_v14  ;;  %v1989_v3 = vunpack.c.l.b16 %v1678_v17  ;;  %v1990_v48 = vunpack.c.h.b16 %v1678_v17  ;;  %v1449_v9 = vmul.f32 0.015625, %v906_v50  ;;  %v4766_v14 = vld [vmem:[%s7022_s23 + $0xe8] sm:$0xff]   ;;  %v4796_v50 = vld [vmem:[%s7022_s23 + $0x1d8] sm:$0xff]  }
 0x140   :  { %v5856_v4 = vsel %vm2186_vm5, %v2522_v49, %v2518_v63  ;;  %1262 = vadd.xlane.f32.xlu1 %v1261_v42  ;;  %v4345_v2 = vunpack.c.h.bf16 %v4766_v14  ;;  %v4344_v36 = vunpack.c.l.bf16 %v4766_v14  ;;  %v4405_v17 = vunpack.c.h.bf16 %v4781_v33 }
 0x141   :  { %v2665_v5 = vrot.slane %v1989_v3, %v5404_v51  ;;  %v2670_v60 = vrot.slane %v1990_v48, %v5407_v52  ;;  %v5861_v7 = vpack.c.bf16 %v1450_v1, %v1449_v9  ;;  %1259 = vadd.xlane.f32.xlu0 %v1258_v54  ;;  %v1071_v39 = vpop.xlane.xlu1 %1070  ;;  %v4404_v1 = vunpack.c.l.bf16 %v4781_v33 }
 0x142   :  { %v1504_v13 = vmul.f32 0.015625, %v1071_v39  ;;  %v1068_v12 = vpop.xlane.xlu0 %1067  ;;  %v745_v49 = vsel %vm567_vm0, %v4345_v2, 0.0  ;;  %v2116_v40 = vunpack.c.h.b16 %v5813_v32  ;;  %v742_v48 = vsel %vm567_vm0, %v4344_v36, 0.0 }
 0x143   :  { %v2666_v21 = vsel %vm2165_vm2, %v2665_v5, %v2661_v10  ;;  %v1503_v24 = vmul.f32 0.015625, %v1068_v12  ;;  %v835_v8 = vsel %vm567_vm0, %v4405_v17, 0.0  ;;  %v4465_v14 = vunpack.c.h.bf16 %v4796_v50 }
 0x144   :  { %v5870_v26 = vsel %vm2172_vm3, %v2670_v60, %v2666_v21  ;;  %608 = vadd.xlane.f32.xlu1 %v607_v43  ;;  %v3292_v61 = vrot.slane %v2116_v40, %v5394_v38  ;;  %v4464_v2 = vunpack.c.l.bf16 %v4796_v50  ;;  %v2209_v36 = vadd.s32 4294967224, %v5368_v11  ;;  %v4815_v50 = vld [vmem:[%s7022_s23 + $0x270] sm:$0xff]  }
 0x145   :  { %v1712_v62 = vpack.c.bf16 %v1504_v13, %v1503_v24  ;;  %605 = vadd.xlane.f32.xlu0 %v604_v15  ;;  %v1161_v30 = vpop.xlane.xlu1 %1160  ;;  %v832_v15 = vsel %vm567_vm0, %v4404_v1, 0.0 }
 0x146   :  { %v1534_v34 = vmul.f32 0.015625, %v1161_v30  ;;  %v1158_v35 = vpop.xlane.xlu0 %1157 }
 0x147   :  { %v2057_v42 = vunpack.c.l.b16 %v1712_v62  ;;  %v2058_v27 = vunpack.c.h.b16 %v1712_v62  ;;  %v1533_v0 = vmul.f32 0.015625, %v1158_v35  ;;  %v4807_v62 = vld [vmem:[%s7022_s23 + $0x230] sm:$0xff]  }
 0x148   :  { %656 = vadd.xlane.f32.xlu1 %v655_v31  ;;  %v4509_v17 = vunpack.c.h.bf16 %v4807_v62  ;;  %v4508_v1 = vunpack.c.l.bf16 %v4807_v62 }
 0x149   :  { %v3001_v25 = vrot.slane %v2057_v42, %v5702_v19  ;;  %v3006_v54 = vrot.slane %v2058_v27, %v5705_v20  ;;  %v1727_v58 = vpack.c.bf16 %v1534_v34, %v1533_v0  ;;  %653 = vadd.xlane.f32.xlu0 %v652_v45  ;;  %v1251_v16 = vpop.xlane.xlu1 %1250  ;;  %v2202_v45 = vadd.s32 4294967232, %v5368_v11 }
 0x14a   :  { %v1564_v63 = vmul.f32 0.015625, %v1251_v16  ;;  %v1248_v3 = vpop.xlane.xlu0 %1247  ;;  %v925_v42 = vsel %vm567_vm0, %v4465_v14, 0.0  ;;  %v922_v16 = vsel %vm567_vm0, %v4464_v2, 0.0 }
 0x14b   :  { %v3002_v9 = vsel %vm2193_vm6, %v3001_v25, %v5683_v53  ;;  %v2087_v43 = vunpack.c.l.b16 %v1727_v58  ;;  %v2088_v5 = vunpack.c.h.b16 %v1727_v58  ;;  %v1563_v60 = vmul.f32 0.015625, %v1248_v3 }
 0x14c   :  { %v5889_v39 = vsel %vm2200_vm7, %v3006_v54, %v3002_v9  ;;  %746 = vadd.xlane.f32.xlu1 %v745_v49  ;;  %v3288_v53 = vrot.slane %v2115_v59, %v5391_v37  ;;  %v5922_v3 = vsub.s32 %v2202_v45, %v5377_v23 }
 0x14d   :  { %v3149_v10 = vrot.slane %v2087_v43, %v5533_v55  ;;  %v3154_v32 = vrot.slane %v2088_v5, %v5536_v56  ;;  %v1742_v13 = vpack.c.bf16 %v1564_v63, %v1563_v60  ;;  %743 = vadd.xlane.f32.xlu0 %v742_v48  ;;  %v1293_v12 = vpop.xlane.xlu1 %1292  ;;  %v5925_v48 = vsub.s32 %v2209_v36, %v5377_v23  ;;  %v4845_v36 = vld [vmem:[%s7022_s23 + $0x360] sm:$0xff]  }
 0x14e   :  { %v1578_v21 = vmul.f32 0.015625, %v1293_v12  ;;  %v1290_v24 = vpop.xlane.xlu0 %1289  ;;  %v3293_v25 = vsel %vm2158_vm1, %v3292_v61, %v3288_v53  ;;  %v991_v5 = vsel %vm567_vm0, %v4509_v17, 0.0  ;;  %v4541_v60 = vunpack.c.h.bf16 %v4815_v50 }
 0x14f   :  { %v3150_v30 = vsel %vm2179_vm4, %v3149_v10, %v5699_v18  ;;  %v2117_v31 = vunpack.c.l.b16 %v1742_v13  ;;  %v2118_v33 = vunpack.c.h.b16 %v1742_v13  ;;  %v1577_v34 = vmul.f32 0.015625, %v1290_v24 }
 0x150   :  { %v5903_v35 = vsel %vm2186_vm5, %v3154_v32, %v3150_v30  ;;  %836 = vadd.xlane.f32.xlu1 %v835_v8  ;;  %v4830_v8 = vld [vmem:[%s7022_s23 + $0x2e8] sm:$0xff]   ;;  %v988_v32 = vsel %vm567_vm0, %v4508_v1, 0.0  ;;  %v4540_v13 = vunpack.c.l.bf16 %v4815_v50  ;;  %v1039_v30 = vsel %vm567_vm0, %v4541_v60, 0.0 }
 0x151   :  { %v3297_v27 = vrot.slane %v2117_v31, %v5404_v51  ;;  %v3302_v0 = vrot.slane %v2118_v33, %v5407_v52  ;;  %v5910_v49 = vpack.c.bf16 %v1578_v21, %v1577_v34  ;;  %833 = vadd.xlane.f32.xlu0 %v832_v15  ;;  %v597_v18 = vpop.xlane.xlu1 %596  ;;  %v4601_v61 = vunpack.c.h.bf16 %v4830_v8 }
 0x152   :  { %v1346_v54 = vmul.f32 0.015625, %v597_v18  ;;  %v594_v58 = vpop.xlane.xlu0 %593  ;;  %v1036_v34 = vsel %vm567_vm0, %v4540_v13, 0.0  ;;  %v4600_v45 = vunpack.c.l.bf16 %v4830_v8  ;;  %v4661_v50 = vunpack.c.h.bf16 %v4845_v36 }
 0x153   :  { %v3298_v59 = vsel %vm2165_vm2, %v3297_v27, %v3293_v25  ;;  %v1345_v40 = vmul.f32 0.015625, %v594_v58  ;;  %v1129_v25 = vsel %vm567_vm0, %v4601_v61, 0.0 }
 0x154   :  { %v5919_v63 = vsel %vm2172_vm3, %v3302_v0, %v3298_v59  ;;  %926 = vadd.xlane.f32.xlu1 %v925_v42 }
 0x155   :  { %v1633_v9 = vpack.c.bf16 %v1346_v54, %v1345_v40  ;;  %923 = vadd.xlane.f32.xlu0 %v922_v16  ;;  %v645_v43 = vpop.xlane.xlu1 %644 }
 0x156   :  { %v1362_v14 = vmul.f32 0.015625, %v645_v43  ;;  %v642_v10 = vpop.xlane.xlu0 %641  ;;  %v4660_v43 = vunpack.c.l.bf16 %v4845_v36 }
 0x157   :  { %v1899_v12 = vunpack.c.l.b16 %v1633_v9  ;;  %v1900_v15 = vunpack.c.h.b16 %v1633_v9  ;;  %v1361_v53 = vmul.f32 0.015625, %v642_v10  ;;  %v1126_v9 = vsel %vm567_vm0, %v4600_v45, 0.0 }
 0x158   :  { %992 = vadd.xlane.f32.xlu1 %v991_v5 }
 0x159   :  { %v2206_v21 = vrot.slane %v1899_v12, %v5922_v3  ;;  %v2213_v24 = vrot.slane %v1900_v15, %v5925_v48  ;;  %v1641_v2 = vpack.c.bf16 %v1362_v14, %v1361_v53  ;;  %989 = vadd.xlane.f32.xlu0 %v988_v32  ;;  %v735_v62 = vpop.xlane.xlu1 %734 }
 0x15a   :  { %v1392_v31 = vmul.f32 0.015625, %v735_v62  ;;  %v732_v33 = vpop.xlane.xlu0 %731 }
 0x15b   :  { %v2208_v42 = vsel %vm2207_vm8, %v2206_v21, %v5722_v57  ;;  %v1915_v27 = vunpack.c.l.b16 %v1641_v2  ;;  %v1916_v0 = vunpack.c.h.b16 %v1641_v2  ;;  %v1391_v18 = vmul.f32 0.015625, %v732_v33  ;;  %v4860_v57 = vld [vmem:[%s7022_s23 + $0x3d8] sm:$0xff]  }
 0x15c   :  { %v5942_v17 = vsel %vm2214_vm9, %v2213_v24, %v2208_v42  ;;  %1040 = vadd.xlane.f32.xlu1 %v1039_v30  ;;  %v4721_v32 = vunpack.c.h.bf16 %v4860_v57  ;;  %v4720_v13 = vunpack.c.l.bf16 %v4860_v57  ;;  %v1219_v21 = vsel %vm567_vm0, %v4661_v50, 0.0 }
 0x15d   :  { %v2300_v54 = vrot.slane %v1915_v27, %v5922_v3  ;;  %v2305_v58 = vrot.slane %v1916_v0, %v5925_v48  ;;  %v1656_v16 = vpack.c.bf16 %v1392_v31, %v1391_v18  ;;  %1037 = vadd.xlane.f32.xlu0 %v1036_v34  ;;  %v825_v1 = vpop.xlane.xlu1 %824  ;;  %v2004_v24 = vunpack.c.h.b16 %v5861_v7  ;;  %v4759_v31 = vld [vmem:[%s7022_s23 + $0xb0] sm:$0xff]  }
 0x15e   :  { %v1422_v59 = vmul.f32 0.015625, %v825_v1  ;;  %v822_v40 = vpop.xlane.xlu0 %821  ;;  %v1216_v30 = vsel %vm567_vm0, %v4660_v43, 0.0  ;;  %v1306_v27 = vsel %vm567_vm0, %v4720_v13, 0.0 }
 0x15f   :  { %v2301_v5 = vsel %vm2207_vm8, %v2300_v54, %v5737_v29  ;;  %v1945_v60 = vunpack.c.l.b16 %v1656_v16  ;;  %v1946_v8 = vunpack.c.h.b16 %v1656_v16  ;;  %v1421_v14 = vmul.f32 0.015625, %v822_v40 }
 0x160   :  { %v5954_v10 = vsel %vm2214_vm9, %v2305_v58, %v2301_v5  ;;  %1130 = vadd.xlane.f32.xlu1 %v1129_v25  ;;  %v2003_v29 = vunpack.c.l.b16 %v5861_v7  ;;  %v1309_v7 = vsel %vm567_vm0, %v4721_v32, 0.0  ;;  %v4317_v58 = vunpack.c.h.bf16 %v4759_v31 }
 0x161   :  { %v2448_v12 = vrot.slane %v1945_v60, %v5702_v19  ;;  %v2453_v15 = vrot.slane %v1946_v8, %v5705_v20  ;;  %v1671_v53 = vpack.c.bf16 %v1422_v59, %v1421_v14  ;;  %1127 = vadd.xlane.f32.xlu0 %v1126_v9  ;;  %v915_v61 = vpop.xlane.xlu1 %914  ;;  %v2739_v1 = vrot.slane %v2004_v24, %v5394_v38  ;;  %v4789_v24 = vld [vmem:[%s7022_s23 + $0x1a0] sm:$0xff]  }
 0x162   :  { %v1452_v2 = vmul.f32 0.015625, %v915_v61  ;;  %v912_v62 = vpop.xlane.xlu0 %911  ;;  %v2735_v16 = vrot.slane %v2003_v29, %v5391_v37  ;;  %v4316_v59 = vunpack.c.l.bf16 %v4759_v31 }
 0x163   :  { %v2449_v33 = vsel %vm2193_vm6, %v2448_v12, %v5750_v46  ;;  %v1975_v34 = vunpack.c.l.b16 %v1671_v53  ;;  %v1976_v45 = vunpack.c.h.b16 %v1671_v53  ;;  %v1451_v36 = vmul.f32 0.015625, %v912_v62  ;;  %v4774_v46 = vld [vmem:[%s7022_s23 + $0x128] sm:$0xff]  }
 0x164   :  { %v5968_v42 = vsel %vm2200_vm7, %v2453_v15, %v2449_v33  ;;  %1220 = vadd.xlane.f32.xlu1 %v1219_v21  ;;  %v4377_v8 = vunpack.c.h.bf16 %v4774_v46  ;;  %v703_v15 = vsel %vm567_vm0, %v4317_v58, 0.0  ;;  %v2740_v53 = vsel %vm2158_vm1, %v2739_v1, %v2735_v16 }
 0x165   :  { %v2596_v0 = vrot.slane %v1975_v34, %v5533_v55  ;;  %v2601_v18 = vrot.slane %v1976_v45, %v5536_v56  ;;  %v1686_v25 = vpack.c.bf16 %v1452_v2, %v1451_v36  ;;  %1217 = vadd.xlane.f32.xlu0 %v1216_v30  ;;  %v981_v54 = vpop.xlane.xlu1 %980  ;;  %v700_v21 = vsel %vm567_vm0, %v4316_v59, 0.0 }
 0x166   :  { %v1474_v50 = vmul.f32 0.015625, %v981_v54  ;;  %v978_v57 = vpop.xlane.xlu0 %977  ;;  %v4376_v29 = vunpack.c.l.bf16 %v4774_v46  ;;  %v793_v34 = vsel %vm567_vm0, %v4377_v8, 0.0  ;;  %v4436_v46 = vunpack.c.l.bf16 %v4789_v24 }
 0x167   :  { %v2597_v40 = vsel %vm2179_vm4, %v2596_v0, %v5764_v28  ;;  %v2005_v9 = vunpack.c.l.b16 %v1686_v25  ;;  %v2006_v43 = vunpack.c.h.b16 %v1686_v25  ;;  %v1473_v5 = vmul.f32 0.015625, %v978_v57 }
 0x168   :  { %v5982_v60 = vsel %vm2186_vm5, %v2601_v18, %v2597_v40  ;;  %1310 = vadd.xlane.f32.xlu1 %v1309_v7  ;;  %v4437_v0 = vunpack.c.h.bf16 %v4789_v24  ;;  %v4823_v18 = vld [vmem:[%s7022_s23 + $0x2b0] sm:$0xff]   ;;  %v790_v58 = vsel %vm567_vm0, %v4376_v29, 0.0 }
 0x169   :  { %v2744_v14 = vrot.slane %v2005_v9, %v5404_v51  ;;  %v2749_v32 = vrot.slane %v2006_v43, %v5407_v52  ;;  %v1697_v13 = vpack.c.bf16 %v1474_v50, %v1473_v5  ;;  %1307 = vadd.xlane.f32.xlu0 %v1306_v27  ;;  %v1029_v12 = vpop.xlane.xlu1 %1028  ;;  %v4573_v40 = vunpack.c.h.bf16 %v4823_v18 }
 0x16a   :  { %v1490_v28 = vmul.f32 0.015625, %v1029_v12  ;;  %v1026_v61 = vpop.xlane.xlu0 %1025  ;;  %v880_v12 = vsel %vm567_vm0, %v4436_v46, 0.0 }
 0x16b   :  { %v2745_v2 = vsel %vm2165_vm2, %v2744_v14, %v2740_v53  ;;  %v2027_v62 = vunpack.c.l.b16 %v1697_v13  ;;  %v2028_v30 = vunpack.c.h.b16 %v1697_v13  ;;  %v1489_v31 = vmul.f32 0.015625, %v1026_v61 }
 0x16c   :  { %v5994_v33 = vsel %vm2172_vm3, %v2749_v32, %v2745_v2  ;;  %704 = vadd.xlane.f32.xlu1 %v703_v15  ;;  %v883_v14 = vsel %vm567_vm0, %v4437_v0, 0.0  ;;  %v4572_v15 = vunpack.c.l.bf16 %v4823_v18  ;;  %v1087_v24 = vsel %vm567_vm0, %v4573_v40, 0.0 }
 0x16d   :  { %v2853_v45 = vrot.slane %v2027_v62, %v5922_v3  ;;  %v2858_v36 = vrot.slane %v2028_v30, %v5925_v48  ;;  %v1705_v7 = vpack.c.bf16 %v1490_v28, %v1489_v31  ;;  %701 = vadd.xlane.f32.xlu0 %v700_v21  ;;  %v1119_v27 = vpop.xlane.xlu1 %1118 }
 0x16e   :  { %v1520_v25 = vmul.f32 0.015625, %v1119_v27  ;;  %v1116_v54 = vpop.xlane.xlu0 %1115  ;;  %v1084_v18 = vsel %vm567_vm0, %v4572_v15, 0.0 }
 0x16f   :  { %v2854_v16 = vsel %vm2207_vm8, %v2853_v45, %v5781_v44  ;;  %v2043_v1 = vunpack.c.l.b16 %v1705_v7  ;;  %v2044_v50 = vunpack.c.h.b16 %v1705_v7  ;;  %v1519_v57 = vmul.f32 0.015625, %v1116_v54  ;;  %v4838_v44 = vld [vmem:[%s7022_s23 + $0x328] sm:$0xff]  }
 0x170   :  { %v6006_v59 = vsel %vm2214_vm9, %v2858_v36, %v2854_v16  ;;  %794 = vadd.xlane.f32.xlu1 %v793_v34  ;;  %v4633_v2 = vunpack.c.h.bf16 %v4838_v44  ;;  %v4632_v45 = vunpack.c.l.bf16 %v4838_v44  ;;  %v2131_v36 = vunpack.c.l.b16 %v5910_v49 }
 0x171   :  { %v2932_v9 = vrot.slane %v2043_v1, %v5922_v3  ;;  %v2937_v43 = vrot.slane %v2044_v50, %v5925_v48  ;;  %v1720_v5 = vpack.c.bf16 %v1520_v25, %v1519_v57  ;;  %791 = vadd.xlane.f32.xlu0 %v790_v58  ;;  %v1209_v8 = vpop.xlane.xlu1 %1208  ;;  %v2132_v7 = vunpack.c.h.b16 %v5910_v49 }
 0x172   :  { %v1550_v32 = vmul.f32 0.015625, %v1209_v8  ;;  %v1206_v13 = vpop.xlane.xlu0 %1205  ;;  %v1177_v1 = vsel %vm567_vm0, %v4633_v2, 0.0 }
 0x173   :  { %v2933_v53 = vsel %vm2207_vm8, %v2932_v9, %v5795_v6  ;;  %v2073_v28 = vunpack.c.l.b16 %v1720_v5  ;;  %v2074_v61 = vunpack.c.h.b16 %v1720_v5  ;;  %v1549_v21 = vmul.f32 0.015625, %v1206_v13  ;;  %v4853_v6 = vld [vmem:[%s7022_s23 + $0x3a0] sm:$0xff]  }
 0x174   :  { %v6018_v29 = vsel %vm2214_vm9, %v2937_v43, %v2933_v53  ;;  %884 = vadd.xlane.f32.xlu1 %v883_v14  ;;  %v4693_v50 = vunpack.c.h.bf16 %v4853_v6  ;;  %v1174_v43 = vsel %vm567_vm0, %v4632_v45, 0.0  ;;  %v3371_v5 = vrot.slane %v2132_v7, %v5394_v38 }
 0x175   :  { %v3080_v62 = vrot.slane %v2073_v28, %v5702_v19  ;;  %v3085_v30 = vrot.slane %v2074_v61, %v5705_v20  ;;  %v1735_v31 = vpack.c.bf16 %v1550_v32, %v1549_v21  ;;  %881 = vadd.xlane.f32.xlu0 %v880_v12  ;;  %v1299_v34 = vpop.xlane.xlu1 %1298  ;;  %v4692_v44 = vunpack.c.l.bf16 %v4853_v6  ;;  %v4744_v32 = vld [vmem:[%s7022_s23 + $0x38] sm:$0xff]  }
 0x176   :  { %v1580_v27 = vmul.f32 0.015625, %v1299_v34  ;;  %v1296_v0 = vpop.xlane.xlu0 %1295  ;;  %v4257_v2 = vunpack.c.h.bf16 %v4744_v32  ;;  %v4256_v45 = vunpack.c.l.bf16 %v4744_v32 }
 0x177   :  { %v3081_v25 = vsel %vm2193_vm6, %v3080_v62, %v5809_v22  ;;  %v2103_v54 = vunpack.c.l.b16 %v1735_v31  ;;  %v2104_v58 = vunpack.c.h.b16 %v1735_v31  ;;  %v1579_v46 = vmul.f32 0.015625, %v1296_v0 }
 0x178   :  { %v6032_v16 = vsel %vm2200_vm7, %v3085_v30, %v3081_v25  ;;  %1088 = vadd.xlane.f32.xlu1 %v1087_v24  ;;  %v3367_v22 = vrot.slane %v2131_v36, %v5391_v37  ;;  %v1267_v37 = vsel %vm567_vm0, %v4693_v50, 0.0  ;;  %v1264_v34 = vsel %vm567_vm0, %v4692_v44, 0.0 }
 0x179   :  { %v3228_v57 = vrot.slane %v2103_v54, %v5533_v55  ;;  %v3233_v49 = vrot.slane %v2104_v58, %v5536_v56  ;;  %v1750_v40 = vpack.c.bf16 %v1580_v27, %v1579_v46  ;;  %1085 = vadd.xlane.f32.xlu0 %v1084_v18  ;;  %v693_v9 = vpop.xlane.xlu1 %692  ;;  %v613_v58 = vsel %vm567_vm0, %v4257_v2, 0.0 }
 0x17a   :  { %v1378_v8 = vmul.f32 0.015625, %v693_v9  ;;  %v690_v14 = vpop.xlane.xlu0 %689  ;;  %v3372_v62 = vsel %vm2158_vm1, %v3371_v5, %v3367_v22  ;;  %v610_v50 = vsel %vm567_vm0, %v4256_v45, 0.0  ;;  %vm5085_vm1 = vmmov 0  }
 0x17b   :  { %v3229_v13 = vsel %vm2179_vm4, %v3228_v57, %v5823_v47  ;;  %v2133_v12 = vunpack.c.l.b16 %v1750_v40  ;;  %v2134_v15 = vunpack.c.h.b16 %v1750_v40  ;;  %v1377_v53 = vmul.f32 0.015625, %v690_v14  ;;  %v4752_v47 = vld [vmem:[%s7022_s23 + $0x78] sm:$0xff]  }
 0x17c   :  { %v6046_v28 = vsel %vm2186_vm5, %v3233_v49, %v3229_v13  ;;  %1178 = vadd.xlane.f32.xlu1 %v1177_v1  ;;  %v4289_v27 = vunpack.c.h.bf16 %v4752_v47  ;;  %v4288_v57 = vunpack.c.l.bf16 %v4752_v47  ;;  %v4767_v49 = vld [vmem:[%s7022_s23 + $0xf0] sm:$0xff]  }
 0x17d   :  { %v3376_v38 = vrot.slane %v2133_v12, %v5404_v51  ;;  %v3381_v61 = vrot.slane %v2134_v15, %v5407_v52  ;;  %v1649_v21 = vpack.c.bf16 %v1378_v8, %v1377_v53  ;;  %1175 = vadd.xlane.f32.xlu0 %v1174_v43  ;;  %v783_v24 = vpop.xlane.xlu1 %782  ;;  %v4349_v12 = vunpack.c.h.bf16 %v4767_v49 }
 0x17e   :  { %v1408_v30 = vmul.f32 0.015625, %v783_v24  ;;  %v780_v31 = vpop.xlane.xlu0 %779  ;;  %v661_v8 = vsel %vm567_vm0, %v4289_v27, 0.0  ;;  %v4797_v27 = vld [vmem:[%s7022_s23 + $0x1e0] sm:$0xff]  }
 0x17f   :  { %v3377_v6 = vsel %vm2165_vm2, %v3376_v38, %v3372_v62  ;;  %v1931_v51 = vunpack.c.l.b16 %v1649_v21  ;;  %v1932_v36 = vunpack.c.h.b16 %v1649_v21  ;;  %v1407_v52 = vmul.f32 0.015625, %v780_v31 }
 0x180   :  { %v6058_v7 = vsel %vm2172_vm3, %v3381_v61, %v3377_v6  ;;  %1268 = vadd.xlane.f32.xlu1 %v1267_v37  ;;  %v658_v37 = vsel %vm567_vm0, %v4288_v57, 0.0  ;;  %v4348_v38 = vunpack.c.l.bf16 %v4767_v49  ;;  %v751_v6 = vsel %vm567_vm0, %v4349_v12, 0.0 }
 0x181   :  { %v2379_v0 = vrot.slane %v1931_v51, %v5922_v3  ;;  %v2384_v18 = vrot.slane %v1932_v36, %v5925_v48  ;;  %v1664_v25 = vpack.c.bf16 %v1408_v30, %v1407_v52  ;;  %1265 = vadd.xlane.f32.xlu0 %v1264_v34  ;;  %v873_v54 = vpop.xlane.xlu1 %872  ;;  %vm3445_vm2 = vcmask 1042434  }
 0x182   :  { %v1438_v46 = vmul.f32 0.015625, %v873_v54  ;;  %v870_v1 = vpop.xlane.xlu0 %869  ;;  %vm3447_vm3 = vcmask 1043459  }
 0x183   :  { %v2380_v40 = vsel %vm2207_vm8, %v2379_v0, %v5842_v41  ;;  %v1961_v9 = vunpack.c.l.b16 %v1664_v25  ;;  %v1962_v43 = vunpack.c.h.b16 %v1664_v25  ;;  %v1437_v22 = vmul.f32 0.015625, %v870_v1  ;;  %v4782_v41 = vld [vmem:[%s7022_s23 + $0x168] sm:$0xff]  }
 0x184   :  { %v6070_v5 = vsel %vm2214_vm9, %v2384_v18, %v2380_v40  ;;  %614 = vadd.xlane.f32.xlu1 %v613_v58  ;;  %v4409_v62 = vunpack.c.h.bf16 %v4782_v41  ;;  %v4408_v52 = vunpack.c.l.bf16 %v4782_v41  ;;  %v4469_v40 = vunpack.c.h.bf16 %v4797_v27 }
 0x185   :  { %v2527_v14 = vrot.slane %v1961_v9, %v5702_v19  ;;  %v2532_v44 = vrot.slane %v1962_v43, %v5705_v20  ;;  %v1679_v32 = vpack.c.bf16 %v1438_v46, %v1437_v22  ;;  %611 = vadd.xlane.f32.xlu0 %v610_v50  ;;  %v1077_v13 = vpop.xlane.xlu1 %1076  ;;  %v2216_v41 = vadd.s32 4294967216, %v5368_v11 }
 0x186   :  { %v1506_v15 = vmul.f32 0.015625, %v1077_v13  ;;  %v1074_v53 = vpop.xlane.xlu0 %1073  ;;  %v841_v46 = vsel %vm567_vm0, %v4409_v62, 0.0  ;;  %v838_v22 = vsel %vm567_vm0, %v4408_v52, 0.0 }
 0x187   :  { %v2528_v61 = vsel %vm2193_vm6, %v2527_v14, %v5856_v4  ;;  %v1991_v21 = vunpack.c.l.b16 %v1679_v32  ;;  %v1992_v24 = vunpack.c.h.b16 %v1679_v32  ;;  %v1505_v2 = vmul.f32 0.015625, %v1074_v53 }
 0x188   :  { %v6082_v47 = vsel %vm2200_vm7, %v2532_v44, %v2528_v61  ;;  %662 = vadd.xlane.f32.xlu1 %v661_v8  ;;  %v748_v4 = vsel %vm567_vm0, %v4348_v38, 0.0  ;;  %v4468_v8 = vunpack.c.l.bf16 %v4797_v27 }
 0x189   :  { %v2675_v30 = vrot.slane %v1991_v21, %v5533_v55  ;;  %v2680_v31 = vrot.slane %v1992_v24, %v5536_v56  ;;  %v1713_v34 = vpack.c.bf16 %v1506_v15, %v1505_v2  ;;  %659 = vadd.xlane.f32.xlu0 %v658_v37  ;;  %v1167_v45 = vpop.xlane.xlu1 %1166  ;;  %v2223_v15 = vadd.s32 4294967208, %v5368_v11 }
 0x18a   :  { %v1536_v51 = vmul.f32 0.015625, %v1167_v45  ;;  %v1164_v36 = vpop.xlane.xlu0 %1163  ;;  %v928_v62 = vsel %vm567_vm0, %v4468_v8, 0.0 }
 0x18b   :  { %v2676_v0 = vsel %vm2179_vm4, %v2675_v30, %v5870_v26  ;;  %v2059_v18 = vunpack.c.l.b16 %v1713_v34  ;;  %v2060_v25 = vunpack.c.h.b16 %v1713_v34  ;;  %v1535_v54 = vmul.f32 0.015625, %v1164_v36  ;;  %v4808_v26 = vld [vmem:[%s7022_s23 + $0x238] sm:$0xff]  }
 0x18c   :  { %v6094_v58 = vsel %vm2186_vm5, %v2680_v31, %v2676_v0  ;;  %752 = vadd.xlane.f32.xlu1 %v751_v6  ;;  %v4513_v53 = vunpack.c.h.bf16 %v4808_v26  ;;  %v4512_v30 = vunpack.c.l.bf16 %v4808_v26  ;;  %v4816_v31 = vld [vmem:[%s7022_s23 + $0x278] sm:$0xff]   ;;  %v6126_v52 = vsub.s32 %v2223_v15, %v5377_v23 }
 0x18d   :  { %v3011_v1 = vrot.slane %v2059_v18, %v5922_v3  ;;  %v3016_v50 = vrot.slane %v2060_v25, %v5925_v48  ;;  %v1728_v57 = vpack.c.bf16 %v1536_v51, %v1535_v54  ;;  %749 = vadd.xlane.f32.xlu0 %v748_v4  ;;  %v1257_v49 = vpop.xlane.xlu1 %1256  ;;  %v6123_v4 = vsub.s32 %v2216_v41, %v5377_v23 }
 0x18e   :  { %v1566_v9 = vmul.f32 0.015625, %v1257_v49  ;;  %v1254_v43 = vpop.xlane.xlu0 %1253  ;;  %v997_v27 = vsel %vm567_vm0, %v4513_v53, 0.0  ;;  %v4545_v54 = vunpack.c.h.bf16 %v4816_v31  ;;  %v4544_v49 = vunpack.c.l.bf16 %v4816_v31 }
 0x18f   :  { %v3012_v14 = vsel %vm2207_vm8, %v3011_v1, %v5889_v39  ;;  %v2089_v44 = vunpack.c.l.b16 %v1728_v57  ;;  %v2090_v32 = vunpack.c.h.b16 %v1728_v57  ;;  %v1565_v13 = vmul.f32 0.015625, %v1254_v43 }
 0x190   :  { %v6106_v12 = vsel %vm2214_vm9, %v3016_v50, %v3012_v14  ;;  %842 = vadd.xlane.f32.xlu1 %v841_v46  ;;  %v931_v39 = vsel %vm567_vm0, %v4469_v40, 0.0  ;;  %v4831_v46 = vld [vmem:[%s7022_s23 + $0x2f0] sm:$0xff]   ;;  %v994_v57 = vsel %vm567_vm0, %v4512_v30, 0.0  ;;  %v1045_v41 = vsel %vm567_vm0, %v4545_v54, 0.0 }
 0x191   :  { %v3159_v37 = vrot.slane %v2089_v44, %v5702_v19  ;;  %v3164_v38 = vrot.slane %v2090_v32, %v5705_v20  ;;  %v1743_v61 = vpack.c.bf16 %v1566_v9, %v1565_v13  ;;  %839 = vadd.xlane.f32.xlu0 %v838_v22  ;;  %v603_v21 = vpop.xlane.xlu1 %602  ;;  %v4605_v8 = vunpack.c.h.bf16 %v4831_v46 }
 0x192   :  { %v1348_v24 = vmul.f32 0.015625, %v603_v21  ;;  %v600_v2 = vpop.xlane.xlu0 %599  ;;  %v1042_v53 = vsel %vm567_vm0, %v4544_v49, 0.0 }
 0x193   :  { %v3160_v34 = vsel %vm2193_vm6, %v3159_v37, %v5903_v35  ;;  %v2119_v45 = vunpack.c.l.b16 %v1743_v61  ;;  %v2120_v6 = vunpack.c.h.b16 %v1743_v61  ;;  %v1347_v51 = vmul.f32 0.015625, %v600_v2 }
 0x194   :  { %v6120_v36 = vsel %vm2200_vm7, %v3164_v38, %v3160_v34  ;;  %932 = vadd.xlane.f32.xlu1 %v931_v39  ;;  %v4604_v37 = vunpack.c.l.bf16 %v4831_v46  ;;  %v4846_v38 = vld [vmem:[%s7022_s23 + $0x368] sm:$0xff]  }
 0x195   :  { %v3307_v0 = vrot.slane %v2119_v45, %v5533_v55  ;;  %v3312_v18 = vrot.slane %v2120_v6, %v5536_v56  ;;  %v1634_v35 = vpack.c.bf16 %v1348_v24, %v1347_v51  ;;  %929 = vadd.xlane.f32.xlu0 %v928_v62  ;;  %v651_v25 = vpop.xlane.xlu1 %650  ;;  %v1135_v62 = vsel %vm567_vm0, %v4605_v8, 0.0 }
 0x196   :  { %v1364_v1 = vmul.f32 0.015625, %v651_v25  ;;  %v648_v50 = vpop.xlane.xlu0 %647  ;;  %v4665_v6 = vunpack.c.h.bf16 %v4846_v38 }
 0x197   :  { %v3308_v40 = vsel %vm2179_vm4, %v3307_v0, %v5919_v63  ;;  %v1901_v26 = vunpack.c.l.b16 %v1634_v35  ;;  %v1902_v9 = vunpack.c.h.b16 %v1634_v35  ;;  %v1363_v43 = vmul.f32 0.015625, %v648_v50 }
 0x198   :  { %v6138_v22 = vsel %vm2186_vm5, %v3312_v18, %v3308_v40  ;;  %998 = vadd.xlane.f32.xlu1 %v997_v27  ;;  %v1132_v0 = vsel %vm567_vm0, %v4604_v37, 0.0  ;;  %v4664_v18 = vunpack.c.l.bf16 %v4846_v38 }
 0x199   :  { %v2220_v14 = vrot.slane %v1901_v26, %v6123_v4  ;;  %v2227_v44 = vrot.slane %v1902_v9, %v6126_v52  ;;  %v1642_v32 = vpack.c.bf16 %v1364_v1, %v1363_v43  ;;  %995 = vadd.xlane.f32.xlu0 %v994_v57  ;;  %v741_v13 = vpop.xlane.xlu1 %740  ;;  %v1225_v9 = vsel %vm567_vm0, %v4665_v6, 0.0 }
 0x19a   :  { %v1394_v63 = vmul.f32 0.015625, %v741_v13  ;;  %v738_v15 = vpop.xlane.xlu0 %737 }
 0x19b   :  { %v2222_v61 = vsel %vm2221_vm10, %v2220_v14, %v5942_v17  ;;  %v1917_v21 = vunpack.c.l.b16 %v1642_v32  ;;  %v1918_v39 = vunpack.c.h.b16 %v1642_v32  ;;  %v1393_v24 = vmul.f32 0.015625, %v738_v15  ;;  %v4861_v17 = vld [vmem:[%s7022_s23 + $0x3e0] sm:$0xff]  }
 0x19c   :  { %v6150_v2 = vsel %vm2228_vm11, %v2227_v44, %v2222_v61  ;;  %1046 = vadd.xlane.f32.xlu1 %v1045_v41  ;;  %v4725_v50 = vunpack.c.h.bf16 %v4861_v17  ;;  %v4724_v14 = vunpack.c.l.bf16 %v4861_v17  ;;  %v4760_v44 = vld [vmem:[%s7022_s23 + $0xb8] sm:$0xff]  }
 0x19d   :  { %v2310_v30 = vrot.slane %v1917_v21, %v6123_v4  ;;  %v2315_v31 = vrot.slane %v1918_v39, %v6126_v52  ;;  %v1657_v34 = vpack.c.bf16 %v1394_v63, %v1393_v24  ;;  %1043 = vadd.xlane.f32.xlu0 %v1042_v53  ;;  %v831_v45 = vpop.xlane.xlu1 %830  ;;  %v4321_v39 = vunpack.c.h.bf16 %v4760_v44 }
 0x19e   :  { %v1424_v51 = vmul.f32 0.015625, %v831_v45  ;;  %v828_v27 = vpop.xlane.xlu0 %827  ;;  %v1315_v53 = vsel %vm567_vm0, %v4725_v50, 0.0 }
 0x19f   :  { %v2311_v35 = vsel %vm2221_vm10, %v2310_v30, %v5954_v10  ;;  %v1947_v25 = vunpack.c.l.b16 %v1657_v34  ;;  %v1948_v54 = vunpack.c.h.b16 %v1657_v34  ;;  %v1423_v46 = vmul.f32 0.015625, %v828_v27 }
 0x1a0   :  { %v6162_v1 = vsel %vm2228_vm11, %v2315_v31, %v2311_v35  ;;  %1136 = vadd.xlane.f32.xlu1 %v1135_v62  ;;  %v1222_v10 = vsel %vm567_vm0, %v4664_v18, 0.0  ;;  %v1312_v30 = vsel %vm567_vm0, %v4724_v14, 0.0  ;;  %v4320_v31 = vunpack.c.l.bf16 %v4760_v44 }
 0x1a1   :  { %v2458_v57 = vrot.slane %v1947_v25, %v5922_v3  ;;  %v2463_v49 = vrot.slane %v1948_v54, %v5925_v48  ;;  %v1672_v40 = vpack.c.bf16 %v1424_v51, %v1423_v46  ;;  %1133 = vadd.xlane.f32.xlu0 %v1132_v0  ;;  %v921_v26 = vpop.xlane.xlu1 %920  ;;  %v709_v54 = vsel %vm567_vm0, %v4321_v39, 0.0 }
 0x1a2   :  { %v1454_v43 = vmul.f32 0.015625, %v921_v26  ;;  %v918_v8 = vpop.xlane.xlu0 %917 }
 0x1a3   :  { %v2459_v32 = vsel %vm2207_vm8, %v2458_v57, %v5968_v42  ;;  %v1977_v13 = vunpack.c.l.b16 %v1672_v40  ;;  %v1978_v41 = vunpack.c.h.b16 %v1672_v40  ;;  %v1453_v63 = vmul.f32 0.015625, %v918_v8  ;;  %v4775_v42 = vld [vmem:[%s7022_s23 + $0x130] sm:$0xff]  }
 0x1a4   :  { %v6174_v15 = vsel %vm2214_vm9, %v2463_v49, %v2459_v32  ;;  %1226 = vadd.xlane.f32.xlu1 %v1225_v9  ;;  %v4381_v27 = vunpack.c.h.bf16 %v4775_v42  ;;  %v4380_v57 = vunpack.c.l.bf16 %v4775_v42  ;;  %v4790_v49 = vld [vmem:[%s7022_s23 + $0x1a8] sm:$0xff]  }
 0x1a5   :  { %v2606_v37 = vrot.slane %v1977_v13, %v5702_v19  ;;  %v2611_v38 = vrot.slane %v1978_v41, %v5705_v20  ;;  %v1687_v61 = vpack.c.bf16 %v1454_v43, %v1453_v63  ;;  %1223 = vadd.xlane.f32.xlu0 %v1222_v10  ;;  %v987_v21 = vpop.xlane.xlu1 %986  ;;  %v4441_v41 = vunpack.c.h.bf16 %v4790_v49 }
 0x1a6   :  { %v1476_v24 = vmul.f32 0.015625, %v987_v21  ;;  %v984_v62 = vpop.xlane.xlu0 %983  ;;  %v799_v10 = vsel %vm567_vm0, %v4381_v27, 0.0 }
 0x1a7   :  { %v2607_v34 = vsel %vm2193_vm6, %v2606_v37, %v5982_v60  ;;  %v2007_v45 = vunpack.c.l.b16 %v1687_v61  ;;  %v2008_v6 = vunpack.c.h.b16 %v1687_v61  ;;  %v1475_v17 = vmul.f32 0.015625, %v984_v62 }
 0x1a8   :  { %v6186_v51 = vsel %vm2200_vm7, %v2611_v38, %v2607_v34  ;;  %1316 = vadd.xlane.f32.xlu1 %v1315_v53  ;;  %v706_v60 = vsel %vm567_vm0, %v4320_v31, 0.0  ;;  %v796_v37 = vsel %vm567_vm0, %v4380_v57, 0.0  ;;  %v4440_v38 = vunpack.c.l.bf16 %v4790_v49 }
 0x1a9   :  { %v2754_v0 = vrot.slane %v2007_v45, %v5533_v55  ;;  %v2759_v18 = vrot.slane %v2008_v6, %v5536_v56  ;;  %v1698_v35 = vpack.c.bf16 %v1476_v24, %v1475_v17  ;;  %1313 = vadd.xlane.f32.xlu0 %v1312_v30  ;;  %v1035_v25 = vpop.xlane.xlu1 %1034  ;;  %v889_v6 = vsel %vm567_vm0, %v4441_v41, 0.0 }
 0x1aa   :  { %v1492_v46 = vmul.f32 0.015625, %v1035_v25  ;;  %v1032_v50 = vpop.xlane.xlu0 %1031 }
 0x1ab   :  { %v2755_v40 = vsel %vm2179_vm4, %v2754_v0, %v5994_v33  ;;  %v2029_v26 = vunpack.c.l.b16 %v1698_v35  ;;  %v2030_v9 = vunpack.c.h.b16 %v1698_v35  ;;  %v1491_v43 = vmul.f32 0.015625, %v1032_v50  ;;  %v4824_v33 = vld [vmem:[%s7022_s23 + $0x2b8] sm:$0xff]  }
 0x1ac   :  { %v6198_v8 = vsel %vm2186_vm5, %v2759_v18, %v2755_v40  ;;  %710 = vadd.xlane.f32.xlu1 %v709_v54  ;;  %v4577_v62 = vunpack.c.h.bf16 %v4824_v33  ;;  %v4576_v0 = vunpack.c.l.bf16 %v4824_v33  ;;  %v4839_v18 = vld [vmem:[%s7022_s23 + $0x330] sm:$0xff]  }
 0x1ad   :  { %v2863_v14 = vrot.slane %v2029_v26, %v6123_v4  ;;  %v2868_v44 = vrot.slane %v2030_v9, %v6126_v52  ;;  %v1706_v32 = vpack.c.bf16 %v1492_v46, %v1491_v43  ;;  %707 = vadd.xlane.f32.xlu0 %v706_v60  ;;  %v1125_v13 = vpop.xlane.xlu1 %1124  ;;  %v4637_v9 = vunpack.c.h.bf16 %v4839_v18 }
 0x1ae   :  { %v1522_v63 = vmul.f32 0.015625, %v1125_v13  ;;  %v1122_v53 = vpop.xlane.xlu0 %1121  ;;  %v1093_v60 = vsel %vm567_vm0, %v4577_v62, 0.0 }
 0x1af   :  { %v2864_v61 = vsel %vm2221_vm10, %v2863_v14, %v6006_v59  ;;  %v2045_v21 = vunpack.c.l.b16 %v1706_v32  ;;  %v2046_v39 = vunpack.c.h.b16 %v1706_v32  ;;  %v1521_v42 = vmul.f32 0.015625, %v1122_v53 }
 0x1b0   :  { %v6210_v24 = vsel %vm2228_vm11, %v2868_v44, %v2864_v61  ;;  %800 = vadd.xlane.f32.xlu1 %v799_v10  ;;  %v886_v59 = vsel %vm567_vm0, %v4440_v38, 0.0  ;;  %v1090_v14 = vsel %vm567_vm0, %v4576_v0, 0.0  ;;  %v4636_v44 = vunpack.c.l.bf16 %v4839_v18 }
 0x1b1   :  { %v2942_v30 = vrot.slane %v2045_v21, %v6123_v4  ;;  %v2947_v31 = vrot.slane %v2046_v39, %v6126_v52  ;;  %v1721_v34 = vpack.c.bf16 %v1522_v63, %v1521_v42  ;;  %797 = vadd.xlane.f32.xlu0 %v796_v37  ;;  %v1215_v45 = vpop.xlane.xlu1 %1214  ;;  %v1183_v39 = vsel %vm567_vm0, %v4637_v9, 0.0 }
 0x1b2   :  { %v1552_v17 = vmul.f32 0.015625, %v1215_v45  ;;  %v1212_v27 = vpop.xlane.xlu0 %1211 }
 0x1b3   :  { %v2943_v35 = vsel %vm2221_vm10, %v2942_v30, %v6018_v29  ;;  %v2075_v25 = vunpack.c.l.b16 %v1721_v34  ;;  %v2076_v54 = vunpack.c.h.b16 %v1721_v34  ;;  %v1551_v46 = vmul.f32 0.015625, %v1212_v27  ;;  %v4854_v29 = vld [vmem:[%s7022_s23 + $0x3a8] sm:$0xff]  }
 0x1b4   :  { %v6222_v50 = vsel %vm2228_vm11, %v2947_v31, %v2943_v35  ;;  %890 = vadd.xlane.f32.xlu1 %v889_v6  ;;  %v4697_v53 = vunpack.c.h.bf16 %v4854_v29  ;;  %v4696_v30 = vunpack.c.l.bf16 %v4854_v29  ;;  %v4768_v31 = vld [vmem:[%s7022_s23 + $0xf8] sm:$0xff]  }
 0x1b5   :  { %v3090_v57 = vrot.slane %v2075_v25, %v5922_v3  ;;  %v3095_v49 = vrot.slane %v2076_v54, %v5925_v48  ;;  %v1736_v40 = vpack.c.bf16 %v1552_v17, %v1551_v46  ;;  %887 = vadd.xlane.f32.xlu0 %v886_v59  ;;  %v1305_v26 = vpop.xlane.xlu1 %1304  ;;  %v4353_v54 = vunpack.c.h.bf16 %v4768_v31 }
 0x1b6   :  { %v1582_v43 = vmul.f32 0.015625, %v1305_v26  ;;  %v1302_v10 = vpop.xlane.xlu0 %1301  ;;  %v1273_v59 = vsel %vm567_vm0, %v4697_v53, 0.0  ;;  %v4798_v53 = vld [vmem:[%s7022_s23 + $0x1e8] sm:$0xff]  }
 0x1b7   :  { %v3091_v32 = vsel %vm2207_vm8, %v3090_v57, %v6032_v16  ;;  %v2105_v13 = vunpack.c.l.b16 %v1736_v40  ;;  %v2106_v41 = vunpack.c.h.b16 %v1736_v40  ;;  %v1581_v33 = vmul.f32 0.015625, %v1302_v10 }
 0x1b8   :  { %v6234_v63 = vsel %vm2214_vm9, %v3095_v49, %v3091_v32  ;;  %1094 = vadd.xlane.f32.xlu1 %v1093_v60  ;;  %v1180_v16 = vsel %vm567_vm0, %v4636_v44, 0.0  ;;  %v1270_v57 = vsel %vm567_vm0, %v4696_v30, 0.0  ;;  %v4352_v49 = vunpack.c.l.bf16 %v4768_v31 }
 0x1b9   :  { %v3238_v37 = vrot.slane %v2105_v13, %v5702_v19  ;;  %v3243_v38 = vrot.slane %v2106_v41, %v5705_v20  ;;  %v1751_v61 = vpack.c.bf16 %v1582_v43, %v1581_v33  ;;  %1091 = vadd.xlane.f32.xlu0 %v1090_v14  ;;  %v699_v21 = vpop.xlane.xlu1 %698  ;;  %v757_v32 = vsel %vm567_vm0, %v4353_v54, 0.0 }
 0x1ba   :  { %v1380_v42 = vmul.f32 0.015625, %v699_v21  ;;  %v696_v62 = vpop.xlane.xlu0 %695 }
 0x1bb   :  { %v3239_v34 = vsel %vm2193_vm6, %v3238_v37, %v6046_v28  ;;  %v2135_v45 = vunpack.c.l.b16 %v1751_v61  ;;  %v2136_v6 = vunpack.c.h.b16 %v1751_v61  ;;  %v1379_v17 = vmul.f32 0.015625, %v696_v62  ;;  %v4783_v28 = vld [vmem:[%s7022_s23 + $0x170] sm:$0xff]  }
 0x1bc   :  { %v6246_v27 = vsel %vm2200_vm7, %v3243_v38, %v3239_v34  ;;  %1184 = vadd.xlane.f32.xlu1 %v1183_v39  ;;  %v4413_v29 = vunpack.c.h.bf16 %v4783_v28  ;;  %v4412_v33 = vunpack.c.l.bf16 %v4783_v28  ;;  %v4473_v34 = vunpack.c.h.bf16 %v4798_v53 }
 0x1bd   :  { %v3386_v0 = vrot.slane %v2135_v45, %v5533_v55  ;;  %v3391_v18 = vrot.slane %v2136_v6, %v5536_v56  ;;  %v1650_v35 = vpack.c.bf16 %v1380_v42, %v1379_v17  ;;  %1181 = vadd.xlane.f32.xlu0 %v1180_v16  ;;  %v789_v25 = vpop.xlane.xlu1 %788 }
 0x1be   :  { %v1410_v46 = vmul.f32 0.015625, %v789_v25  ;;  %v786_v60 = vpop.xlane.xlu0 %785  ;;  %v847_v42 = vsel %vm567_vm0, %v4413_v29, 0.0  ;;  %v844_v17 = vsel %vm567_vm0, %v4412_v33, 0.0  ;;  %v4847_v29 = vld [vmem:[%s7022_s23 + $0x370] sm:$0xff]  }
 0x1bf   :  { %v3387_v40 = vsel %vm2179_vm4, %v3386_v0, %v6058_v7  ;;  %v1933_v26 = vunpack.c.l.b16 %v1650_v35  ;;  %v1934_v55 = vunpack.c.h.b16 %v1650_v35  ;;  %v1409_v9 = vmul.f32 0.015625, %v786_v60 }
 0x1c0   :  { %v6258_v56 = vsel %vm2186_vm5, %v3391_v18, %v3387_v40  ;;  %1274 = vadd.xlane.f32.xlu1 %v1273_v59  ;;  %v754_v7 = vsel %vm567_vm0, %v4352_v49, 0.0  ;;  %v4472_v59 = vunpack.c.l.bf16 %v4798_v53  ;;  %v937_v40 = vsel %vm567_vm0, %v4473_v34, 0.0 }
 0x1c1   :  { %v2389_v43 = vrot.slane %v1933_v26, %v6123_v4  ;;  %v2394_v10 = vrot.slane %v1934_v55, %v6126_v52  ;;  %v1665_v14 = vpack.c.bf16 %v1410_v46, %v1409_v9  ;;  %1271 = vadd.xlane.f32.xlu0 %v1270_v57  ;;  %v879_v44 = vpop.xlane.xlu1 %878  ;;  %vm3449_vm4 = vcmask 1044484  }
 0x1c2   :  { %v1440_v13 = vmul.f32 0.015625, %v879_v44  ;;  %v876_v41 = vpop.xlane.xlu0 %875  ;;  %vm3451_vm5 = vcmask 1045509  }
 0x1c3   :  { %v2390_v37 = vsel %vm2221_vm10, %v2389_v43, %v6070_v5  ;;  %v1963_v38 = vunpack.c.l.b16 %v1665_v14  ;;  %v1964_v61 = vunpack.c.h.b16 %v1665_v14  ;;  %v1439_v21 = vmul.f32 0.015625, %v876_v41  ;;  %v4832_v5 = vld [vmem:[%s7022_s23 + $0x2f8] sm:$0xff]  }
 0x1c4   :  { %v6270_v39 = vsel %vm2228_vm11, %v2394_v10, %v2390_v37  ;;  %758 = vadd.xlane.f32.xlu1 %v757_v32  ;;  %v4609_v28 = vunpack.c.h.bf16 %v4832_v5  ;;  %v4608_v9 = vunpack.c.l.bf16 %v4832_v5  ;;  %v4669_v37 = vunpack.c.h.bf16 %v4847_v29 }
 0x1c5   :  { %v2537_v62 = vrot.slane %v1963_v38, %v5922_v3  ;;  %v2542_v16 = vrot.slane %v1964_v61, %v5925_v48  ;;  %v1680_v30 = vpack.c.bf16 %v1440_v13, %v1439_v21  ;;  %755 = vadd.xlane.f32.xlu0 %v754_v7  ;;  %v1083_v31 = vpop.xlane.xlu1 %1082  ;;  %v2230_v5 = vadd.s32 4294967200, %v5368_v11 }
 0x1c6   :  { %v1508_v45 = vmul.f32 0.015625, %v1083_v31  ;;  %v1080_v6 = vpop.xlane.xlu0 %1079  ;;  %v1141_v13 = vsel %vm567_vm0, %v4609_v28, 0.0  ;;  %v1138_v21 = vsel %vm567_vm0, %v4608_v9, 0.0 }
 0x1c7   :  { %v2538_v0 = vsel %vm2207_vm8, %v2537_v62, %v6082_v47  ;;  %v1993_v18 = vunpack.c.l.b16 %v1680_v30  ;;  %v1994_v35 = vunpack.c.h.b16 %v1680_v30  ;;  %v1507_v25 = vmul.f32 0.015625, %v1080_v6 }
 0x1c8   :  { %v6282_v54 = vsel %vm2214_vm9, %v2542_v16, %v2538_v0  ;;  %848 = vadd.xlane.f32.xlu1 %v847_v42  ;;  %v934_v47 = vsel %vm567_vm0, %v4472_v59, 0.0  ;;  %v4668_v42 = vunpack.c.l.bf16 %v4847_v29 }
 0x1c9   :  { %v2685_v46 = vrot.slane %v1993_v18, %v5702_v19  ;;  %v2690_v60 = vrot.slane %v1994_v35, %v5705_v20  ;;  %v1714_v57 = vpack.c.bf16 %v1508_v45, %v1507_v25  ;;  %845 = vadd.xlane.f32.xlu0 %v844_v17  ;;  %v1173_v49 = vpop.xlane.xlu1 %1172  ;;  %v2237_v45 = vadd.s32 4294967192, %v5368_v11 }
 0x1ca   :  { %v1538_v26 = vmul.f32 0.015625, %v1173_v49  ;;  %v1170_v55 = vpop.xlane.xlu0 %1169  ;;  %v1228_v28 = vsel %vm567_vm0, %v4668_v42, 0.0 }
 0x1cb   :  { %v2686_v43 = vsel %vm2193_vm6, %v2685_v46, %v6094_v58  ;;  %v2061_v10 = vunpack.c.l.b16 %v1714_v57  ;;  %v2062_v14 = vunpack.c.h.b16 %v1714_v57  ;;  %v1537_v44 = vmul.f32 0.015625, %v1170_v55  ;;  %v4862_v58 = vld [vmem:[%s7022_s23 + $0x3e8] sm:$0xff]  }
 0x1cc   :  { %v6294_v32 = vsel %vm2200_vm7, %v2690_v60, %v2686_v43  ;;  %938 = vadd.xlane.f32.xlu1 %v937_v40  ;;  %v4729_v6 = vunpack.c.h.bf16 %v4862_v58  ;;  %v4728_v46 = vunpack.c.l.bf16 %v4862_v58  ;;  %v4776_v60 = vld [vmem:[%s7022_s23 + $0x138] sm:$0xff]   ;;  %v6326_v9 = vsub.s32 %v2237_v45, %v5377_v23 }
 0x1cd   :  { %v3021_v41 = vrot.slane %v2061_v10, %v6123_v4  ;;  %v3026_v7 = vrot.slane %v2062_v14, %v6126_v52  ;;  %v1729_v33 = vpack.c.bf16 %v1538_v26, %v1537_v44  ;;  %935 = vadd.xlane.f32.xlu0 %v934_v47  ;;  %v1263_v53 = vpop.xlane.xlu1 %1262  ;;  %v6323_v47 = vsub.s32 %v2230_v5, %v5377_v23  ;;  %v4840_v5 = vld [vmem:[%s7022_s23 + $0x338] sm:$0xff]  }
 0x1ce   :  { %v1568_v38 = vmul.f32 0.015625, %v1263_v53  ;;  %v1260_v61 = vpop.xlane.xlu0 %1259  ;;  %v1321_v29 = vsel %vm567_vm0, %v4729_v6, 0.0  ;;  %v4385_v44 = vunpack.c.h.bf16 %v4776_v60 }
 0x1cf   :  { %v3022_v62 = vsel %vm2221_vm10, %v3021_v41, %v6106_v12  ;;  %v2091_v16 = vunpack.c.l.b16 %v1729_v33  ;;  %v2092_v30 = vunpack.c.h.b16 %v1729_v33  ;;  %v1567_v31 = vmul.f32 0.015625, %v1260_v61  ;;  %v4791_v33 = vld [vmem:[%s7022_s23 + $0x1b0] sm:$0xff]  }
 0x1d0   :  { %v6306_v34 = vsel %vm2228_vm11, %v3026_v7, %v3022_v62  ;;  %1142 = vadd.xlane.f32.xlu1 %v1141_v13  ;;  %v1231_v12 = vsel %vm567_vm0, %v4669_v37, 0.0  ;;  %v1318_v41 = vsel %vm567_vm0, %v4728_v46, 0.0  ;;  %v4384_v7 = vunpack.c.l.bf16 %v4776_v60 }
 0x1d1   :  { %v3169_v17 = vrot.slane %v2091_v16, %v5922_v3  ;;  %v3174_v59 = vrot.slane %v2092_v30, %v5925_v48  ;;  %v1744_v0 = vpack.c.bf16 %v1568_v38, %v1567_v31  ;;  %1139 = vadd.xlane.f32.xlu0 %v1138_v21  ;;  %v609_v18 = vpop.xlane.xlu1 %608  ;;  %v805_v62 = vsel %vm567_vm0, %v4385_v44, 0.0 }
 0x1d2   :  { %v1350_v35 = vmul.f32 0.015625, %v609_v18  ;;  %v606_v25 = vpop.xlane.xlu0 %605  ;;  %v4445_v16 = vunpack.c.h.bf16 %v4791_v33  ;;  %v4444_v31 = vunpack.c.l.bf16 %v4791_v33 }
 0x1d3   :  { %v3170_v57 = vsel %vm2207_vm8, %v3169_v17, %v6120_v36  ;;  %v2121_v49 = vunpack.c.l.b16 %v1744_v0  ;;  %v2122_v40 = vunpack.c.h.b16 %v1744_v0  ;;  %v1349_v26 = vmul.f32 0.015625, %v606_v25  ;;  %v4855_v25 = vld [vmem:[%s7022_s23 + $0x3b0] sm:$0xff]  }
 0x1d4   :  { %v6320_v55 = vsel %vm2214_vm9, %v3174_v59, %v3170_v57  ;;  %1232 = vadd.xlane.f32.xlu1 %v1231_v12  ;;  %v895_v59 = vsel %vm567_vm0, %v4445_v16, 0.0  ;;  %v4641_v0 = vunpack.c.h.bf16 %v4840_v5  ;;  %v892_v12 = vsel %vm567_vm0, %v4444_v31, 0.0 }
 0x1d5   :  { %v3317_v43 = vrot.slane %v2121_v49, %v5702_v19  ;;  %v3322_v10 = vrot.slane %v2122_v40, %v5705_v20  ;;  %v1635_v36 = vpack.c.bf16 %v1350_v35, %v1349_v26  ;;  %1229 = vadd.xlane.f32.xlu0 %v1228_v28  ;;  %v6331_v14 = vpop.xlane.xlu1 %656  ;;  %v4640_v35 = vunpack.c.l.bf16 %v4840_v5  ;;  %v4784_v40 = vld [vmem:[%s7022_s23 + $0x178] sm:$0xff]  }
 0x1d6   :  { %v6333_v13 = vpop.xlane.xlu0 %653  ;;  %v1189_v28 = vsel %vm567_vm0, %v4641_v0, 0.0  ;;  %v4701_v46 = vunpack.c.h.bf16 %v4855_v25  ;;  %v4700_v49 = vunpack.c.l.bf16 %v4855_v25  ;;  %v4416_v44 = vunpack.c.l.bf16 %v4784_v40 }
 0x1d7   :  { %v3318_v53 = vsel %vm2193_vm6, %v3317_v43, %v6138_v22  ;;  %v1903_v37 = vunpack.c.l.b16 %v1635_v36  ;;  %v1904_v58 = vunpack.c.h.b16 %v1635_v36  ;;  %v802_v22 = vsel %vm567_vm0, %v4384_v7, 0.0 }
 0x1d8   :  { %v6342_v38 = vsel %vm2200_vm7, %v3322_v10, %v3318_v53  ;;  %1322 = vadd.xlane.f32.xlu1 %v1321_v29  ;;  %v1186_v57 = vsel %vm567_vm0, %v4640_v35, 0.0  ;;  %v1279_v29 = vsel %vm567_vm0, %v4701_v46, 0.0  ;;  %v4417_v43 = vunpack.c.h.bf16 %v4784_v40 }
 0x1d9   :  { %v2234_v61 = vrot.slane %v1903_v37, %v6323_v47  ;;  %v2241_v21 = vrot.slane %v1904_v58, %v6326_v9  ;;  %1319 = vadd.xlane.f32.xlu0 %v1318_v41  ;;  %v6346_v42 = vpop.xlane.xlu1 %746  ;;  %v1276_v36 = vsel %vm567_vm0, %v4700_v49, 0.0  ;;  %v4799_v41 = vld [vmem:[%s7022_s23 + $0x1f0] sm:$0xff]   ;;  %v850_v58 = vsel %vm567_vm0, %v4416_v44, 0.0 }
 0x1da   :  { %v6349_v30 = vpop.xlane.xlu0 %743  ;;  %v853_v33 = vsel %vm567_vm0, %v4417_v43, 0.0  ;;  %v4477_v53 = vunpack.c.h.bf16 %v4799_v41 }
 0x1db   :  { %v2236_v45 = vsel %vm2235_vm12, %v2234_v61, %v6150_v2  ;;  %v4476_v61 = vunpack.c.l.bf16 %v4799_v41 }
 0x1dc   :  { %v6358_v6 = vsel %vm2242_vm13, %v2241_v21, %v2236_v45  ;;  %806 = vadd.xlane.f32.xlu1 %v805_v62  ;;  %v4848_v21 = vld [vmem:[%s7022_s23 + $0x378] sm:$0xff]   ;;  %v943_v16 = vsel %vm567_vm0, %v4477_v53, 0.0 }
 0x1dd   :  { %803 = vadd.xlane.f32.xlu0 %v802_v22  ;;  %v6360_v17 = vpop.xlane.xlu1 %836  ;;  %v4673_v22 = vunpack.c.h.bf16 %v4848_v21  ;;  %v940_v5 = vsel %vm567_vm0, %v4476_v61, 0.0  ;;  %v4672_v45 = vunpack.c.l.bf16 %v4848_v21 }
 0x1de   :  { %v6363_v18 = vpop.xlane.xlu0 %833 }
 0x1e0   :  { %896 = vadd.xlane.f32.xlu1 %v895_v59  ;;  %v4863_v59 = vld [vmem:[%s7022_s23 + $0x3f0] sm:$0xff]  }
 0x1e1   :  { %893 = vadd.xlane.f32.xlu0 %v892_v12  ;;  %v6369_v2 = vpop.xlane.xlu1 %926  ;;  %v1237_v12 = vsel %vm567_vm0, %v4673_v22, 0.0  ;;  %v4733_v35 = vunpack.c.h.bf16 %v4863_v59  ;;  %v4732_v46 = vunpack.c.l.bf16 %v4863_v59  ;;  %v4800_v22 = vld [vmem:[%s7022_s23 + $0x1f8] sm:$0xff]  }
 0x1e2   :  { %v6372_v60 = vpop.xlane.xlu0 %923 }
 0x1e3   :  { %v1327_v40 = vsel %vm567_vm0, %v4733_v35, 0.0  ;;  %v1324_v44 = vsel %vm567_vm0, %v4732_v46, 0.0 }
 0x1e4   :  { %1190 = vadd.xlane.f32.xlu1 %v1189_v28  ;;  %v1234_v28 = vsel %vm567_vm0, %v4672_v45, 0.0 }
 0x1e5   :  { %1187 = vadd.xlane.f32.xlu0 %v1186_v57  ;;  %v6378_v26 = vpop.xlane.xlu1 %992  ;;  %v4792_v57 = vld [vmem:[%s7022_s23 + $0x1b8] sm:$0xff]  }
 0x1e6   :  { %v6381_v10 = vpop.xlane.xlu0 %989  ;;  %v4448_v41 = vunpack.c.l.bf16 %v4792_v57 }
 0x1e8   :  { %1280 = vadd.xlane.f32.xlu1 %v1279_v29  ;;  %v4449_v29 = vunpack.c.h.bf16 %v4792_v57  ;;  %v898_v59 = vsel %vm567_vm0, %v4448_v41, 0.0  ;;  %v4481_v57 = vunpack.c.h.bf16 %v4800_v22  ;;  %v4480_v41 = vunpack.c.l.bf16 %v4800_v22 }
 0x1e9   :  { %1277 = vadd.xlane.f32.xlu0 %v1276_v36  ;;  %v6387_v7 = vpop.xlane.xlu1 %1040 }
 0x1ea   :  { %v6390_v37 = vpop.xlane.xlu0 %1037  ;;  %v901_v21 = vsel %vm567_vm0, %v4449_v29, 0.0  ;;  %v949_v22 = vsel %vm567_vm0, %v4481_v57, 0.0 }
 0x1ec   :  { %854 = vadd.xlane.f32.xlu1 %v853_v33  ;;  %v4856_v33 = vld [vmem:[%s7022_s23 + $0x3b8] sm:$0xff]  }
 0x1ed   :  { %851 = vadd.xlane.f32.xlu0 %v850_v58  ;;  %v6396_v62 = vpop.xlane.xlu1 %1130 }
 0x1ee   :  { %v6399_v31 = vpop.xlane.xlu0 %1127 }
 0x1f0   :  { %944 = vadd.xlane.f32.xlu1 %v943_v16  ;;  %v4705_v16 = vunpack.c.h.bf16 %v4856_v33 }
 0x1f1   :  { %941 = vadd.xlane.f32.xlu0 %v940_v5  ;;  %v6405_v0 = vpop.xlane.xlu1 %1220 }
 0x1f2   :  { %v6408_v25 = vpop.xlane.xlu0 %1217 }
 0x1f4   :  { %1238 = vadd.xlane.f32.xlu1 %v1237_v12  ;;  %v4704_v12 = vunpack.c.l.bf16 %v4856_v33  ;;  %v4864_v33 = vld [vmem:[%s7022_s23 + $0x3f8] sm:$0xff]  }
 0x1f5   :  { %1235 = vadd.xlane.f32.xlu0 %v1234_v28  ;;  %v1311_v49 = vpop.xlane.xlu1 %1310 }
 0x1f6   :  { %v1584_v43 = vmul.f32 0.015625, %v1311_v49  ;;  %v1308_v36 = vpop.xlane.xlu0 %1307 }
 0x1f7   :  { %v1583_v53 = vmul.f32 0.015625, %v1308_v36  ;;  %v1285_v36 = vsel %vm567_vm0, %v4705_v16, 0.0 }
 0x1f8   :  { %1328 = vadd.xlane.f32.xlu1 %v1327_v40 }
 0x1f9   :  { %v1752_v58 = vpack.c.bf16 %v1584_v43, %v1583_v53  ;;  %1325 = vadd.xlane.f32.xlu0 %v1324_v44  ;;  %v705_v61 = vpop.xlane.xlu1 %704 }
 0x1fa   :  { %v1382_v5 = vmul.f32 0.015625, %v705_v61  ;;  %v702_v45 = vpop.xlane.xlu0 %701  ;;  %v1282_v61 = vsel %vm567_vm0, %v4704_v12, 0.0 }
 0x1fb   :  { %v2137_v35 = vunpack.c.l.b16 %v1752_v58  ;;  %v2138_v28 = vunpack.c.h.b16 %v1752_v58  ;;  %v1381_v46 = vmul.f32 0.015625, %v702_v45 }
 0x1fc   :  { %902 = vadd.xlane.f32.xlu1 %v901_v21 }
 0x1fd   :  { %v3396_v49 = vrot.slane %v2137_v35, %v5702_v19  ;;  %v3401_v40 = vrot.slane %v2138_v28, %v5705_v20  ;;  %v1651_v29 = vpack.c.bf16 %v1382_v5, %v1381_v46  ;;  %899 = vadd.xlane.f32.xlu0 %v898_v59  ;;  %v795_v43 = vpop.xlane.xlu1 %794  ;;  %v1366_v5 = vmul.f32 0.015625, %v6331_v14 }
 0x1fe   :  { %v1412_v44 = vmul.f32 0.015625, %v795_v43  ;;  %v792_v53 = vpop.xlane.xlu0 %791  ;;  %v1365_v59 = vmul.f32 0.015625, %v6333_v13  ;;  %v946_v14 = vsel %vm567_vm0, %v4480_v41, 0.0  ;;  %v4998_v13 = vld [vmem:[%s7007_s4] sm:$0xff]  }
 0x1ff   :  { %v3397_v58 = vsel %vm2193_vm6, %v3396_v49, %v6258_v56  ;;  %v1935_v21 = vunpack.c.l.b16 %v1651_v29  ;;  %v1936_v45 = vunpack.c.h.b16 %v1651_v29  ;;  %v1411_v35 = vmul.f32 0.015625, %v792_v53 }
 0x200   :  { %v6436_v16 = vsel %vm2200_vm7, %v3401_v40, %v3397_v58  ;;  %1286 = vadd.xlane.f32.xlu1 %v1285_v36  ;;  %v4737_v49 = vunpack.c.h.bf16 %v4864_v33  ;;  %v4736_v53 = vunpack.c.l.bf16 %v4864_v33 }
 0x201   :  { %v2399_v12 = vrot.slane %v1935_v21, %v6323_v47  ;;  %v2404_v28 = vrot.slane %v1936_v45, %v6326_v9  ;;  %v1666_v46 = vpack.c.bf16 %v1412_v44, %v1411_v35  ;;  %1283 = vadd.xlane.f32.xlu0 %v1282_v61  ;;  %v885_v56 = vpop.xlane.xlu1 %884  ;;  %v5084_v21 = vmov 0.0  }
 0x202   :  { %v1442_v29 = vmul.f32 0.015625, %v885_v56  ;;  %v882_v43 = vpop.xlane.xlu0 %881  ;;  %4903 = vmatprep.subr.bf16.mxu0 %v5084_v21  ;;  %4923 = vmatprep.subr.bf16.mxu1 %v5084_v21  ;;  %v6449_v44 = vpack.c.bf16 %v1366_v5, %v1365_v59  ;;  %v1333_v35 = vsel %vm567_vm0, %v4737_v49, 0.0  ;;  %v1330_v5 = vsel %vm567_vm0, %v4736_v53, 0.0  ;;  %v4999_v59 = vld [vmem:[%s7007_s4 + $0x8] sm:$0xff]  }
 0x203   :  { %v2400_v57 = vsel %vm2235_vm12, %v2399_v12, %v6270_v39  ;;  %v1965_v40 = vunpack.c.l.b16 %v1666_v46  ;;  %v1966_v36 = vunpack.c.h.b16 %v1666_v46  ;;  %v1441_v58 = vmul.f32 0.015625, %v882_v43  ;;  %4904 = vmatpush3.bf16.msra.mxu0 %v4998_v13  ;;  %4919 = vmatprep.mubr.msk.bf16.mxu0 %vm5085_vm1, %v5084_v21 }
 0x204   :  { %v6452_v61 = vsel %vm2242_vm13, %v2404_v28, %v2400_v57  ;;  %950 = vadd.xlane.f32.xlu1 %v949_v22  ;;  %4905 = vmatprep.subr.bf16.mxu0 %v5084_v21  ;;  %v1919_v43 = vunpack.c.l.b16 %v6449_v44  ;;  %v1396_v49 = vmul.f32 0.015625, %v6346_v42  ;;  %v1395_v53 = vmul.f32 0.015625, %v6349_v30  ;;  %v5000_v30 = vld [vmem:[%s7007_s4 + $0x10] sm:$0xff]  }
 0x205   :  { %v2547_v41 = vrot.slane %v1965_v40, %v6123_v4  ;;  %v2552_v33 = vrot.slane %v1966_v36, %v6126_v52  ;;  %v1681_v39 = vpack.c.bf16 %v1442_v29, %v1441_v58  ;;  %947 = vadd.xlane.f32.xlu0 %v946_v14  ;;  %v1089_v45 = vpop.xlane.xlu1 %1088  ;;  %v1426_v36 = vmul.f32 0.015625, %v6360_v17  ;;  %4939 = vmatprep.mubr.msk.bf16.mxu1 %vm5085_vm1, %v5084_v21 }
 0x206   :  { %v1510_v12 = vmul.f32 0.015625, %v1089_v45  ;;  %v1086_v46 = vpop.xlane.xlu0 %1085  ;;  %v1425_v42 = vmul.f32 0.015625, %v6363_v18  ;;  %v2320_v17 = vrot.slane %v1919_v43, %v6323_v47  ;;  %vm3443_vm0 = vcmask 1041409  }
 0x207   :  { %v2548_v22 = vsel %vm2221_vm10, %v2547_v41, %v6282_v54  ;;  %v1995_v28 = vunpack.c.l.b16 %v1681_v39  ;;  %v1996_v56 = vunpack.c.h.b16 %v1681_v39  ;;  %v1509_v29 = vmul.f32 0.015625, %v1086_v46  ;;  %4906 = vmatpush3.bf16.msra.mxu0 %v4999_v59 }
 0x208   :  { %v6467_v14 = vsel %vm2228_vm11, %v2552_v33, %v2548_v22  ;;  %1334 = vadd.xlane.f32.xlu1 %v1333_v35  ;;  %4907 = vmatprep.subr.bf16.mxu0 %v5084_v21  ;;  %v2244_v33 = vadd.s32 4294967184, %v5368_v11  ;;  %v1920_v46 = vunpack.c.h.b16 %v6449_v44  ;;  %v1658_v59 = vpack.c.bf16 %v1396_v49, %v1395_v53 }
 0x209   :  { %v2695_v13 = vrot.slane %v1995_v28, %v5922_v3  ;;  %v2700_v57 = vrot.slane %v1996_v56, %v5925_v48  ;;  %v1715_v40 = vpack.c.bf16 %v1510_v12, %v1509_v29  ;;  %1331 = vadd.xlane.f32.xlu0 %v1330_v5  ;;  %v1179_v54 = vpop.xlane.xlu1 %1178  ;;  %v2251_v5 = vadd.s32 4294967176, %v5368_v11  ;;  %v5001_v11 = vld [vmem:[%s7007_s4 + $0x18] sm:$0xff]  }
 0x20a   :  { %v1540_v58 = vmul.f32 0.015625, %v1179_v54  ;;  %v1176_v41 = vpop.xlane.xlu0 %1175  ;;  %v6490_v29 = vpack.c.bf16 %v1426_v36, %v1425_v42  ;;  %v6493_v43 = vsub.s32 %v2244_v33, %v5377_v23  ;;  %v2321_v54 = vsel %vm2235_vm12, %v2320_v17, %v6162_v1 }
 0x20b   :  { %v2696_v39 = vsel %vm2207_vm8, %v2695_v13, %v6294_v32  ;;  %v2063_v45 = vunpack.c.l.b16 %v1715_v40  ;;  %v2064_v35 = vunpack.c.h.b16 %v1715_v40  ;;  %v1539_v12 = vmul.f32 0.015625, %v1176_v41  ;;  %4908 = vmatpush3.bf16.msra.mxu0 %v5000_v30 }
 0x20c   :  { %v6484_v18 = vsel %vm2214_vm9, %v2700_v57, %v2696_v39  ;;  %4909 = vmatprep.subr.bf16.mxu0 %v5084_v21  ;;  %v2325_v36 = vrot.slane %v1920_v46, %v6326_v9  ;;  %v1949_v41 = vunpack.c.l.b16 %v1658_v59  ;;  %v1979_v1 = vunpack.c.l.b16 %v6490_v29 }
 0x20d   :  { %v3031_v22 = vrot.slane %v2063_v45, %v6323_v47  ;;  %v3036_v28 = vrot.slane %v2064_v35, %v6326_v9  ;;  %v1730_v56 = vpack.c.bf16 %v1540_v58, %v1539_v12  ;;  %v1269_v32 = vpop.xlane.xlu1 %1268  ;;  %v6507_v58 = vsub.s32 %v2251_v5, %v5377_v23  ;;  %v5002_v23 = vld [vmem:[%s7007_s4 + $0x20] sm:$0xff]  }
 0x20e   :  { %v1570_v44 = vmul.f32 0.015625, %v1269_v32  ;;  %v1266_v13 = vpop.xlane.xlu0 %1265  ;;  %v1456_v45 = vmul.f32 0.015625, %v6369_v2  ;;  %v1455_v35 = vmul.f32 0.015625, %v6372_v60  ;;  %v1950_v32 = vunpack.c.h.b16 %v1658_v59 }
 0x20f   :  { %v3032_v49 = vsel %vm2235_vm12, %v3031_v22, %v6306_v34  ;;  %v2093_v53 = vunpack.c.l.b16 %v1730_v56  ;;  %v2094_v57 = vunpack.c.h.b16 %v1730_v56  ;;  %v1569_v40 = vmul.f32 0.015625, %v1266_v13  ;;  %4910 = vmatpush3.bf16.msra.mxu0 %v5001_v11 }
 0x210   :  { %v6504_v42 = vsel %vm2242_vm13, %v3036_v28, %v3032_v49  ;;  %4911 = vmatprep.subr.bf16.mxu0 %v5084_v21  ;;  %v6521_v56 = vsel %vm2242_vm13, %v2325_v36, %v2321_v54  ;;  %v2468_v60 = vrot.slane %v1949_v41, %v6123_v4  ;;  %v1980_v49 = vunpack.c.h.b16 %v6490_v29  ;;  %v5003_v54 = vld [vmem:[%s7007_s4 + $0x28] sm:$0xff]  }
 0x211   :  { %v3179_v33 = vrot.slane %v2093_v53, %v6123_v4  ;;  %v3184_v34 = vrot.slane %v2094_v57, %v6126_v52  ;;  %v1745_v30 = vpack.c.bf16 %v1570_v44, %v1569_v40  ;;  %v615_v39 = vpop.xlane.xlu1 %614  ;;  %v2616_v53 = vrot.slane %v1979_v1, %v5922_v3 }
 0x212   :  { %v1352_v12 = vmul.f32 0.015625, %v615_v39  ;;  %v612_v46 = vpop.xlane.xlu0 %611  ;;  %v6532_v59 = vpack.c.bf16 %v1456_v45, %v1455_v35  ;;  %v1478_v29 = vmul.f32 0.015625, %v6378_v26  ;;  %v1477_v39 = vmul.f32 0.015625, %v6381_v10 }
 0x213   :  { %v3180_v17 = vsel %vm2221_vm10, %v3179_v33, %v6320_v55  ;;  %v2123_v5 = vunpack.c.l.b16 %v1745_v30  ;;  %v2124_v22 = vunpack.c.h.b16 %v1745_v30  ;;  %v1351_v28 = vmul.f32 0.015625, %v612_v46  ;;  %4912 = vmatpush3.bf16.msra.mxu0 %v5002_v23 }
 0x214   :  { %v6524_v2 = vsel %vm2228_vm11, %v3184_v34, %v3180_v17  ;;  %4913 = vmatprep.subr.bf16.mxu0 %v5084_v21  ;;  %v2473_v30 = vrot.slane %v1950_v32, %v6126_v52  ;;  %v2469_v45 = vsel %vm2221_vm10, %v2468_v60, %v6174_v15  ;;  %v2617_v26 = vsel %vm2207_vm8, %v2616_v53, %v6186_v51  ;;  %v5004_v15 = vld [vmem:[%s7007_s4 + $0x30] sm:$0xff]  }
 0x215   :  { %v3327_v44 = vrot.slane %v2123_v5, %v5922_v3  ;;  %v3332_v13 = vrot.slane %v2124_v22, %v5925_v48  ;;  %v1636_v11 = vpack.c.bf16 %v1352_v12, %v1351_v28  ;;  %v663_v55 = vpop.xlane.xlu1 %662  ;;  %v2621_v10 = vrot.slane %v1980_v49, %v5925_v48 }
 0x216   :  { %v1368_v57 = vmul.f32 0.015625, %v663_v55  ;;  %v660_v40 = vpop.xlane.xlu0 %659  ;;  %v2009_v23 = vunpack.c.l.b16 %v6532_v59  ;;  %v1494_v51 = vmul.f32 0.015625, %v6387_v7 }
 0x217   :  { %v3328_v36 = vsel %vm2207_vm8, %v3327_v44, %v6342_v38  ;;  %v1905_v41 = vunpack.c.l.b16 %v1636_v11  ;;  %v1906_v33 = vunpack.c.h.b16 %v1636_v11  ;;  %v1367_v34 = vmul.f32 0.015625, %v660_v40  ;;  %4914 = vmatpush3.bf16.msra.mxu0 %v5003_v54 }
 0x218   :  { %v6543_v1 = vsel %vm2214_vm9, %v3332_v13, %v3328_v36  ;;  %4915 = vmatprep.subr.bf16.mxu0 %v5084_v21  ;;  %v6559_v44 = vpack.c.bf16 %v1478_v29, %v1477_v39  ;;  %v1493_v13 = vmul.f32 0.015625, %v6390_v37  ;;  %v2474_v40 = vsel %vm2228_vm11, %v2473_v30, %v2469_v45 }
 0x219   :  { %v2248_v35 = vrot.slane %v1905_v41, %v6493_v43  ;;  %v2255_v38 = vrot.slane %v1906_v33, %v6507_v58  ;;  %v1644_v12 = vpack.c.bf16 %v1368_v57, %v1367_v34  ;;  %v753_v46 = vpop.xlane.xlu1 %752  ;;  %v2622_v7 = vsel %vm2214_vm9, %v2621_v10, %v2617_v26 }
 0x21a   :  { %v1398_v17 = vmul.f32 0.015625, %v753_v46  ;;  %v750_v5 = vpop.xlane.xlu0 %749  ;;  %v2010_v37 = vunpack.c.h.b16 %v6532_v59  ;;  %v2764_v30 = vrot.slane %v2009_v23, %v5702_v19  ;;  %v2031_v39 = vunpack.c.l.b16 %v6559_v44 }
 0x21b   :  { %v2250_v22 = vsel %vm2249_vm14, %v2248_v35, %v6358_v6  ;;  %v1921_v28 = vunpack.c.l.b16 %v1644_v12  ;;  %v1922_v32 = vunpack.c.h.b16 %v1644_v12  ;;  %v1397_v60 = vmul.f32 0.015625, %v750_v5  ;;  %4916 = vmatpush3.bf16.msra.mxu0 %v5004_v15  ;;  %v5005_v6 = vld [vmem:[%s7007_s4 + $0x38] sm:$0xff]  }
 0x21c   :  { %v2257_v11 = vsel %vm2256_vm15, %v2255_v38, %v2250_v22  ;;  %4917 = vmatprep.subr.bf16.mxu0 %v5084_v21  ;;  %v1707_v59 = vpack.c.bf16 %v1494_v51, %v1493_v13  ;;  %v2769_v26 = vrot.slane %v2010_v37, %v5705_v20  ;;  %v1524_v19 = vmul.f32 0.015625, %v6396_v62 }
 0x21d   :  { %v2330_v55 = vrot.slane %v1921_v28, %v6493_v43  ;;  %v2335_v49 = vrot.slane %v1922_v32, %v6507_v58  ;;  %v1659_v53 = vpack.c.bf16 %v1398_v17, %v1397_v60  ;;  %v843_v57 = vpop.xlane.xlu1 %842  ;;  %v1523_v10 = vmul.f32 0.015625, %v6399_v31 }
 0x21e   :  { %v1428_v54 = vmul.f32 0.015625, %v843_v57  ;;  %v840_v36 = vpop.xlane.xlu0 %839  ;;  %v2765_v32 = vsel %vm2193_vm6, %v2764_v30, %v6198_v8  ;;  %v2032_v60 = vunpack.c.h.b16 %v6559_v44  ;;  %v2047_v51 = vunpack.c.l.b16 %v1707_v59 }
 0x21f   :  { %v2331_v41 = vsel %vm2249_vm14, %v2330_v55, %v6521_v56  ;;  %v1951_v33 = vunpack.c.l.b16 %v1659_v53  ;;  %v1952_v34 = vunpack.c.h.b16 %v1659_v53  ;;  %v1427_v29 = vmul.f32 0.015625, %v840_v36  ;;  %4918 = vmatpush3.bf16.msra.mxu0 %v5005_v6 }
 0x220   :  { %v2336_v45 = vsel %vm2256_vm15, %v2335_v49, %v2331_v41  ;;  %4943 = vmatprep.subr.bf16.mxu0 %v5084_v21  ;;  %v2873_v20 = vrot.slane %v2031_v39, %v6323_v47  ;;  %v1722_v49 = vpack.c.bf16 %v1524_v19, %v1523_v10  ;;  %v1554_v53 = vmul.f32 0.015625, %v6405_v0 }
 0x221   :  { %v6583_v35 = vsel %vm3443_vm0, %v2336_v45, %v2257_v11  ;;  %v2478_v38 = vrot.slane %v1951_v33, %v6323_v47  ;;  %v2483_v12 = vrot.slane %v1952_v34, %v6326_v9  ;;  %v1674_v46 = vpack.c.bf16 %v1428_v54, %v1427_v29  ;;  %v933_v56 = vpop.xlane.xlu1 %932 }
 0x222   :  { %v1458_v23 = vmul.f32 0.015625, %v933_v56  ;;  %v930_v17 = vpop.xlane.xlu0 %929  ;;  %v1553_v57 = vmul.f32 0.015625, %v6408_v25  ;;  %v2770_v36 = vsel %vm2200_vm7, %v2769_v26, %v2765_v32  ;;  %v2048_v41 = vunpack.c.h.b16 %v1707_v59 }
 0x223   :  { %v2479_v5 = vsel %vm2235_vm12, %v2478_v38, %v2474_v40  ;;  %v1981_v15 = vunpack.c.l.b16 %v1674_v46  ;;  %v1982_v22 = vunpack.c.h.b16 %v1674_v46  ;;  %v1457_v28 = vmul.f32 0.015625, %v930_v17 }
 0x224   :  { %v6596_v13 = vsel %vm2242_vm13, %v2483_v12, %v2479_v5  ;;  %v2952_v33 = vrot.slane %v2047_v51, %v6323_v47  ;;  %v2878_v29 = vrot.slane %v2032_v60, %v6326_v9  ;;  %v2077_v45 = vunpack.c.l.b16 %v1722_v49 }
 0x225   :  { %v2626_v62 = vrot.slane %v1981_v15, %v6123_v4  ;;  %v2631_v31 = vrot.slane %v1982_v22, %v6126_v52  ;;  %v1689_v11 = vpack.c.bf16 %v1458_v23, %v1457_v28  ;;  %v999_v55 = vpop.xlane.xlu1 %998  ;;  %v1737_v38 = vpack.c.bf16 %v1554_v53, %v1553_v57 }
 0x226   :  { %v1480_v8 = vmul.f32 0.015625, %v999_v55  ;;  %v996_v6 = vpop.xlane.xlu0 %995  ;;  %v2953_v10 = vsel %vm2235_vm12, %v2952_v33, %v6222_v50  ;;  %v2957_v23 = vrot.slane %v2048_v41, %v6326_v9  ;;  %v2078_v5 = vunpack.c.h.b16 %v1722_v49 }
 0x227   :  { %v2627_v44 = vsel %vm2221_vm10, %v2626_v62, %v2622_v7  ;;  %v2011_v40 = vunpack.c.l.b16 %v1689_v11  ;;  %v2012_v37 = vunpack.c.h.b16 %v1689_v11  ;;  %v1479_v54 = vmul.f32 0.015625, %v996_v6 }
 0x228   :  { %v6607_v34 = vsel %vm2228_vm11, %v2631_v31, %v2627_v44  ;;  %v2874_v7 = vsel %vm2235_vm12, %v2873_v20, %v6210_v24  ;;  %v3100_v60 = vrot.slane %v2077_v45, %v6123_v4  ;;  %v2107_v51 = vunpack.c.l.b16 %v1737_v38 }
 0x229   :  { %v2774_v0 = vrot.slane %v2011_v40, %v5922_v3  ;;  %v2779_v25 = vrot.slane %v2012_v37, %v5925_v48  ;;  %v1700_v30 = vpack.c.bf16 %v1480_v8, %v1479_v54  ;;  %v1047_v39 = vpop.xlane.xlu1 %1046  ;;  %v2879_v32 = vsel %vm2242_vm13, %v2878_v29, %v2874_v7 }
 0x22a   :  { %v1496_v12 = vmul.f32 0.015625, %v1047_v39  ;;  %v1044_v59 = vpop.xlane.xlu0 %1043  ;;  %v2958_v49 = vsel %vm2242_vm13, %v2957_v23, %v2953_v10  ;;  %v3105_v57 = vrot.slane %v2078_v5, %v6126_v52  ;;  %v3101_v37 = vsel %vm2221_vm10, %v3100_v60, %v6234_v63 }
 0x22b   :  { %v2775_v46 = vsel %vm2207_vm8, %v2774_v0, %v2770_v36  ;;  %v2033_v56 = vunpack.c.l.b16 %v1700_v30  ;;  %v2034_v26 = vunpack.c.h.b16 %v1700_v30  ;;  %v1495_v19 = vmul.f32 0.015625, %v1044_v59 }
 0x22c   :  { %v6619_v17 = vsel %vm2214_vm9, %v2779_v25, %v2775_v46  ;;  %v2108_v54 = vunpack.c.h.b16 %v1737_v38  ;;  %v3248_v36 = vrot.slane %v2107_v51, %v5922_v3  ;;  %v3106_v59 = vsel %vm2228_vm11, %v3105_v57, %v3101_v37 }
 0x22d   :  { %v2883_v24 = vrot.slane %v2033_v56, %v6493_v43  ;;  %v2888_v15 = vrot.slane %v2034_v26, %v6507_v58  ;;  %v1708_v22 = vpack.c.bf16 %v1496_v12, %v1495_v19  ;;  %v1137_v28 = vpop.xlane.xlu1 %1136  ;;  %vm3453_vm6 = vcmask 1046534  }
 0x22e   :  { %v1526_v20 = vmul.f32 0.015625, %v1137_v28  ;;  %v1134_v62 = vpop.xlane.xlu0 %1133  ;;  %v3249_v46 = vsel %vm2207_vm8, %v3248_v36, %v6246_v27  ;;  %v3253_v56 = vrot.slane %v2108_v54, %v5925_v48  ;;  %vm3455_vm7 = vcmask 1047559  }
 0x22f   :  { %v2884_v50 = vsel %vm2249_vm14, %v2883_v24, %v2879_v32  ;;  %v2049_v31 = vunpack.c.l.b16 %v1708_v22  ;;  %v2050_v11 = vunpack.c.h.b16 %v1708_v22  ;;  %v1525_v55 = vmul.f32 0.015625, %v1134_v62 }
 0x230   :  { %v2889_v53 = vsel %vm2256_vm15, %v2888_v15, %v2884_v50  ;;  %v3254_v27 = vsel %vm2214_vm9, %v3253_v56, %v3249_v46 }
 0x231   :  { %v2962_v8 = vrot.slane %v2049_v31, %v6493_v43  ;;  %v2967_v6 = vrot.slane %v2050_v11, %v6507_v58  ;;  %v1723_v44 = vpack.c.bf16 %v1526_v20, %v1525_v55  ;;  %v1227_v40 = vpop.xlane.xlu1 %1226 }
 0x232   :  { %v1556_v41 = vmul.f32 0.015625, %v1227_v40  ;;  %v1224_v33 = vpop.xlane.xlu0 %1223 }
 0x233   :  { %v2963_v29 = vsel %vm2249_vm14, %v2962_v8, %v2958_v49  ;;  %v2079_v0 = vunpack.c.l.b16 %v1723_v44  ;;  %v2080_v25 = vunpack.c.h.b16 %v1723_v44  ;;  %v1555_v30 = vmul.f32 0.015625, %v1224_v33 }
 0x234   :  { %v2968_v39 = vsel %vm2256_vm15, %v2967_v6, %v2963_v29 }
 0x235   :  { %v6637_v7 = vsel %vm3443_vm0, %v2968_v39, %v2889_v53  ;;  %v3110_v45 = vrot.slane %v2079_v0, %v6323_v47  ;;  %v3115_v12 = vrot.slane %v2080_v25, %v6326_v9  ;;  %v1738_v63 = vpack.c.bf16 %v1556_v41, %v1555_v30  ;;  %v1317_v38 = vpop.xlane.xlu1 %1316 }
 0x236   :  { %v1586_v26 = vmul.f32 0.015625, %v1317_v38  ;;  %v1314_v19 = vpop.xlane.xlu0 %1313 }
 0x237   :  { %v3111_v10 = vsel %vm2235_vm12, %v3110_v45, %v3106_v59  ;;  %v2109_v23 = vunpack.c.l.b16 %v1738_v63  ;;  %v2110_v5 = vunpack.c.h.b16 %v1738_v63  ;;  %v1585_v24 = vmul.f32 0.015625, %v1314_v19 }
 0x238   :  { %v6647_v15 = vsel %vm2242_vm13, %v3115_v12, %v3111_v10 }
 0x239   :  { %v3258_v22 = vrot.slane %v2109_v23, %v6123_v4  ;;  %v3263_v28 = vrot.slane %v2110_v5, %v6126_v52  ;;  %v1753_v32 = vpack.c.bf16 %v1586_v26, %v1585_v24  ;;  %v711_v60 = vpop.xlane.xlu1 %710 }
 0x23a   :  { %v1384_v51 = vmul.f32 0.015625, %v711_v60  ;;  %v708_v20 = vpop.xlane.xlu0 %707 }
 0x23b   :  { %v3259_v62 = vsel %vm2221_vm10, %v3258_v22, %v3254_v27  ;;  %v2139_v50 = vunpack.c.l.b16 %v1753_v32  ;;  %v2140_v31 = vunpack.c.h.b16 %v1753_v32  ;;  %v1383_v11 = vmul.f32 0.015625, %v708_v20 }
 0x23c   :  { %v6654_v55 = vsel %vm2228_vm11, %v3263_v28, %v3259_v62 }
 0x23d   :  { %v3406_v49 = vrot.slane %v2139_v50, %v5922_v3  ;;  %v3411_v53 = vrot.slane %v2140_v31, %v5925_v48  ;;  %v1652_v57 = vpack.c.bf16 %v1384_v51, %v1383_v11  ;;  %v801_v8 = vpop.xlane.xlu1 %800 }
 0x23e   :  { %v1414_v6 = vmul.f32 0.015625, %v801_v8  ;;  %v798_v44 = vpop.xlane.xlu0 %797 }
 0x23f   :  { %v3407_v40 = vsel %vm2207_vm8, %v3406_v49, %v6436_v16  ;;  %v1937_v37 = vunpack.c.l.b16 %v1652_v57  ;;  %v1938_v54 = vunpack.c.h.b16 %v1652_v57  ;;  %v1413_v36 = vmul.f32 0.015625, %v798_v44 }
 0x240   :  { %v6661_v41 = vsel %vm2214_vm9, %v3411_v53, %v3407_v40  ;;  %vm4074_vm8 = vcmask 130048   ;;  %vm4140_vm9 = vcmask 122880  }
 0x241   :  { %v2409_v33 = vrot.slane %v1937_v37, %v6493_v43  ;;  %v2414_v29 = vrot.slane %v1938_v54, %v6507_v58  ;;  %v1667_v3 = vpack.c.bf16 %v1414_v6, %v1413_v36  ;;  %v891_v0 = vpop.xlane.xlu1 %890 }
 0x242   :  { %v1444_v48 = vmul.f32 0.015625, %v891_v0  ;;  %v888_v25 = vpop.xlane.xlu0 %887 }
 0x243   :  { %v2410_v30 = vsel %vm2249_vm14, %v2409_v33, %v6452_v61  ;;  %v1967_v39 = vunpack.c.l.b16 %v1667_v3  ;;  %v1968_v16 = vunpack.c.h.b16 %v1667_v3  ;;  %v1443_v45 = vmul.f32 0.015625, %v888_v25 }
 0x244   :  { %v2415_v12 = vsel %vm2256_vm15, %v2414_v29, %v2410_v30 }
 0x245   :  { %v6670_v63 = vsel %vm3445_vm2, %v2415_v12, %v6583_v35  ;;  %v2557_v38 = vrot.slane %v1967_v39, %v6323_v47  ;;  %v2562_v59 = vrot.slane %v1968_v16, %v6326_v9  ;;  %v1682_v46 = vpack.c.bf16 %v1444_v48, %v1443_v45  ;;  %v1095_v56 = vpop.xlane.xlu1 %1094 }
 0x246   :  { %v1512_v26 = vmul.f32 0.015625, %v1095_v56  ;;  %v1092_v19 = vpop.xlane.xlu0 %1091 }
 0x247   :  { %v2558_v61 = vsel %vm2235_vm12, %v2557_v38, %v6467_v14  ;;  %v1997_v10 = vunpack.c.l.b16 %v1682_v46  ;;  %v1998_v23 = vunpack.c.h.b16 %v1682_v46  ;;  %v1511_v5 = vmul.f32 0.015625, %v1092_v19 }
 0x248   :  { %v6677_v24 = vsel %vm2242_vm13, %v2562_v59, %v2558_v61 }
 0x249   :  { %v2705_v35 = vrot.slane %v1997_v10, %v6123_v4  ;;  %v2710_v22 = vrot.slane %v1998_v23, %v6126_v52  ;;  %v1716_v28 = vpack.c.bf16 %v1512_v26, %v1511_v5  ;;  %v1185_v32 = vpop.xlane.xlu1 %1184 }
 0x24a   :  { %v1542_v60 = vmul.f32 0.015625, %v1185_v32  ;;  %v1182_v27 = vpop.xlane.xlu0 %1181 }
 0x24b   :  { %v2706_v51 = vsel %vm2221_vm10, %v2705_v35, %v6484_v18  ;;  %v2065_v20 = vunpack.c.l.b16 %v1716_v28  ;;  %v2066_v62 = vunpack.c.h.b16 %v1716_v28  ;;  %v1541_v14 = vmul.f32 0.015625, %v1182_v27 }
 0x24c   :  { %v6684_v50 = vsel %vm2228_vm11, %v2710_v22, %v2706_v51 }
 0x24d   :  { %v3041_v31 = vrot.slane %v2065_v20, %v6493_v43  ;;  %v3046_v11 = vrot.slane %v2066_v62, %v6507_v58  ;;  %v1731_v49 = vpack.c.bf16 %v1542_v60, %v1541_v14  ;;  %v1275_v53 = vpop.xlane.xlu1 %1274 }
 0x24e   :  { %v1572_v57 = vmul.f32 0.015625, %v1275_v53  ;;  %v1272_v8 = vpop.xlane.xlu0 %1271 }
 0x24f   :  { %v3042_v6 = vsel %vm2249_vm14, %v3041_v31, %v6504_v42  ;;  %v2095_v44 = vunpack.c.l.b16 %v1731_v49  ;;  %v2096_v40 = vunpack.c.h.b16 %v1731_v49  ;;  %v1571_v18 = vmul.f32 0.015625, %v1272_v8 }
 0x250   :  { %v3047_v37 = vsel %vm2256_vm15, %v3046_v11, %v3042_v6 }
 0x251   :  { %v3458_v54 = vsel %vm3445_vm2, %v3047_v37, %v6637_v7  ;;  %v3189_v36 = vrot.slane %v2095_v44, %v6323_v47  ;;  %v3194_v33 = vrot.slane %v2096_v40, %v6326_v9  ;;  %v1746_v29 = vpack.c.bf16 %v1572_v57, %v1571_v18  ;;  %v759_v3 = vpop.xlane.xlu1 %758 }
 0x252   :  { %v1400_v0 = vmul.f32 0.015625, %v759_v3  ;;  %v756_v48 = vpop.xlane.xlu0 %755 }
 0x253   :  { %v3190_v25 = vsel %vm2235_vm12, %v3189_v36, %v6524_v2  ;;  %v2125_v42 = vunpack.c.l.b16 %v1746_v29  ;;  %v2126_v30 = vunpack.c.h.b16 %v1746_v29  ;;  %v1399_v39 = vmul.f32 0.015625, %v756_v48 }
 0x254   :  { %v6698_v16 = vsel %vm2242_vm13, %v3194_v33, %v3190_v25 }
 0x255   :  { %v3337_v45 = vrot.slane %v2125_v42, %v6123_v4  ;;  %v3342_v7 = vrot.slane %v2126_v30, %v6126_v52  ;;  %v1660_v12 = vpack.c.bf16 %v1400_v0, %v1399_v39  ;;  %v849_v38 = vpop.xlane.xlu1 %848 }
 0x256   :  { %v846_v59 = vpop.xlane.xlu0 %845  ;;  %v1430_v36 = vmul.f32 0.015625, %v849_v38 }
 0x257   :  { %v3338_v46 = vsel %vm2221_vm10, %v3337_v45, %v6543_v1  ;;  %v1953_v56 = vunpack.c.l.b16 %v1660_v12  ;;  %v1954_v26 = vunpack.c.h.b16 %v1660_v12  ;;  %v1429_v33 = vmul.f32 0.015625, %v846_v59 }
 0x258   :  { %v6705_v2 = vsel %vm2228_vm11, %v3342_v7, %v3338_v46 }
 0x259   :  { %v2488_v19 = vrot.slane %v1953_v56, %v6493_v43  ;;  %v2493_v61 = vrot.slane %v1954_v26, %v6507_v58  ;;  %v939_v10 = vpop.xlane.xlu1 %938  ;;  %v1675_v42 = vpack.c.bf16 %v1430_v36, %v1429_v33 }
 0x25a   :  { %v936_v23 = vpop.xlane.xlu0 %935 }
 0x25b   :  { %v2489_v5 = vsel %vm2249_vm14, %v2488_v19, %v6596_v13  ;;  %v1983_v26 = vunpack.c.l.b16 %v1675_v42  ;;  %v1460_v19 = vmul.f32 0.015625, %v939_v10 }
 0x25c   :  { %v2494_v35 = vsel %vm2256_vm15, %v2493_v61, %v2489_v5  ;;  %v1459_v61 = vmul.f32 0.015625, %v936_v23 }
 0x25d   :  { %v3448_v1 = vsel %vm3447_vm3, %v2494_v35, %v6670_v63  ;;  %v1143_v22 = vpop.xlane.xlu1 %1142 }
 0x25e   :  { %v1528_v28 = vmul.f32 0.015625, %v1143_v22  ;;  %v1140_v32 = vpop.xlane.xlu0 %1139 }
 0x25f   :  { %v1527_v60 = vmul.f32 0.015625, %v1140_v32 }
 0x261   :  { %v1724_v27 = vpack.c.bf16 %v1528_v28, %v1527_v60  ;;  %v1233_v51 = vpop.xlane.xlu1 %1232 }
 0x262   :  { %v1230_v20 = vpop.xlane.xlu0 %1229  ;;  %v1558_v7 = vmul.f32 0.015625, %v1233_v51  ;;  %v2636_v51 = vrot.slane %v1983_v26, %v6323_v47 }
 0x263   :  { %v2081_v62 = vunpack.c.l.b16 %v1724_v27  ;;  %v2082_v14 = vunpack.c.h.b16 %v1724_v27  ;;  %v1557_v12 = vmul.f32 0.015625, %v1230_v20  ;;  %v1984_v27 = vunpack.c.h.b16 %v1675_v42 }
 0x264   :  { %v1690_v20 = vpack.c.bf16 %v1460_v19, %v1459_v61 }
 0x265   :  { %v3120_v31 = vrot.slane %v2081_v62, %v6493_v43  ;;  %v3125_v11 = vrot.slane %v2082_v14, %v6507_v58  ;;  %v6716_v49 = vpop.xlane.xlu1 %1322  ;;  %v1739_v28 = vpack.c.bf16 %v1558_v7, %v1557_v12 }
 0x266   :  { %v6718_v13 = vpop.xlane.xlu0 %1319 }
 0x267   :  { %v3121_v63 = vsel %vm2249_vm14, %v3120_v31, %v6647_v15  ;;  %v2111_v23 = vunpack.c.l.b16 %v1739_v28 }
 0x268   :  { %v3126_v53 = vsel %vm2256_vm15, %v3125_v11, %v3121_v63 }
 0x269   :  { %v3459_v57 = vsel %vm3447_vm3, %v3126_v53, %v3458_v54  ;;  %v807_v8 = vpop.xlane.xlu1 %806 }
 0x26a   :  { %v1416_v6 = vmul.f32 0.015625, %v807_v8  ;;  %v804_v44 = vpop.xlane.xlu0 %803  ;;  %v2637_v8 = vsel %vm2235_vm12, %v2636_v51, %v6607_v34 }
 0x26b   :  { %v1415_v40 = vmul.f32 0.015625, %v804_v44  ;;  %v2013_v44 = vunpack.c.l.b16 %v1690_v20 }
 0x26d   :  { %v1668_v18 = vpack.c.bf16 %v1416_v6, %v1415_v40  ;;  %v897_v37 = vpop.xlane.xlu1 %896  ;;  %v2641_v6 = vrot.slane %v1984_v27, %v6326_v9 }
 0x26e   :  { %v894_v29 = vpop.xlane.xlu0 %893 }
 0x26f   :  { %v1969_v3 = vunpack.c.l.b16 %v1668_v18  ;;  %v1970_v0 = vunpack.c.h.b16 %v1668_v18  ;;  %v1446_v18 = vmul.f32 0.015625, %v897_v37  ;;  %v1445_v36 = vmul.f32 0.015625, %v894_v29 }
 0x270   :  { %v2642_v34 = vsel %vm2242_vm13, %v2641_v6, %v2637_v8  ;;  %v2784_v37 = vrot.slane %v2013_v44, %v6123_v4 }
 0x271   :  { %v2567_v48 = vrot.slane %v1969_v3, %v6493_v43  ;;  %v2572_v25 = vrot.slane %v1970_v0, %v6507_v58  ;;  %v1191_v15 = vpop.xlane.xlu1 %1190  ;;  %v2112_v3 = vunpack.c.h.b16 %v1739_v28  ;;  %v3268_v0 = vrot.slane %v2111_v23, %v6323_v47 }
 0x272   :  { %v1544_v30 = vmul.f32 0.015625, %v1191_v15  ;;  %v1188_v39 = vpop.xlane.xlu0 %1187  ;;  %v1683_v29 = vpack.c.bf16 %v1446_v18, %v1445_v36 }
 0x273   :  { %v2568_v54 = vsel %vm2249_vm14, %v2567_v48, %v6677_v24  ;;  %v1543_v45 = vmul.f32 0.015625, %v1188_v39  ;;  %v3273_v12 = vrot.slane %v2112_v3, %v6326_v9  ;;  %v3269_v26 = vsel %vm2235_vm12, %v3268_v0, %v6654_v55 }
 0x274   :  { %v2573_v38 = vsel %vm2256_vm15, %v2572_v25, %v2568_v54 }
 0x275   :  { %v1732_v59 = vpack.c.bf16 %v1544_v30, %v1543_v45  ;;  %v1281_v46 = vpop.xlane.xlu1 %1280  ;;  %v3450_v56 = vsel %vm3449_vm4, %v2573_v38, %v3448_v1  ;;  %v2014_v30 = vunpack.c.h.b16 %v1690_v20  ;;  %v1588_v38 = vmul.f32 0.015625, %v6716_v49 }
 0x276   :  { %v1278_v5 = vpop.xlane.xlu0 %1277  ;;  %v1574_v48 = vmul.f32 0.015625, %v1281_v46  ;;  %v2785_v49 = vsel %vm2221_vm10, %v2784_v37, %v6619_v17  ;;  %v3274_v51 = vsel %vm2242_vm13, %v3273_v12, %v3269_v26  ;;  %v2000_v20 = vunpack.c.h.b16 %v1683_v29 }
 0x277   :  { %v2097_v35 = vunpack.c.l.b16 %v1732_v59  ;;  %v2098_v22 = vunpack.c.h.b16 %v1732_v59  ;;  %v1573_v25 = vmul.f32 0.015625, %v1278_v5  ;;  %v1587_v59 = vmul.f32 0.015625, %v6718_v13 }
 0x278   :  { %v2789_v13 = vrot.slane %v2014_v30, %v6126_v52 }
 0x279   :  { %v3199_v32 = vrot.slane %v2097_v35, %v6493_v43  ;;  %v3204_v24 = vrot.slane %v2098_v22, %v6507_v58  ;;  %v855_v60 = vpop.xlane.xlu1 %854  ;;  %v1747_v19 = vpack.c.bf16 %v1574_v48, %v1573_v25  ;;  %v1754_v55 = vpack.c.bf16 %v1588_v38, %v1587_v59 }
 0x27a   :  { %v1432_v62 = vmul.f32 0.015625, %v855_v60  ;;  %v852_v14 = vpop.xlane.xlu0 %851  ;;  %v2720_v25 = vrot.slane %v2000_v20, %v6326_v9 }
 0x27b   :  { %v3200_v1 = vsel %vm2249_vm14, %v3199_v32, %v6698_v16  ;;  %v1431_v10 = vmul.f32 0.015625, %v852_v14  ;;  %v2141_v44 = vunpack.c.l.b16 %v1754_v55  ;;  %v2128_v18 = vunpack.c.h.b16 %v1747_v19 }
 0x27c   :  { %v3205_v31 = vsel %vm2256_vm15, %v3204_v24, %v3200_v1  ;;  %v1999_v24 = vunpack.c.l.b16 %v1683_v29 }
 0x27d   :  { %v1676_v11 = vpack.c.bf16 %v1432_v62, %v1431_v10  ;;  %v945_v63 = vpop.xlane.xlu1 %944  ;;  %v6737_v53 = vsel %vm3449_vm4, %v3205_v31, %v3459_v57  ;;  %v2127_v62 = vunpack.c.l.b16 %v1747_v19  ;;  %v3416_v29 = vrot.slane %v2141_v44, %v6123_v4 }
 0x27e   :  { %v942_v40 = vpop.xlane.xlu0 %941  ;;  %v1462_v22 = vmul.f32 0.015625, %v945_v63  ;;  %v2715_v8 = vrot.slane %v1999_v24, %v6323_v47 }
 0x27f   :  { %v1985_v33 = vunpack.c.l.b16 %v1676_v11  ;;  %v1986_v16 = vunpack.c.h.b16 %v1676_v11  ;;  %v1461_v28 = vmul.f32 0.015625, %v942_v40  ;;  %v2142_v40 = vunpack.c.h.b16 %v1754_v55 }
 0x280   :  { %v2716_v30 = vsel %vm2235_vm12, %v2715_v8, %v6684_v50 }
 0x281   :  { %v2646_v15 = vrot.slane %v1985_v33, %v6493_v43  ;;  %v2651_v57 = vrot.slane %v1986_v16, %v6507_v58  ;;  %v1239_v42 = vpop.xlane.xlu1 %1238  ;;  %v1691_v10 = vpack.c.bf16 %v1462_v22, %v1461_v28  ;;  %v2790_v33 = vsel %vm2228_vm11, %v2789_v13, %v2785_v49 }
 0x282   :  { %v1560_v39 = vmul.f32 0.015625, %v1239_v42  ;;  %v1236_v54 = vpop.xlane.xlu0 %1235  ;;  %v3347_v16 = vrot.slane %v2127_v62, %v6323_v47  ;;  %v2721_v50 = vsel %vm2242_vm13, %v2720_v25, %v2716_v30 }
 0x283   :  { %v2647_v45 = vsel %vm2249_vm14, %v2646_v15, %v2642_v34  ;;  %v1559_v7 = vmul.f32 0.015625, %v1236_v54  ;;  %v2015_v15 = vunpack.c.l.b16 %v1691_v10  ;;  %v2016_v12 = vunpack.c.h.b16 %v1691_v10 }
 0x284   :  { %v2652_v46 = vsel %vm2256_vm15, %v2651_v57, %v2647_v45  ;;  %v3421_v45 = vrot.slane %v2142_v40, %v6126_v52 }
 0x285   :  { %v1740_v61 = vpack.c.bf16 %v1560_v39, %v1559_v7  ;;  %v1329_v5 = vpop.xlane.xlu1 %1328  ;;  %v6755_v35 = vsel %vm3451_vm5, %v2652_v46, %v3450_v56  ;;  %v3352_v7 = vrot.slane %v2128_v18, %v6326_v9  ;;  %v2794_v19 = vrot.slane %v2015_v15, %v6323_v47 }
 0x286   :  { %v1326_v32 = vpop.xlane.xlu0 %1325  ;;  %v1590_v23 = vmul.f32 0.015625, %v1329_v5 }
 0x287   :  { %v2113_v60 = vunpack.c.l.b16 %v1740_v61  ;;  %v2114_v27 = vunpack.c.h.b16 %v1740_v61  ;;  %v1589_v31 = vmul.f32 0.015625, %v1326_v32  ;;  %v2795_v62 = vsel %vm2235_vm12, %v2794_v19, %v2790_v33 }
 0x289   :  { %v3278_v14 = vrot.slane %v2113_v60, %v6493_v43  ;;  %v3283_v56 = vrot.slane %v2114_v27, %v6507_v58  ;;  %v903_v1 = vpop.xlane.xlu1 %902  ;;  %v1755_v57 = vpack.c.bf16 %v1590_v23, %v1589_v31  ;;  %v2799_v60 = vrot.slane %v2016_v12, %v6326_v9  ;;  %v3713_v12 = vld [vmem:[%s7005_s2 + $0x8] sm:$0xff] }
 0x28a   :  { %v1448_v11 = vmul.f32 0.015625, %v903_v1  ;;  %v900_v63 = vpop.xlane.xlu0 %899 }
 0x28b   :  { %v3279_v17 = vsel %vm2249_vm14, %v3278_v14, %v3274_v51  ;;  %v1447_v6 = vmul.f32 0.015625, %v900_v63  ;;  %v2143_v61 = vunpack.c.l.b16 %v1755_v57  ;;  %v2144_v14 = vunpack.c.h.b16 %v1755_v57 }
 0x28c   :  { %v3284_v36 = vsel %vm2256_vm15, %v3283_v56, %v3279_v17 }
 0x28d   :  { %v1684_v3 = vpack.c.bf16 %v1448_v11, %v1447_v6  ;;  %v1287_v0 = vpop.xlane.xlu1 %1286  ;;  %v3461_v48 = vsel %vm3451_vm5, %v3284_v36, %v6737_v53  ;;  %v3348_v53 = vsel %vm2235_vm12, %v3347_v16, %v6705_v2  ;;  %v3417_v2 = vsel %vm2221_vm10, %v3416_v29, %v6661_v41  ;;  %v3710_v29 = vld [vmem:[%s7004_s1] sm:$0xff] }
 0x28e   :  { %v1576_v42 = vmul.f32 0.015625, %v1287_v0  ;;  %v1284_v34 = vpop.xlane.xlu0 %1283  ;;  %v3353_v24 = vsel %vm2242_vm13, %v3352_v7, %v3348_v53  ;;  %v3426_v41 = vrot.slane %v2143_v61, %v6323_v47  ;;  %v3422_v44 = vsel %vm2228_vm11, %v3421_v45, %v3417_v2  ;;  %v3711_v45 = vld [vmem:[%s7004_s1 + $0x8] sm:$0xff]  ;;  %v3712_v7 = vld [vmem:[%s7005_s2] sm:$0xff]  ;;  %v5013_v61 = vld [vmem:[%s7013_s10 + $0x38] sm:$0xff]  }
 0x28f   :  { %v2001_v39 = vunpack.c.l.b16 %v1684_v3  ;;  %v2002_v54 = vunpack.c.h.b16 %v1684_v3  ;;  %v1575_v37 = vmul.f32 0.015625, %v1284_v34  ;;  %v2800_v47 = vsel %vm2242_vm13, %v2799_v60, %v2795_v62  ;;  %v5006_v34 = vld [vmem:[%s7013_s10] sm:$0xff]   ;;  %v5019_v2 = vld [vmem:[%s7009_s6 + $0x28] sm:$0xff]   ;;  %v5021_v60 = vld [vmem:[%s7009_s6 + $0x38] sm:$0xff]  }
 0x290   :  { %v3431_v40 = vrot.slane %v2144_v14, %v6326_v9  ;;  %v3427_v18 = vsel %vm2235_vm12, %v3426_v41, %v3422_v44  ;;  %v3714_v53 = vadd.f32 %v3712_v7, %v3710_v29  ;;  %vm4124_vm10 = vcmask 7168  }
 0x291   :  { %v2725_v38 = vrot.slane %v2001_v39, %v6493_v43  ;;  %v2730_v59 = vrot.slane %v2002_v54, %v6507_v58  ;;  %v1748_v46 = vpack.c.bf16 %v1576_v42, %v1575_v37  ;;  %v951_v26 = vpop.xlane.xlu1 %950  ;;  %v5009_v39 = vld [vmem:[%s7013_s10 + $0x18] sm:$0xff]   ;;  %v5010_v54 = vld [vmem:[%s7013_s10 + $0x20] sm:$0xff]   ;;  %v5011_v37 = vld [vmem:[%s7013_s10 + $0x28] sm:$0xff]   ;;  %vm4170_vm11 = vcmask 0  }
 0x292   :  { %v1464_v4 = vmul.f32 0.015625, %v951_v26  ;;  %v948_v5 = vpop.xlane.xlu0 %947  ;;  %v3432_v15 = vsel %vm2242_vm13, %v3431_v40, %v3427_v18  ;;  %v3717_v26 = vld [vmem:[%s7006_s3 + $0x8] sm:$0xff]  ;;  %v4206_v18 = vld [vmem:[%s7014_s11] ss:$0 sm:$0xff]  ;;  %s4178_s11 = sshll.u32 %s5086_s19, 4  ;;  %s4179_s11 = int_to_ptr.vmem [resolvable:$true] %s4178_s11 }
 0x293   :  { %v2726_v52 = vsel %vm2249_vm14, %v2725_v38, %v2721_v50  ;;  %v2129_v22 = vunpack.c.l.b16 %v1748_v46  ;;  %v2130_v28 = vunpack.c.h.b16 %v1748_v46  ;;  %v1463_v32 = vmul.f32 0.015625, %v948_v5  ;;  %v3716_v46 = vld [vmem:[%s7006_s3] sm:$0xff]  ;;  %s5060_s3 = scalar_lea.vmem %s4179_s11, 16  ;;  %s5064_s20 = scalar_lea.vmem %s4179_s11, 32 }
 0x294   :  { %v2731_v27 = vsel %vm2256_vm15, %v2730_v59, %v2726_v52  ;;  %v3715_v38 = vadd.f32 %v3713_v12, %v3711_v45  ;;  %v5012_v59 = vld [vmem:[%s7013_s10 + $0x30] sm:$0xff]   ;;  %v3718_v50 = vadd.f32 %v3716_v46, %v3714_v53  ;;  %v5014_v5 = vld [vmem:[%s7009_s6] sm:$0xff]   ;;  %v5015_v52 = vld [vmem:[%s7009_s6 + $0x8] sm:$0xff]   ;;  %p5061_p0 = scmp.ne.s32.totalorder %s4179_s11, %s5060_s3  ;;  %p5065_p1 = scmp.lt.s32.totalorder %s4179_s11, %s4179_s11 }
 0x295   :  { %v3357_v49 = vrot.slane %v2129_v22, %v6493_v43  ;;  %v3362_v13 = vrot.slane %v2130_v28, %v6507_v58  ;;  %v1692_v51 = vpack.c.bf16 %v1464_v4, %v1463_v32  ;;  %v1335_v55 = vpop.xlane.xlu1 %1334  ;;  %v3454_v20 = vsel %vm3453_vm6, %v2731_v27, %v6755_v35  ;;  %4924 = vmatpush3.bf16.msra.mxu1 %v5014_v5  ;;  %v5016_v22 = vld [vmem:[%s7009_s6 + $0x10] sm:$0xff]   ;;  %v5017_v28 = vld [vmem:[%s7009_s6 + $0x18] sm:$0xff]   ;;  %v5018_v32 = vld [vmem:[%s7009_s6 + $0x20] sm:$0xff]   ;;  %p5066_p2 = scmp.lt.s32.totalorder %s5064_s20, %s5060_s3 }
 0x296   :  { %v1592_v56 = vmul.f32 0.015625, %v1335_v55  ;;  %v1332_v1 = vpop.xlane.xlu0 %1331  ;;  %v3719_v19 = vadd.f32 %v3717_v26, %v3715_v38  ;;  %4925 = vmatprep.subr.bf16.mxu1 %v5084_v21  ;;  %v4186_v27 = vld [vmem:[%s7008_s5] ss:$0 sm:$0xff]  ;;  %v5025_v12 = vld [vmem:[%s7015_s12 + $0x18] sm:$0xff]   ;;  %v5028_v26 = vld [vmem:[%s7015_s12 + $0x30] sm:$0xff]  }
 0x297   :  { %v3358_v10 = vsel %vm2249_vm14, %v3357_v49, %v3353_v24  ;;  %v2017_v23 = vunpack.c.l.b16 %v1692_v51  ;;  %v2018_v31 = vunpack.c.h.b16 %v1692_v51  ;;  %v1591_v11 = vmul.f32 0.015625, %v1332_v1  ;;  %v5020_v24 = vld [vmem:[%s7009_s6 + $0x30] sm:$0xff]   ;;  %v5026_v38 = vld [vmem:[%s7015_s12 + $0x20] sm:$0xff]   ;;  %v5029_v5 = vld [vmem:[%s7015_s12 + $0x38] sm:$0xff]   ;;  %p5067_p3 = por %p5066_p2, %p5065_p1 }
 0x298   :  { %v3363_v63 = vsel %vm2256_vm15, %v3362_v13, %v3358_v10  ;;  %v3756_v4 = vpack.c.bf16 %v3719_v19, %v3718_v50 }
 0x299   :  { %v2804_v8 = vrot.slane %v2017_v23, %v6493_v43  ;;  %v2809_v17 = vrot.slane %v2018_v31, %v6507_v58  ;;  %v1756_v6 = vpack.c.bf16 %v1592_v56, %v1591_v11  ;;  %v3462_v35 = vsel %vm3453_vm6, %v3363_v63, %v3461_v48  ;;  %4926 = vmatpush3.bf16.msra.mxu1 %v5015_v52  ;;  %p5068_p4 = pnand %p5067_p3, %p5061_p0 }
 0x29a   :  { %4927 = vmatprep.subr.bf16.mxu1 %v5084_v21 }
 0x29b   :  { %v2145_v36 = vunpack.c.l.b16 %v1756_v6  ;;  %v2146_v33 = vunpack.c.h.b16 %v1756_v6  ;;  %v2805_v16 = vsel %vm2249_vm14, %v2804_v8, %v2800_v47 }
 0x29c   :  { %v2810_v3 = vsel %vm2256_vm15, %v2809_v17, %v2805_v16  ;;  %v5022_v16 = vld [vmem:[%s7015_s12] sm:$0xff]  }
 0x29d   :  { %v3436_v0 = vrot.slane %v2145_v36, %v6493_v43  ;;  %v3441_v25 = vrot.slane %v2146_v33, %v6507_v58  ;;  %v3456_v48 = vsel %vm3455_vm7, %v2810_v3, %v3454_v20  ;;  %v5007_v43 = vld [vmem:[%s7013_s10 + $0x8] sm:$0xff]   ;;  %v5008_v58 = vld [vmem:[%s7013_s10 + $0x10] sm:$0xff]   ;;  %4928 = vmatpush3.bf16.msra.mxu1 %v5016_v22 }
 0x29e   :  { %4929 = vmatprep.subr.bf16.mxu1 %v5084_v21 }
 0x29f   :  { %v3437_v57 = vsel %vm2249_vm14, %v3436_v0, %v3432_v15 }
 0x2a0   :  { %v3442_v9 = vsel %vm2256_vm15, %v3441_v25, %v3437_v57 }
 0x2a1   :  { %v3463_v42 = vsel %vm3455_vm7, %v3442_v9, %v3462_v35  ;;  %4930 = vmatpush3.bf16.msra.mxu1 %v5017_v28 }
 0x2a2   :  { %v3464_v30 = vpack.c.b16 %v3463_v42, %v3456_v48  ;;  %4931 = vmatprep.subr.bf16.mxu1 %v5084_v21 }
 0x2a4   :  { %4920 = vmatmul.mubr.bf16.vlgmr.msra.gmra.mrb[0].mxu0 %v3464_v30 }
 0x2a5   :  { %4944 = vmatpush3.bf16.msra.mxu0 %v5006_v34  ;;  %4959 = vmatprep.mubr.msk.bf16.mxu0 %vm5085_vm1, %v5084_v21  ;;  %v5023_v34 = vld [vmem:[%s7015_s12 + $0x8] sm:$0xff]  }
 0x2a6   :  { %4945 = vmatprep.subr.bf16.mxu0 %v5084_v21  ;;  %4932 = vmatpush3.bf16.msra.mxu1 %v5018_v32 }
 0x2a7   :  { %4933 = vmatprep.subr.bf16.mxu1 %v5084_v21 }
 0x2a9   :  { %4946 = vmatpush3.bf16.msra.mxu0 %v5007_v43 }
 0x2aa   :  { %4947 = vmatprep.subr.bf16.mxu0 %v5084_v21  ;;  %4934 = vmatpush3.bf16.msra.mxu1 %v5019_v2  ;;  %v4195_v2 = vld [vmem:[%s7010_s7] ss:$0 sm:$0xff] }
 0x2ab   :  { %4935 = vmatprep.subr.bf16.mxu1 %v5084_v21 }
 0x2ad   :  { %4948 = vmatpush3.bf16.msra.mxu0 %v5008_v58 }
 0x2ae   :  { %4949 = vmatprep.subr.bf16.mxu0 %v5084_v21  ;;  %4936 = vmatpush3.bf16.msra.mxu1 %v5020_v24 }
 0x2af   :  { %4937 = vmatprep.subr.bf16.mxu1 %v5084_v21 }
 0x2b1   :  { %4950 = vmatpush3.bf16.msra.mxu0 %v5009_v39 }
 0x2b2   :  { %4951 = vmatprep.subr.bf16.mxu0 %v5084_v21  ;;  %4938 = vmatpush3.bf16.msra.mxu1 %v5021_v60 }
 0x2b3   :  { %4963 = vmatprep.subr.bf16.mxu1 %v5084_v21 }
 0x2b5   :  { %4952 = vmatpush3.bf16.msra.mxu0 %v5010_v54  ;;  %v5024_v54 = vld [vmem:[%s7015_s12 + $0x10] sm:$0xff]  }
 0x2b6   :  { %4953 = vmatprep.subr.bf16.mxu0 %v5084_v21 }
 0x2b9   :  { %4954 = vmatpush3.bf16.msra.mxu0 %v5011_v37 }
 0x2ba   :  { %4955 = vmatprep.subr.bf16.mxu0 %v5084_v21 }
 0x2bd   :  { %4956 = vmatpush3.bf16.msra.mxu0 %v5012_v59  ;;  %v5027_v59 = vld [vmem:[%s7015_s12 + $0x28] sm:$0xff]  }
 0x2be   :  { %4957 = vmatprep.subr.bf16.mxu0 %v5084_v21 }
 0x2c1   :  { %4958 = vmatpush3.bf16.msra.mxu0 %v5013_v61 }
 0x2c2   :  { %4983 = vmatprep.subr.bf16.mxu0 %v5084_v21 }
 0x2c4   :  { %4960 = vmatmul.mubr.bf16.vlgmr.msra.gmra.mrb[4].mxu0 %v3756_v4 }
 0x2c5   :  { %4985 = vmatprep.mubr.msk.bf16.mxu0 %vm5085_vm1, %v5084_v21 }
 0x377   :  { %v3548_v49 = vpop.f32.mrb[0].mxu0 }
 0x378   :  { %v6899_v13 = vadd.f32 %v4186_v27, %v3548_v49  ;;  %v4921_v51 = vpop.f32.mrb[1].mxu0 }
 0x379   :  { %v3551_v55 = vpop.f32.mrb[2].mxu0 }
 0x37a   :  { %v3555_v20 = vmul.f32 %v6899_v13, %v6899_v13  ;;  %v6903_v62 = vadd.f32 %v4186_v27, %v3551_v55  ;;  %v4922_v14 = vpop.f32.mrb[3].mxu0 }
 0x37b   :  { %v4215_v14 = vld [vmem:[%s7016_s13] ss:$0 sm:$0xff] }
 0x37c   :  { %v3557_v41 = vmul.f32 %v3555_v20, %v6899_v13  ;;  %v3556_v56 = vmul.f32 %v6903_v62, %v6903_v62 }
 0x37e   :  { %v3559_v1 = vmul.f32 0.044715, %v3557_v41  ;;  %v3558_v10 = vmul.f32 %v3556_v56, %v6903_v62 }
 0x380   :  { %v3560_v23 = vmul.f32 0.044715, %v3558_v10  ;;  %v3561_v31 = vadd.f32 %v3559_v1, %v6899_v13 }
 0x382   :  { %v3562_v11 = vadd.f32 %v3560_v23, %v6903_v62  ;;  %v3563_v63 = vmul.f32 0.7978846, %v3561_v31 }
 0x384   :  { %v3564_v8 = vmul.f32 0.7978846, %v3562_v11  ;;  %5030 = vtanh.f32 %v3563_v63 }
 0x386   :  { %5032 = vtanh.f32 %v3564_v8 }
 0x38e   :  { %v5031_v17 = vpop.eup %5030 }
 0x38f   :  { %v3567_v6 = vadd.f32 1.0, %v5031_v17 }
 0x390   :  { %v5033_v35 = vpop.eup %5032 }
 0x391   :  { %v3568_v44 = vadd.f32 1.0, %v5033_v35  ;;  %v3569_v47 = vmul.f32 0.5, %v3567_v6 }
 0x393   :  { %v3570_v40 = vmul.f32 0.5, %v3568_v44  ;;  %v3571_v36 = vmul.f32 %v3569_v47, %v6899_v13 }
 0x395   :  { %v3572_v33 = vmul.f32 %v3570_v40, %v6903_v62 }
 0x397   :  { %v3845_v3 = vpop.f32.mrb[4].mxu0  ;;  %v3573_v0 = vpack.c.bf16 %v3572_v33, %v3571_v36 }
 0x398   :  { %v6919_v25 = vadd.f32 %v4206_v18, %v3845_v3  ;;  %v4961_v48 = vpop.f32.mrb[5].mxu0 }
 0x399   :  { %v3848_v15 = vpop.f32.mrb[6].mxu0  ;;  %4940 = vmatmul.mubr.bf16.vlgmr.msra.gmra.mrb[0].mxu1 %v3573_v0 }
 0x39a   :  { %v3852_v57 = vmul.f32 %v6919_v25, %v6919_v25  ;;  %v6923_v9 = vadd.f32 %v4206_v18, %v3848_v15  ;;  %v4962_v42 = vpop.f32.mrb[7].mxu0  ;;  %4964 = vmatpush3.bf16.msra.mxu1 %v5022_v16  ;;  %4979 = vmatprep.mubr.msk.bf16.mxu1 %vm5085_vm1, %v5084_v21 }
 0x39b   :  { %4965 = vmatprep.subr.bf16.mxu1 %v5084_v21 }
 0x39c   :  { %v3854_v30 = vmul.f32 %v3852_v57, %v6919_v25  ;;  %v3853_v43 = vmul.f32 %v6923_v9, %v6923_v9 }
 0x39e   :  { %v3856_v58 = vmul.f32 0.044715, %v3854_v30  ;;  %v3855_v39 = vmul.f32 %v3853_v43, %v6923_v9  ;;  %4966 = vmatpush3.bf16.msra.mxu1 %v5023_v34  ;;  %v4204_v43 = vld [vmem:[%s7011_s8] ss:$0 sm:$0xff] }
 0x39f   :  { %4967 = vmatprep.subr.bf16.mxu1 %v5084_v21 }
 0x3a0   :  { %v3858_v37 = vadd.f32 %v3856_v58, %v6919_v25  ;;  %v3857_v29 = vmul.f32 0.044715, %v3855_v39 }
 0x3a2   :  { %v3860_v45 = vmul.f32 0.7978846, %v3858_v37  ;;  %v3859_v7 = vadd.f32 %v3857_v29, %v6923_v9  ;;  %4968 = vmatpush3.bf16.msra.mxu1 %v5024_v54  ;;  %v4205_v29 = vld [vmem:[%s7012_s9] ss:$0 sm:$0xff] }
 0x3a3   :  { %4969 = vmatprep.subr.bf16.mxu1 %v5084_v21 }
 0x3a4   :  { %5034 = vtanh.f32 %v3860_v45  ;;  %v3861_v53 = vmul.f32 0.7978846, %v3859_v7 }
 0x3a6   :  { %5036 = vtanh.f32 %v3861_v53  ;;  %4970 = vmatpush3.bf16.msra.mxu1 %v5025_v12 }
 0x3a7   :  { %4971 = vmatprep.subr.bf16.mxu1 %v5084_v21 }
 0x3aa   :  { %4972 = vmatpush3.bf16.msra.mxu1 %v5026_v38 }
 0x3ab   :  { %4973 = vmatprep.subr.bf16.mxu1 %v5084_v21 }
 0x3ae   :  { %v5035_v46 = vpop.eup %5034  ;;  %4974 = vmatpush3.bf16.msra.mxu1 %v5027_v59 }
 0x3af   :  { %4975 = vmatprep.subr.bf16.mxu1 %v5084_v21  ;;  %v3864_v50 = vadd.f32 1.0, %v5035_v46 }
 0x3b0   :  { %v5037_v19 = vpop.eup %5036 }
 0x3b1   :  { %v3865_v61 = vadd.f32 1.0, %v5037_v19  ;;  %v3866_v4 = vmul.f32 0.5, %v3864_v50 }
 0x3b2   :  { %4976 = vmatpush3.bf16.msra.mxu1 %v5028_v26 }
 0x3b3   :  { %4977 = vmatprep.subr.bf16.mxu1 %v5084_v21  ;;  %v3867_v52 = vmul.f32 0.5, %v3865_v61  ;;  %v3868_v22 = vmul.f32 %v3866_v4, %v6919_v25  ;;  %v4224_v4 = vld [vmem:[%s7017_s14] ss:$0 sm:$0xff] }
 0x3b5   :  { %v3869_v28 = vmul.f32 %v3867_v52, %v6923_v9 }
 0x3b6   :  { %4978 = vmatpush3.bf16.msra.mxu1 %v5029_v5 }
 0x3b7   :  { %v3870_v32 = vpack.c.bf16 %v3869_v28, %v3868_v22 }
 0x3b9   :  { %4980 = vmatmul.mubr.bf16.vlgmr.msra.gmra.mrb[4].mxu1 %v3870_v32  ;;  %v4225_v32 = vld [vmem:[%s7018_s15] ss:$0 sm:$0xff] }
 0x46c   :  { %v3662_v24 = vpop.f32.mrb[0].mxu1 }
 0x46d   :  { %v3663_v60 = vadd.f32 %v4195_v2, %v3662_v24  ;;  %v4941_v27 = vpop.f32.mrb[1].mxu1 }
 0x46e   :  { %v3665_v49 = vpop.f32.mrb[2].mxu1 }
 0x46f   :  { %v3669_v51 = vadd.f32 %v3663_v60, %v6899_v13  ;;  %v3666_v55 = vadd.f32 %v4195_v2, %v3665_v49  ;;  %v4942_v21 = vpop.f32.mrb[3].mxu1 }
 0x471   :  { %v3670_v20 = vadd.f32 %v3666_v55, %v6903_v62  ;;  %3671 = vadd.xlane.f32.xlu0 %v3669_v51 }
 0x473   :  { %3673 = vadd.xlane.f32.xlu1 %v3670_v20 }
 0x48c   :  { %v3959_v41 = vpop.f32.mrb[4].mxu1 }
 0x48d   :  { %v3960_v56 = vadd.f32 %v4215_v14, %v3959_v41  ;;  %v4981_v1 = vpop.f32.mrb[5].mxu1 }
 0x48e   :  { %v3962_v10 = vpop.f32.mrb[6].mxu1 }
 0x48f   :  { %v3966_v23 = vadd.f32 %v3960_v56, %v6919_v25  ;;  %v3963_v31 = vadd.f32 %v4215_v14, %v3962_v10  ;;  %v4982_v11 = vpop.f32.mrb[7].mxu1 }
 0x491   :  { %v3967_v13 = vadd.f32 %v3963_v31, %v6923_v9  ;;  %3968 = vadd.xlane.f32.xlu0 %v3966_v23 }
 0x493   :  { %3970 = vadd.xlane.f32.xlu1 %v3967_v13 }
 0x4fe   :  { %v3672_v63 = vpop.xlane.xlu0 %3671 }
 0x4ff   :  { %v3676_v62 = vmul.f32 0.0078125, %v3672_v63 }
 0x500   :  { %v3674_v8 = vpop.xlane.xlu1 %3673 }
 0x501   :  { %v3678_v17 = vsub.f32 %v3669_v51, %v3676_v62  ;;  %v3677_v6 = vmul.f32 0.0078125, %v3674_v8 }
 0x503   :  { %v3679_v35 = vsub.f32 %v3670_v20, %v3677_v6  ;;  %v3680_v44 = vmul.f32 %v3678_v17, %v3678_v17 }
 0x505   :  { %3682 = vadd.xlane.f32.xlu0 %v3680_v44  ;;  %v3681_v47 = vmul.f32 %v3679_v35, %v3679_v35 }
 0x507   :  { %3684 = vadd.xlane.f32.xlu1 %v3681_v47 }
 0x51e   :  { %v3969_v40 = vpop.xlane.xlu0 %3968 }
 0x51f   :  { %v3972_v18 = vmul.f32 0.0078125, %v3969_v40 }
 0x520   :  { %v3971_v36 = vpop.xlane.xlu1 %3970 }
 0x521   :  { %v3974_v33 = vsub.f32 %v3966_v23, %v3972_v18  ;;  %v3973_v16 = vmul.f32 0.0078125, %v3971_v36 }
 0x523   :  { %v3975_v3 = vsub.f32 %v3967_v13, %v3973_v16  ;;  %v3976_v0 = vmul.f32 %v3974_v33, %v3974_v33 }
 0x525   :  { %3978 = vadd.xlane.f32.xlu0 %v3976_v0  ;;  %v3977_v25 = vmul.f32 %v3975_v3, %v3975_v3 }
 0x527   :  { %3980 = vadd.xlane.f32.xlu1 %v3977_v25 }
 0x592   :  { %v3683_v48 = vpop.xlane.xlu0 %3682 }
 0x593   :  { %v3686_v15 = vmul.f32 0.0078125, %v3683_v48 }
 0x594   :  { %v3685_v57 = vpop.xlane.xlu1 %3684 }
 0x595   :  { %v3688_v9 = vadd.f32 1e-05, %v3686_v15  ;;  %v3687_v42 = vmul.f32 0.0078125, %v3685_v57 }
 0x597   :  { %5038 = vrsqrt.f32 %v3688_v9  ;;  %v3689_v34 = vadd.f32 1e-05, %v3687_v42 }
 0x599   :  { %5040 = vrsqrt.f32 %v3689_v34 }
 0x5a1   :  { %v5039_v30 = vpop.eup %5038 }
 0x5a2   :  { %v3692_v58 = vmul.f32 %v5039_v30, %v3678_v17 }
 0x5a3   :  { %v5041_v39 = vpop.eup %5040 }
 0x5a4   :  { %v3693_v54 = vmul.f32 %v5041_v39, %v3679_v35  ;;  %v3700_v37 = vmul.f32 %v4204_v43, %v3692_v58 }
 0x5a6   :  { %v3701_v45 = vmul.f32 %v4204_v43, %v3693_v54  ;;  %v3708_v7 = vadd.f32 %v4205_v29, %v3700_v37 }
 0x5a8   :  { %v3709_v12 = vadd.f32 %v4205_v29, %v3701_v45 }
 0x5aa   :  { %v4022_v53 = vpack.c.bf16 %v3709_v12, %v3708_v7 }
 0x5ac   :  { %4984 = vmatpush3.bf16.xpose.msra.mxu0 %v4022_v53  ;;  %v4066_v51 = vunpack.c.l.bf16 %v4022_v53  ;;  %v4067_v21 = vunpack.c.h.bf16 %v4022_v53 }
 0x5b2   :  { %v3979_v38 = vpop.xlane.xlu0 %3978 }
 0x5b3   :  { %v3982_v59 = vmul.f32 0.0078125, %v3979_v38 }
 0x5b4   :  { %v3981_v46 = vpop.xlane.xlu1 %3980 }
 0x5b5   :  { %v3984_v26 = vadd.f32 1e-05, %v3982_v59  ;;  %v3983_v50 = vmul.f32 0.0078125, %v3981_v46 }
 0x5b7   :  { %5042 = vrsqrt.f32 %v3984_v26  ;;  %v3985_v19 = vadd.f32 1e-05, %v3983_v50 }
 0x5b9   :  { %5044 = vrsqrt.f32 %v3985_v19 }
 0x5c1   :  { %v5043_v61 = vpop.eup %5042 }
 0x5c2   :  { %v3988_v5 = vmul.f32 %v5043_v61, %v3974_v33 }
 0x5c3   :  { %v5045_v52 = vpop.eup %5044 }
 0x5c4   :  { %v3989_v22 = vmul.f32 %v5045_v52, %v3975_v3  ;;  %v3996_v28 = vmul.f32 %v4224_v4, %v3988_v5 }
 0x5c6   :  { %v3997_v2 = vmul.f32 %v4224_v4, %v3989_v22  ;;  %v4004_v24 = vadd.f32 %v4225_v32, %v3996_v28 }
 0x5c8   :  { %v4005_v60 = vadd.f32 %v4225_v32, %v3997_v2 }
 0x5ca   :  { %v4019_v27 = vpack.c.bf16 %v4005_v60, %v4004_v24 }
 0x5cc   :  { %4986 = vmatmul.mubr.bf16.vlgmr.msra.gmra.mrb[8].mxu0 %v4019_v27  ;;  %v4064_v49 = vunpack.c.l.bf16 %v4019_v27  ;;  %v4065_v55 = vunpack.c.h.bf16 %v4019_v27 }
 0x5ce   :  { %v4068_v20 = vmul.f32 %v4066_v51, %v4064_v49  ;;  %v4069_v14 = vmul.f32 %v4067_v21, %v4065_v55 }
 0x69f   :  { %v4057_v41 = vpop.f32.mrb[8].mxu0 }
 0x6a0   :  { %v4987_v56 = vpop.f32.mrb[9].mxu0  ;;  %v4075_v1 = vsel %vm4074_vm8, %v4057_v41, -inf }
 0x6a1   :  { %4076 = vmax.xlane.f32.xlu0 %v4075_v1  ;;  %v4060_v10 = vpop.f32.mrb[10].mxu0 }
 0x6a2   :  { %v4988_v23 = vpop.f32.mrb[11].mxu0  ;;  %v4078_v31 = vsel %vm4074_vm8, %v4060_v10, -inf }
 0x6a3   :  { %4079 = vmax.xlane.f32.xlu1 %v4078_v31  ;;  %v4099_v11 = vmax.f32 %v4075_v1, %v4078_v31 }
 0x6a5   :  { %v4100_v13 = vrot.slane %v4099_v11, 4 }
 0x6a7   :  { %v4101_v63 = vmax.f32 %v4099_v11, %v4100_v13 }
 0x6a9   :  { %v4102_v62 = vrot.slane %v4101_v63, 2 }
 0x6ab   :  { %v4103_v8 = vmax.f32 %v4101_v63, %v4102_v62 }
 0x6ad   :  { %v4104_v17 = vrot.slane %v4103_v8, 1 }
 0x6af   :  { %v4105_v6 = vmax.f32 %v4103_v8, %v4104_v17 }
 0x6b1   :  { %v4106_v35 = vsub.f32 %v4057_v41, %v4105_v6  ;;  %v4107_v44 = vsub.f32 %v4060_v10, %v4105_v6 }
 0x6b3   :  { %v4108_v47 = vmul.f32 1.442695, %v4106_v35  ;;  %v4110_v40 = vmul.f32 1.442695, %v4107_v44 }
 0x6b5   :  { %5046 = vpow2.f32 %v4108_v47 }
 0x6b6   :  { %5048 = vpow2.f32 %v4110_v40 }
 0x6bf   :  { %v5047_v18 = vpop.eup %5046 }
 0x6c0   :  { %v5049_v36 = vpop.eup %5048  ;;  %v4112_v33 = vsel %vm4074_vm8, %v5047_v18, 0.0 }
 0x6c1   :  { %v4113_v16 = vsel %vm4074_vm8, %v5049_v36, 0.0 }
 0x6c2   :  { %v4114_v3 = vadd.f32 %v4113_v16, %v4112_v33 }
 0x6c4   :  { %v4115_v0 = vrot.slane %v4114_v3, 4 }
 0x6c6   :  { %v4116_v25 = vadd.f32 %v4115_v0, %v4114_v3 }
 0x6c8   :  { %v4117_v48 = vrot.slane %v4116_v25, 2 }
 0x6ca   :  { %v4118_v15 = vadd.f32 %v4117_v48, %v4116_v25 }
 0x6cc   :  { %v4119_v57 = vrot.slane %v4118_v15, 1 }
 0x6ce   :  { %v4120_v9 = vadd.f32 %v4119_v57, %v4118_v15 }
 0x6d0   :  { %5050 = vlog2.f32 %v4120_v9 }
 0x6da   :  { %v5051_v42 = vpop.eup %5050 }
 0x6db   :  { %v4122_v34 = vmul.f32 0.6931472, %v5051_v42 }
 0x6dd   :  { %v4123_v30 = vadd.f32 %v4122_v34, %v4105_v6 }
 0x6df   :  { %v4141_v38 = vsel %vm4140_vm9, %v4123_v30, 0.0 }
 0x72e   :  { %v4077_v43 = vpop.xlane.xlu0 %4076 }
 0x72f   :  { %v4081_v58 = vsub.f32 %v4057_v41, %v4077_v43 }
 0x730   :  { %v4080_v39 = vpop.xlane.xlu1 %4079 }
 0x731   :  { %v4083_v54 = vmul.f32 1.442695, %v4081_v58  ;;  %v4082_v37 = vsub.f32 %v4060_v10, %v4080_v39 }
 0x733   :  { %5052 = vpow2.f32 %v4083_v54  ;;  %v4085_v29 = vmul.f32 1.442695, %v4082_v37 }
 0x735   :  { %5054 = vpow2.f32 %v4085_v29 }
 0x73d   :  { %v5053_v45 = vpop.eup %5052 }
 0x73e   :  { %v4087_v7 = vsel %vm4074_vm8, %v5053_v45, 0.0 }
 0x73f   :  { %v5055_v12 = vpop.eup %5054  ;;  %4088 = vadd.xlane.f32.xlu0 %v4087_v7 }
 0x740   :  { %v4090_v53 = vsel %vm4074_vm8, %v5055_v12, 0.0 }
 0x741   :  { %4091 = vadd.xlane.f32.xlu1 %v4090_v53 }
 0x743   :  { %4070 = vadd.xlane.f32.xlu0 %v4068_v20 }
 0x745   :  { %4072 = vadd.xlane.f32.xlu1 %v4069_v14 }
 0x749   :  { %4142 = vadd.xlane.f32.xlu1 %v4141_v38 }
 0x7cc   :  { %v4089_v59 = vpop.xlane.xlu0 %4088 }
 0x7cd   :  { %5056 = vlog2.f32 %v4089_v59 }
 0x7ce   :  { %v4092_v46 = vpop.xlane.xlu1 %4091 }
 0x7cf   :  { %5058 = vlog2.f32 %v4092_v46 }
 0x7d0   :  { %v4071_v32 = vpop.xlane.xlu0 %4070 }
 0x7d1   :  { %v4153_v60 = vsel %vm4124_vm10, %v4071_v32, 0.0 }
 0x7d2   :  { %v4073_v52 = vpop.xlane.xlu1 %4072 }
 0x7d3   :  { %v4154_v24 = vsel %vm4124_vm10, %v4073_v52, 0.0 }
 0x7d4   :  { %v4155_v27 = vadd.f32 %v4154_v24, %v4153_v60 }
 0x7d6   :  { %v4143_v49 = vpop.xlane.xlu1 %4142 }
 0x7d7   :  { %v5057_v26 = vpop.eup %5056  ;;  %v4144_v51 = vrot.slane %v4143_v49, 4 }
 0x7d8   :  { %v4094_v50 = vmul.f32 0.6931472, %v5057_v26 }
 0x7d9   :  { %v5059_v19 = vpop.eup %5058  ;;  %v4145_v55 = vadd.f32 %v4144_v51, %v4143_v49 }
 0x7da   :  { %v4097_v61 = vadd.f32 %v4094_v50, %v4077_v43  ;;  %v4096_v4 = vmul.f32 0.6931472, %v5059_v19 }
 0x7db   :  { %v4146_v21 = vrot.slane %v4145_v55, 2 }
 0x7dc   :  { %v4098_v5 = vadd.f32 %v4096_v4, %v4080_v39  ;;  %v4125_v22 = vsel %vm4124_vm10, %v4097_v61, 0.0 }
 0x7dd   :  { %v4147_v56 = vadd.f32 %v4146_v21, %v4145_v55 }
 0x7de   :  { %v4126_v28 = vsel %vm4124_vm10, %v4098_v5, 0.0 }
 0x7df   :  { %v4127_v2 = vadd.f32 %v4126_v28, %v4125_v22  ;;  %v4148_v13 = vrot.slane %v4147_v56, 1 }
 0x7e1   :  { %4128 = vadd.xlane.f32.xlu0 %v4127_v2  ;;  %v4149_v6 = vadd.f32 %v4148_v13, %v4147_v56 }
 0x7e5   :  { %4156 = vadd.xlane.f32.xlu0 %v4155_v27 }
 0x86e   :  { %v4129_v20 = vpop.xlane.xlu0 %4128 }
 0x86f   :  { %v4130_v14 = vrot.slane %v4129_v20, 4 }
 0x871   :  { %v4131_v41 = vadd.f32 %v4130_v14, %v4129_v20 }
 0x872   :  { %v4157_v1 = vpop.xlane.xlu0 %4156 }
 0x873   :  { %v4132_v10 = vrot.slane %v4131_v41, 2  ;;  %v4158_v23 = vrot.slane %v4157_v1, 4 }
 0x875   :  { %v4159_v31 = vadd.f32 %v4158_v23, %v4157_v1  ;;  %v4133_v11 = vadd.f32 %v4132_v10, %v4131_v41 }
 0x877   :  { %v4160_v63 = vrot.slane %v4159_v31, 2  ;;  %v4134_v62 = vrot.slane %v4133_v11, 1 }
 0x879   :  { %v4161_v8 = vadd.f32 %v4160_v63, %v4159_v31  ;;  %v4135_v17 = vadd.f32 %v4134_v62, %v4133_v11 }
 0x87b   :  { %4989 = vpush %v4135_v17  ;;  %v4162_v35 = vrot.slane %v4161_v8, 1 }
 0x87c   :  { %4991 = vpush %v4149_v6 }
 0x87d   :  { %v4163_v44 = vadd.f32 %v4162_v35, %v4161_v8 }
 0x87f   :  { %4993 = vpush %v4163_v44 }
 0x8ac   :  { %s4990_s14 = spop %4989 }
 0x8ad   :  { %v4137_v47 = vstv %s4990_s14  ;;  %s4992_s15 = spop %4991 }
 0x8ae   :  { %v4139_v40 = vmul.f32 0.0625, %v4137_v47  ;;  %v4151_v18 = vstv %s4992_s15 }
 0x8af   :  { %v4152_v36 = vmul.f32 0.0625, %v4151_v18 }
 0x8b0   :  { %s4994_s2 = spop %4993 }
 0x8b1   :  { %v4167_v33 = vadd.f32 %v4152_v36, %v4139_v40  ;;  %v4165_v16 = vstv %s4994_s2 }
 0x8b2   :  { %v4166_v3 = vmul.f32 0.0625, %v4165_v16 }
 0x8b3   :  { %v4168_v0 = vmul.f32 0.5, %v4167_v33 }
 0x8b5   :  { %v4169_v25 = vsub.f32 %v4168_v0, %v4166_v3 }
 0x8b7   :  { %4171 = vst.msk [vmem:[#allocation4] sm:$0x1] %vm4170_vm11, %v4169_v25 }
 0x8b8   :  { %5071 = shalt.err (!%p5068_p4)
}
 0x8b9   :  { %s5072_s10 = scalar_lea.hbm %s7019_s16, 16 }
 0x8ba   :  { %p5073_p5 = scmp.ne.s32.totalorder %s7019_s16, %s5072_s10  ;;  %p5076_p6 = scmp.lt.u32.totalorder %s5072_s10, %s7019_s16 }
 0x8bc   :  { %p5078_p7 = pnand %p5076_p6, %p5073_p5 }
 0x8be   :  { %5081 = shalt.err (!%p5078_p7)
}
 0x8bf   :  { %4181 = dma.vmem_to_hbm [thread:$0]  %s4179_s11, 16, %s7019_s16, [#allocation5]  }
 0x8c0   :  { %5082 = dma.done.wait [#allocation5], 16  }
 0x8c1   :  { %5083 = vsyncadd [#allocation5], 4294967280 }
 0x8c2   :  { %4185 = vsyncpa [#allocation5], 1 }

</bundles_post_ra>
